<compile_context>
chip_gen: v5e
topology: v5e:2x2
jax: 0.10.0
libtpu: 0.0.40
codegen_flags: <defaults>
</compile_context>

<pallas_src>
import functools

import numpy as np

import jax
import jax.numpy as jnp
from jax import lax
from jax.experimental import pallas as pl
from jax.experimental.pallas import tpu as pltpu


# ---------------------------------------------------------------------------
# Pallas megakernel: the entire VAE forward as a chain of GEMM + bias + act
# ---------------------------------------------------------------------------
def _vae_kernel(*refs, n_pre, n_post, reparam_size, rand_intensity):
    """Ref order:
         x, eps,
         (w, b) * n_pre          # encoder convs (as dense mats) + encoder MLP
         (w_heads, b_heads)      # fused [mean | log_var] head
         (w, b) * n_post         # decoder MLP + decoder deconvs (as dense mats)
         recon_out, mean_out, logvar_out
    All intermediates stay in VMEM / vregs; nothing round-trips HBM.
    """
    it = iter(refs)
    x_ref = next(it)
    eps_ref = next(it)

    def layer(a, act):
        w = next(it)[...]
        b = next(it)[...]
        # bf16 MXU operands (if weights stored bf16), f32 accumulate, f32 epilogue.
        y = jnp.dot(a.astype(w.dtype), w, preferred_element_type=jnp.float32)
        y = y + b
        if act == "relu":
            y = jnp.maximum(y, 0.0)
        elif act == "sigmoid":
            # exact divide (not approx vrcp) so the output stays strictly in (0, 1)
            y = 1.0 / (1.0 + jnp.exp(-y))
        return y

    h = x_ref[...]
    for _ in range(n_pre):
        h = layer(h, "relu")

    ml = layer(h, "none")                        # (bm, 2R): [mean | log_var] in one dot
    mean = ml[:, :reparam_size]
    log_var = ml[:, reparam_size:]
    z = mean + rand_intensity * eps_ref[...] * jnp.exp(0.5 * log_var)

    d = z
    for li in range(n_post):
        d = layer(d, "sigmoid" if li == n_post - 1 else "relu")

    recon_ref = next(it)
    mean_ref = next(it)
    logvar_ref = next(it)
    recon_ref[...] = d.astype(recon_ref.dtype)       # lane-dense (N, C*H*W) store
    mean_ref[...] = mean.astype(mean_ref.dtype)
    logvar_ref[...] = log_var.astype(logvar_ref.dtype)


# ---------------------------------------------------------------------------
# Forward wrapper (single pallas_call; only contiguous reshapes at the boundary)
# ---------------------------------------------------------------------------
def vae_forward(params, x_nchw, eps, rand_intensity=0.5):
    N = x_nchw.shape[0]
    x_flat = x_nchw.reshape(N, -1).astype(jnp.float32)    # contiguous NCHW flatten
    eps = eps.astype(jnp.float32)

    pre, heads, post = params["pre"], params["heads"], params["post"]
    inputs = [x_flat, eps]
    for w, b in pre:
        inputs += [w, b]
    inputs += [heads[0], heads[1]]
    for w, b in post:
        inputs += [w, b]

    R = eps.shape[1]
    out_dim = post[-1][0].shape[1]

    # Batch tiling: shards across v7x's two TensorCores at real batch sizes; at
    # batch=2 this is a single whole-problem block (grid of length 1).
    bm = 128 if (N % 128 == 0) else N
    grid = (N // bm,)

    def act_spec(d):
        return pl.BlockSpec((bm, d), lambda i: (i, 0))

    in_specs = [act_spec(x_flat.shape[1]), act_spec(R)]
    in_specs += [pl.BlockSpec(a.shape, lambda i: (0, 0)) for a in inputs[2:]]
    out_specs = (act_spec(out_dim), act_spec(R), act_spec(R))
    out_shape = (
        jax.ShapeDtypeStruct((N, out_dim), jnp.float32),
        jax.ShapeDtypeStruct((N, R), jnp.float32),
        jax.ShapeDtypeStruct((N, R), jnp.float32),
    )

    flops = sum(2 * N * w.shape[0] * w.shape[1] for w, _ in pre + [heads] + post)
    transcendentals = N * (R + out_dim)            # exp in reparam + exp in sigmoid
    bytes_accessed = sum(int(a.size) * a.dtype.itemsize for a in inputs)
    bytes_accessed += N * (out_dim + 2 * R) * 4

    kernel = functools.partial(
        _vae_kernel, n_pre=len(pre), n_post=len(post),
        reparam_size=R, rand_intensity=rand_intensity)

    recon_flat, mean, log_var = pl.pallas_call(
        kernel,
        out_shape=out_shape,
        grid=grid,
        in_specs=in_specs,
        out_specs=out_specs,
        compiler_params=pltpu.CompilerParams(
            dimension_semantics=("parallel",),
            vmem_limit_bytes=32 * 1024 * 1024),
        cost_estimate=pl.CostEstimate(
            flops=flops, transcendentals=transcendentals,
            bytes_accessed=bytes_accessed),
    )(*inputs)

    return recon_flat.reshape(x_nchw.shape), mean, log_var


# ---------------------------------------------------------------------------
# Parameter init: fold convs / transposed convs into dense NCHW-flat matrices
# (done once, outside the hot path / outside the kernel).
# ---------------------------------------------------------------------------
def _init_mat(key, fan_in, shape):
    return jax.random.normal(key, shape, jnp.float32) * (float(fan_in) ** -0.5)


def _conv_dense(w_oihw, bias, in_shape, stride, pad):
    """Fold Conv2d(stride, pad) into y_flat = x_flat @ M + b_flat (NCHW-flat layout)."""
    cin, h, w = in_shape
    din = cin * h * w
    basis = jnp.eye(din, dtype=jnp.float32).reshape(din, cin, h, w)
    out = lax.conv_general_dilated(
        basis, w_oihw, (stride, stride), ((pad, pad), (pad, pad)),
        dimension_numbers=("NCHW", "OIHW", "NCHW"))
    out_shape = out.shape[1:]                               # (cout, ho, wo)
    mat = out.reshape(din, -1)
    b_flat = jnp.repeat(bias, out_shape[1] * out_shape[2]).reshape(1, -1)
    return mat, b_flat, out_shape


def _convT_dense(w_pt, bias, in_shape, out_shape, stride, pad):
    """Fold ConvTranspose2d (the adjoint of Conv2d(stride, pad) with OIHW weight w_pt)
    mapping NCHW-flat in_shape -> NCHW-flat out_shape into a dense matrix."""
    cin_t, h_in, w_in = in_shape
    cout_t, h_out, w_out = out_shape
    din = cin_t * h_in * w_in

    def fwd(x):      # (B, cout_t, h_out, w_out) -> (B, cin_t, h_in, w_in)
        return lax.conv_general_dilated(
            x, w_pt, (stride, stride), ((pad, pad), (pad, pad)),
            dimension_numbers=("NCHW", "OIHW", "NCHW"))

    basis = jnp.eye(din, dtype=jnp.float32).reshape(din, cin_t, h_in, w_in)
    _, vjp_fn = jax.vjp(fwd, jnp.zeros((din, cout_t, h_out, w_out), jnp.float32))
    (out,) = vjp_fn(basis)                                  # (din, cout_t, h_out, w_out)
    mat = out.reshape(din, -1)
    b_flat = jnp.repeat(bias, h_out * w_out).reshape(1, -1)
    return mat, b_flat


def init_params(key, conv_cfg, mlp_cfg, reparam_size, img_c, img_hw, use_bf16=True):
    keys = iter(jax.random.split(key, 64))
    wdt = jnp.bfloat16 if use_bf16 else jnp.float32

    raw = {"enc_conv": [], "enc_mlp": [], "dec_mlp": [], "dec_conv": []}
    pre, post = [], []

    # encoder convs
    shape = (img_c,) + tuple(img_hw)                        # (C, H, W)
    enc_shapes = [shape]
    for (cin, cout, k, s, p) in conv_cfg:
        assert cin == shape[0], (cin, shape)
        w = _init_mat(next(keys), cin * k * k, (cout, cin, k, k))
        b = _init_mat(next(keys), cin * k * k, (cout,))
        mat, b_flat, shape = _conv_dense(w, b, shape, s, p)
        pre.append((mat.astype(wdt), b_flat))
        raw["enc_conv"].append((w, b, s, p))
        enc_shapes.append(tuple(int(v) for v in shape))
    shape = enc_shapes[-1]

    flat_dim = int(np.prod(shape))
    assert flat_dim == mlp_cfg[0], (flat_dim, mlp_cfg)

    # encoder MLP
    for din, dout in zip(mlp_cfg[:-1], mlp_cfg[1:]):
        w = _init_mat(next(keys), din, (din, dout))
        b = _init_mat(next(keys), din, (1, dout))
        pre.append((w.astype(wdt), b))
        raw["enc_mlp"].append((w, b))

    # fused [mean | log_var] heads
    hdim = mlp_cfg[-1]
    wm = _init_mat(next(keys), hdim, (hdim, reparam_size))
    bme = _init_mat(next(keys), hdim, (1, reparam_size))
    wv = _init_mat(next(keys), hdim, (hdim, reparam_size))
    bva = _init_mat(next(keys), hdim, (1, reparam_size))
    heads = (jnp.concatenate([wm, wv], axis=1).astype(wdt),
             jnp.concatenate([bme, bva], axis=1))
    raw["w_mean"] = (wm, bme)
    raw["w_logvar"] = (wv, bva)

    # decoder MLP (mirror of encoder)
    dec_dims = (reparam_size,) + tuple(reversed(mlp_cfg))
    for din, dout in zip(dec_dims[:-1], dec_dims[1:]):
        w = _init_mat(next(keys), din, (din, dout))
        b = _init_mat(next(keys), din, (1, dout))
        post.append((w.astype(wdt), b))
        raw["dec_mlp"].append((w, b))

    # decoder transposed convs (mirror of encoder convs), folded to dense matrices
    dec_io_shapes = list(reversed(enc_shapes))              # e.g. [(16,4,4),(8,8,8),(4,16,16)]
    for idx, (cin, cout, k, s, p) in enumerate(reversed(conv_cfg)):
        t_in, t_out = cout, cin                             # ConvTranspose2d(cout -> cin)
        in_shape = dec_io_shapes[idx]
        out_shape = dec_io_shapes[idx + 1]
        w = _init_mat(next(keys), t_in * k * k, (t_in, t_out, k, k))
        b = _init_mat(next(keys), t_in * k * k, (t_out,))
        mat, b_flat = _convT_dense(w, b, in_shape, out_shape, s, p)
        post.append((mat.astype(wdt), b_flat))
        raw["dec_conv"].append((w, b, s, p, out_shape))

    raw["conv_out_shape"] = enc_shapes[-1]
    return {"pre": pre, "heads": heads, "post": post}, raw


# ---------------------------------------------------------------------------
# Plain-JAX f32 reference of the same architecture (for a correctness check)
# ---------------------------------------------------------------------------
def reference_forward(raw, x, eps, rand_intensity=0.5):
    N = x.shape[0]
    h = x
    for (w, b, s, p) in raw["enc_conv"]:
        h = lax.conv_general_dilated(h, w, (s, s), ((p, p), (p, p)),
                                     dimension_numbers=("NCHW", "OIHW", "NCHW"))
        h = jnp.maximum(h + b[None, :, None, None], 0.0)
    h = h.reshape(N, -1)
    for (w, b) in raw["enc_mlp"]:
        h = jnp.maximum(h @ w + b, 0.0)
    mean = h @ raw["w_mean"][0] + raw["w_mean"][1]
    log_var = h @ raw["w_logvar"][0] + raw["w_logvar"][1]
    z = mean + rand_intensity * eps * jnp.exp(0.5 * log_var)
    d = z
    for (w, b) in raw["dec_mlp"]:
        d = jnp.maximum(d @ w + b, 0.0)
    c, hh, ww = raw["conv_out_shape"]
    d = d.reshape(N, c, hh, ww)
    n_dc = len(raw["dec_conv"])
    for i, (w, b, s, p, out_sp) in enumerate(raw["dec_conv"]):
        def fwd(xx, w=w, s=s, p=p):
            return lax.conv_general_dilated(xx, w, (s, s), ((p, p), (p, p)),
                                            dimension_numbers=("NCHW", "OIHW", "NCHW"))
        _, vjp_fn = jax.vjp(fwd, jnp.zeros((N,) + tuple(out_sp), jnp.float32))
        (d,) = vjp_fn(d)
        d = d + b[None, :, None, None]
        d = jax.nn.sigmoid(d) if i == n_dc - 1 else jnp.maximum(d, 0.0)
    return d, mean, log_var


# ---------------------------------------------------------------------------
if __name__ == "__main__":
    # config consistent with the PyTorch constructor
    conv_layers_encoder_config = ((4, 8, 3, 2, 1), (8, 16, 3, 2, 1))
    mlp_layers_encoder_config = (256, 64, 32)               # 256 = 16*4*4 flattened
    reparam_size = 16
    encoder_conv_output_shape = (16, 4, 4)                  # (C, H, W)
    original_image_dims = (16, 16)
    rand_intensity = 0.5
    use_bf16 = True                                         # bf16 MXU operands (v6e/v7x)

    key = jax.random.PRNGKey(0)
    kp, kx, ke = jax.random.split(key, 3)

    img_c = conv_layers_encoder_config[0][0]
    params, raw = init_params(kp, conv_layers_encoder_config,
                              mlp_layers_encoder_config, reparam_size,
                              img_c, original_image_dims, use_bf16=use_bf16)
    assert tuple(raw["conv_out_shape"]) == encoder_conv_output_shape

    batch = 2
    x = jax.random.normal(kx, (batch, img_c) + original_image_dims, jnp.float32)
    eps = jax.random.normal(ke, (batch, reparam_size), jnp.float32)

    fwd = jax.jit(functools.partial(vae_forward, rand_intensity=rand_intensity))
    recon, mean, log_var = fwd(params, x, eps)
    jax.block_until_ready((recon, mean, log_var))

    assert recon.shape == x.shape, recon.shape
    assert mean.shape == (batch, reparam_size)
    assert log_var.shape == (batch, reparam_size)
    assert bool(jnp.all(jnp.isfinite(recon)))
    assert bool(jnp.all((recon >= 0.0) & (recon <= 1.0)))   # exact sigmoid output range

    # numeric check against the plain-JAX f32 reference of the same architecture
    r_recon, r_mean, r_logvar = reference_forward(raw, x, eps, rand_intensity)
    tol = 2e-1 if use_bf16 else 1e-3
    for got, ref in ((recon, r_recon), (mean, r_mean), (log_var, r_logvar)):
        err = float(jnp.max(jnp.abs(got - ref)))
        assert err < tol, err

    print("KERNEL_OK")
</pallas_src>

<mosaic_0001>
module attributes {stable_mosaic.version = 11 : i64} {
  func.func @_vae_kernel(%arg0: i32, %arg1: memref<2x1024xf32, #tpu.memory_space<vmem>>, %arg2: memref<2x16xf32, #tpu.memory_space<vmem>>, %arg3: memref<1024x512xbf16, #tpu.memory_space<vmem>>, %arg4: memref<1x512xf32, #tpu.memory_space<vmem>>, %arg5: memref<512x256xbf16, #tpu.memory_space<vmem>>, %arg6: memref<1x256xf32, #tpu.memory_space<vmem>>, %arg7: memref<256x64xbf16, #tpu.memory_space<vmem>>, %arg8: memref<1x64xf32, #tpu.memory_space<vmem>>, %arg9: memref<64x32xbf16, #tpu.memory_space<vmem>>, %arg10: memref<1x32xf32, #tpu.memory_space<vmem>>, %arg11: memref<32x32xbf16, #tpu.memory_space<vmem>>, %arg12: memref<1x32xf32, #tpu.memory_space<vmem>>, %arg13: memref<16x32xbf16, #tpu.memory_space<vmem>>, %arg14: memref<1x32xf32, #tpu.memory_space<vmem>>, %arg15: memref<32x64xbf16, #tpu.memory_space<vmem>>, %arg16: memref<1x64xf32, #tpu.memory_space<vmem>>, %arg17: memref<64x256xbf16, #tpu.memory_space<vmem>>, %arg18: memref<1x256xf32, #tpu.memory_space<vmem>>, %arg19: memref<256x512xbf16, #tpu.memory_space<vmem>>, %arg20: memref<1x512xf32, #tpu.memory_space<vmem>>, %arg21: memref<512x1024xbf16, #tpu.memory_space<vmem>>, %arg22: memref<1x1024xf32, #tpu.memory_space<vmem>>, %arg23: memref<2x1024xf32, #tpu.memory_space<vmem>>, %arg24: memref<2x16xf32, #tpu.memory_space<vmem>>, %arg25: memref<2x16xf32, #tpu.memory_space<vmem>>) attributes {dimension_semantics = [#tpu.dimension_semantics<parallel>], iteration_bounds = array<i64: 1>, scalar_prefetch = 0 : i64, scratch_operands = 0 : i64, tpu.core_type = #tpu.core_type<tc>, window_params = [{transform_indices = @transform_0, window_bounds = array<i64: 2, 1024>}, {transform_indices = @transform_1, window_bounds = array<i64: 2, 16>}, {pipeline_mode = #tpu.pipeline_mode<synchronous>, transform_indices = @transform_2, window_bounds = array<i64: 1024, 512>}, {pipeline_mode = #tpu.pipeline_mode<synchronous>, transform_indices = @transform_3, window_bounds = array<i64: 1, 512>}, {pipeline_mode = #tpu.pipeline_mode<synchronous>, transform_indices = @transform_4, window_bounds = array<i64: 512, 256>}, {pipeline_mode = #tpu.pipeline_mode<synchronous>, transform_indices = @transform_5, window_bounds = array<i64: 1, 256>}, {pipeline_mode = #tpu.pipeline_mode<synchronous>, transform_indices = @transform_6, window_bounds = array<i64: 256, 64>}, {pipeline_mode = #tpu.pipeline_mode<synchronous>, transform_indices = @transform_7, window_bounds = array<i64: 1, 64>}, {pipeline_mode = #tpu.pipeline_mode<synchronous>, transform_indices = @transform_8, window_bounds = array<i64: 64, 32>}, {pipeline_mode = #tpu.pipeline_mode<synchronous>, transform_indices = @transform_9, window_bounds = array<i64: 1, 32>}, {pipeline_mode = #tpu.pipeline_mode<synchronous>, transform_indices = @transform_10, window_bounds = array<i64: 32, 32>}, {pipeline_mode = #tpu.pipeline_mode<synchronous>, transform_indices = @transform_11, window_bounds = array<i64: 1, 32>}, {pipeline_mode = #tpu.pipeline_mode<synchronous>, transform_indices = @transform_12, window_bounds = array<i64: 16, 32>}, {pipeline_mode = #tpu.pipeline_mode<synchronous>, transform_indices = @transform_13, window_bounds = array<i64: 1, 32>}, {pipeline_mode = #tpu.pipeline_mode<synchronous>, transform_indices = @transform_14, window_bounds = array<i64: 32, 64>}, {pipeline_mode = #tpu.pipeline_mode<synchronous>, transform_indices = @transform_15, window_bounds = array<i64: 1, 64>}, {pipeline_mode = #tpu.pipeline_mode<synchronous>, transform_indices = @transform_16, window_bounds = array<i64: 64, 256>}, {pipeline_mode = #tpu.pipeline_mode<synchronous>, transform_indices = @transform_17, window_bounds = array<i64: 1, 256>}, {pipeline_mode = #tpu.pipeline_mode<synchronous>, transform_indices = @transform_18, window_bounds = array<i64: 256, 512>}, {pipeline_mode = #tpu.pipeline_mode<synchronous>, transform_indices = @transform_19, window_bounds = array<i64: 1, 512>}, {pipeline_mode = #tpu.pipeline_mode<synchronous>, transform_indices = @transform_20, window_bounds = array<i64: 512, 1024>}, {pipeline_mode = #tpu.pipeline_mode<synchronous>, transform_indices = @transform_21, window_bounds = array<i64: 1, 1024>}, {transform_indices = @transform_22, window_bounds = array<i64: 2, 1024>}, {transform_indices = @transform_23, window_bounds = array<i64: 2, 16>}, {transform_indices = @transform_24, window_bounds = array<i64: 2, 16>}]} {
    %c0 = arith.constant 0 : index
    %c0_0 = arith.constant 0 : index
    %0 = vector.load %arg1[%c0, %c0_0] : memref<2x1024xf32, #tpu.memory_space<vmem>>, vector<2x1024xf32>
    %c0_1 = arith.constant 0 : index
    %c0_2 = arith.constant 0 : index
    %1 = vector.load %arg3[%c0_1, %c0_2] : memref<1024x512xbf16, #tpu.memory_space<vmem>>, vector<1024x512xbf16>
    %c0_3 = arith.constant 0 : index
    %c0_4 = arith.constant 0 : index
    %2 = vector.load %arg4[%c0_3, %c0_4] : memref<1x512xf32, #tpu.memory_space<vmem>>, vector<1x512xf32>
    %3 = arith.truncf %0 : vector<2x1024xf32> to vector<2x1024xbf16>
    %cst = arith.constant dense<0.000000e+00> : vector<2x512xf32>
    %4 = tpu.matmul %3, %1, %cst {dimension_numbers = #tpu.dot_dimension_numbers<[1], [0], [0], [1], [0, 0, 1, 1], [], []>} : vector<2x1024xbf16>, vector<1024x512xbf16>, vector<2x512xf32> -> vector<2x512xf32>
    %5 = vector.broadcast %2 : vector<1x512xf32> to vector<2x512xf32>
    %6 = arith.addf %4, %5 : vector<2x512xf32>
    %cst_5 = arith.constant 0.000000e+00 : f32
    %7 = vector.broadcast %cst_5 : f32 to vector<2x512xf32>
    %8 = arith.maximumf %6, %7 : vector<2x512xf32>
    %c0_6 = arith.constant 0 : index
    %c0_7 = arith.constant 0 : index
    %9 = vector.load %arg5[%c0_6, %c0_7] : memref<512x256xbf16, #tpu.memory_space<vmem>>, vector<512x256xbf16>
    %c0_8 = arith.constant 0 : index
    %c0_9 = arith.constant 0 : index
    %10 = vector.load %arg6[%c0_8, %c0_9] : memref<1x256xf32, #tpu.memory_space<vmem>>, vector<1x256xf32>
    %11 = arith.truncf %8 : vector<2x512xf32> to vector<2x512xbf16>
    %cst_10 = arith.constant dense<0.000000e+00> : vector<2x256xf32>
    %12 = tpu.matmul %11, %9, %cst_10 {dimension_numbers = #tpu.dot_dimension_numbers<[1], [0], [0], [1], [0, 0, 1, 1], [], []>} : vector<2x512xbf16>, vector<512x256xbf16>, vector<2x256xf32> -> vector<2x256xf32>
    %13 = vector.broadcast %10 : vector<1x256xf32> to vector<2x256xf32>
    %14 = arith.addf %12, %13 : vector<2x256xf32>
    %cst_11 = arith.constant 0.000000e+00 : f32
    %15 = vector.broadcast %cst_11 : f32 to vector<2x256xf32>
    %16 = arith.maximumf %14, %15 : vector<2x256xf32>
    %c0_12 = arith.constant 0 : index
    %c0_13 = arith.constant 0 : index
    %17 = vector.load %arg7[%c0_12, %c0_13] : memref<256x64xbf16, #tpu.memory_space<vmem>>, vector<256x64xbf16>
    %c0_14 = arith.constant 0 : index
    %c0_15 = arith.constant 0 : index
    %18 = vector.load %arg8[%c0_14, %c0_15] : memref<1x64xf32, #tpu.memory_space<vmem>>, vector<1x64xf32>
    %19 = arith.truncf %16 : vector<2x256xf32> to vector<2x256xbf16>
    %cst_16 = arith.constant dense<0.000000e+00> : vector<2x64xf32>
    %20 = tpu.matmul %19, %17, %cst_16 {dimension_numbers = #tpu.dot_dimension_numbers<[1], [0], [0], [1], [0, 0, 1, 1], [], []>} : vector<2x256xbf16>, vector<256x64xbf16>, vector<2x64xf32> -> vector<2x64xf32>
    %21 = vector.broadcast %18 : vector<1x64xf32> to vector<2x64xf32>
    %22 = arith.addf %20, %21 : vector<2x64xf32>
    %cst_17 = arith.constant 0.000000e+00 : f32
    %23 = vector.broadcast %cst_17 : f32 to vector<2x64xf32>
    %24 = arith.maximumf %22, %23 : vector<2x64xf32>
    %c0_18 = arith.constant 0 : index
    %c0_19 = arith.constant 0 : index
    %25 = vector.load %arg9[%c0_18, %c0_19] : memref<64x32xbf16, #tpu.memory_space<vmem>>, vector<64x32xbf16>
    %c0_20 = arith.constant 0 : index
    %c0_21 = arith.constant 0 : index
    %26 = vector.load %arg10[%c0_20, %c0_21] : memref<1x32xf32, #tpu.memory_space<vmem>>, vector<1x32xf32>
    %27 = arith.truncf %24 : vector<2x64xf32> to vector<2x64xbf16>
    %cst_22 = arith.constant dense<0.000000e+00> : vector<2x32xf32>
    %28 = tpu.matmul %27, %25, %cst_22 {dimension_numbers = #tpu.dot_dimension_numbers<[1], [0], [0], [1], [0, 0, 1, 1], [], []>} : vector<2x64xbf16>, vector<64x32xbf16>, vector<2x32xf32> -> vector<2x32xf32>
    %29 = vector.broadcast %26 : vector<1x32xf32> to vector<2x32xf32>
    %30 = arith.addf %28, %29 : vector<2x32xf32>
    %cst_23 = arith.constant 0.000000e+00 : f32
    %31 = vector.broadcast %cst_23 : f32 to vector<2x32xf32>
    %32 = arith.maximumf %30, %31 : vector<2x32xf32>
    %c0_24 = arith.constant 0 : index
    %c0_25 = arith.constant 0 : index
    %33 = vector.load %arg11[%c0_24, %c0_25] : memref<32x32xbf16, #tpu.memory_space<vmem>>, vector<32x32xbf16>
    %c0_26 = arith.constant 0 : index
    %c0_27 = arith.constant 0 : index
    %34 = vector.load %arg12[%c0_26, %c0_27] : memref<1x32xf32, #tpu.memory_space<vmem>>, vector<1x32xf32>
    %35 = arith.truncf %32 : vector<2x32xf32> to vector<2x32xbf16>
    %cst_28 = arith.constant dense<0.000000e+00> : vector<2x32xf32>
    %36 = tpu.matmul %35, %33, %cst_28 {dimension_numbers = #tpu.dot_dimension_numbers<[1], [0], [0], [1], [0, 0, 1, 1], [], []>} : vector<2x32xbf16>, vector<32x32xbf16>, vector<2x32xf32> -> vector<2x32xf32>
    %37 = vector.broadcast %34 : vector<1x32xf32> to vector<2x32xf32>
    %38 = arith.addf %36, %37 : vector<2x32xf32>
    %39 = vector.extract_strided_slice %38 {offsets = [0, 0], sizes = [2, 16], strides = [1, 1]} : vector<2x32xf32> to vector<2x16xf32>
    %40 = vector.extract_strided_slice %38 {offsets = [0, 16], sizes = [2, 16], strides = [1, 1]} : vector<2x32xf32> to vector<2x16xf32>
    %c0_29 = arith.constant 0 : index
    %c0_30 = arith.constant 0 : index
    %41 = vector.load %arg2[%c0_29, %c0_30] : memref<2x16xf32, #tpu.memory_space<vmem>>, vector<2x16xf32>
    %cst_31 = arith.constant 5.000000e-01 : f32
    %42 = vector.broadcast %cst_31 : f32 to vector<2x16xf32>
    %43 = arith.mulf %42, %41 : vector<2x16xf32>
    %cst_32 = arith.constant 5.000000e-01 : f32
    %44 = vector.broadcast %cst_32 : f32 to vector<2x16xf32>
    %45 = arith.mulf %44, %40 : vector<2x16xf32>
    %46 = math.exp %45 : vector<2x16xf32>
    %47 = arith.mulf %43, %46 : vector<2x16xf32>
    %48 = arith.addf %39, %47 : vector<2x16xf32>
    %c0_33 = arith.constant 0 : index
    %c0_34 = arith.constant 0 : index
    %49 = vector.load %arg13[%c0_33, %c0_34] : memref<16x32xbf16, #tpu.memory_space<vmem>>, vector<16x32xbf16>
    %c0_35 = arith.constant 0 : index
    %c0_36 = arith.constant 0 : index
    %50 = vector.load %arg14[%c0_35, %c0_36] : memref<1x32xf32, #tpu.memory_space<vmem>>, vector<1x32xf32>
    %51 = arith.truncf %48 : vector<2x16xf32> to vector<2x16xbf16>
    %cst_37 = arith.constant dense<0.000000e+00> : vector<2x32xf32>
    %52 = tpu.matmul %51, %49, %cst_37 {dimension_numbers = #tpu.dot_dimension_numbers<[1], [0], [0], [1], [0, 0, 1, 1], [], []>} : vector<2x16xbf16>, vector<16x32xbf16>, vector<2x32xf32> -> vector<2x32xf32>
    %53 = vector.broadcast %50 : vector<1x32xf32> to vector<2x32xf32>
    %54 = arith.addf %52, %53 : vector<2x32xf32>
    %cst_38 = arith.constant 0.000000e+00 : f32
    %55 = vector.broadcast %cst_38 : f32 to vector<2x32xf32>
    %56 = arith.maximumf %54, %55 : vector<2x32xf32>
    %c0_39 = arith.constant 0 : index
    %c0_40 = arith.constant 0 : index
    %57 = vector.load %arg15[%c0_39, %c0_40] : memref<32x64xbf16, #tpu.memory_space<vmem>>, vector<32x64xbf16>
    %c0_41 = arith.constant 0 : index
    %c0_42 = arith.constant 0 : index
    %58 = vector.load %arg16[%c0_41, %c0_42] : memref<1x64xf32, #tpu.memory_space<vmem>>, vector<1x64xf32>
    %59 = arith.truncf %56 : vector<2x32xf32> to vector<2x32xbf16>
    %cst_43 = arith.constant dense<0.000000e+00> : vector<2x64xf32>
    %60 = tpu.matmul %59, %57, %cst_43 {dimension_numbers = #tpu.dot_dimension_numbers<[1], [0], [0], [1], [0, 0, 1, 1], [], []>} : vector<2x32xbf16>, vector<32x64xbf16>, vector<2x64xf32> -> vector<2x64xf32>
    %61 = vector.broadcast %58 : vector<1x64xf32> to vector<2x64xf32>
    %62 = arith.addf %60, %61 : vector<2x64xf32>
    %cst_44 = arith.constant 0.000000e+00 : f32
    %63 = vector.broadcast %cst_44 : f32 to vector<2x64xf32>
    %64 = arith.maximumf %62, %63 : vector<2x64xf32>
    %c0_45 = arith.constant 0 : index
    %c0_46 = arith.constant 0 : index
    %65 = vector.load %arg17[%c0_45, %c0_46] : memref<64x256xbf16, #tpu.memory_space<vmem>>, vector<64x256xbf16>
    %c0_47 = arith.constant 0 : index
    %c0_48 = arith.constant 0 : index
    %66 = vector.load %arg18[%c0_47, %c0_48] : memref<1x256xf32, #tpu.memory_space<vmem>>, vector<1x256xf32>
    %67 = arith.truncf %64 : vector<2x64xf32> to vector<2x64xbf16>
    %cst_49 = arith.constant dense<0.000000e+00> : vector<2x256xf32>
    %68 = tpu.matmul %67, %65, %cst_49 {dimension_numbers = #tpu.dot_dimension_numbers<[1], [0], [0], [1], [0, 0, 1, 1], [], []>} : vector<2x64xbf16>, vector<64x256xbf16>, vector<2x256xf32> -> vector<2x256xf32>
    %69 = vector.broadcast %66 : vector<1x256xf32> to vector<2x256xf32>
    %70 = arith.addf %68, %69 : vector<2x256xf32>
    %cst_50 = arith.constant 0.000000e+00 : f32
    %71 = vector.broadcast %cst_50 : f32 to vector<2x256xf32>
    %72 = arith.maximumf %70, %71 : vector<2x256xf32>
    %c0_51 = arith.constant 0 : index
    %c0_52 = arith.constant 0 : index
    %73 = vector.load %arg19[%c0_51, %c0_52] : memref<256x512xbf16, #tpu.memory_space<vmem>>, vector<256x512xbf16>
    %c0_53 = arith.constant 0 : index
    %c0_54 = arith.constant 0 : index
    %74 = vector.load %arg20[%c0_53, %c0_54] : memref<1x512xf32, #tpu.memory_space<vmem>>, vector<1x512xf32>
    %75 = arith.truncf %72 : vector<2x256xf32> to vector<2x256xbf16>
    %cst_55 = arith.constant dense<0.000000e+00> : vector<2x512xf32>
    %76 = tpu.matmul %75, %73, %cst_55 {dimension_numbers = #tpu.dot_dimension_numbers<[1], [0], [0], [1], [0, 0, 1, 1], [], []>} : vector<2x256xbf16>, vector<256x512xbf16>, vector<2x512xf32> -> vector<2x512xf32>
    %77 = vector.broadcast %74 : vector<1x512xf32> to vector<2x512xf32>
    %78 = arith.addf %76, %77 : vector<2x512xf32>
    %cst_56 = arith.constant 0.000000e+00 : f32
    %79 = vector.broadcast %cst_56 : f32 to vector<2x512xf32>
    %80 = arith.maximumf %78, %79 : vector<2x512xf32>
    %c0_57 = arith.constant 0 : index
    %c0_58 = arith.constant 0 : index
    %81 = vector.load %arg21[%c0_57, %c0_58] : memref<512x1024xbf16, #tpu.memory_space<vmem>>, vector<512x1024xbf16>
    %c0_59 = arith.constant 0 : index
    %c0_60 = arith.constant 0 : index
    %82 = vector.load %arg22[%c0_59, %c0_60] : memref<1x1024xf32, #tpu.memory_space<vmem>>, vector<1x1024xf32>
    %83 = arith.truncf %80 : vector<2x512xf32> to vector<2x512xbf16>
    %cst_61 = arith.constant dense<0.000000e+00> : vector<2x1024xf32>
    %84 = tpu.matmul %83, %81, %cst_61 {dimension_numbers = #tpu.dot_dimension_numbers<[1], [0], [0], [1], [0, 0, 1, 1], [], []>} : vector<2x512xbf16>, vector<512x1024xbf16>, vector<2x1024xf32> -> vector<2x1024xf32>
    %85 = vector.broadcast %82 : vector<1x1024xf32> to vector<2x1024xf32>
    %86 = arith.addf %84, %85 : vector<2x1024xf32>
    %cst_62 = arith.constant 0.000000e+00 : f32
    %87 = vector.broadcast %cst_62 : f32 to vector<2x1024xf32>
    %88 = arith.subf %87, %86 : vector<2x1024xf32>
    %89 = math.exp %88 : vector<2x1024xf32>
    %cst_63 = arith.constant 1.000000e+00 : f32
    %90 = vector.broadcast %cst_63 : f32 to vector<2x1024xf32>
    %91 = arith.addf %90, %89 : vector<2x1024xf32>
    %cst_64 = arith.constant 1.000000e+00 : f32
    %92 = vector.broadcast %cst_64 : f32 to vector<2x1024xf32>
    %93 = arith.divf %92, %91 : vector<2x1024xf32>
    %c0_65 = arith.constant 0 : index
    %c0_66 = arith.constant 0 : index
    %94 = vector.load %arg23[%c0_65, %c0_66] : memref<2x1024xf32, #tpu.memory_space<vmem>>, vector<2x1024xf32>
    tpu.vector_store %arg23[%c0_65, %c0_66], %93 {strides = array<i32>} : memref<2x1024xf32, #tpu.memory_space<vmem>>, vector<2x1024xf32>,
    %c0_67 = arith.constant 0 : index
    %c0_68 = arith.constant 0 : index
    %95 = vector.load %arg24[%c0_67, %c0_68] : memref<2x16xf32, #tpu.memory_space<vmem>>, vector<2x16xf32>
    tpu.vector_store %arg24[%c0_67, %c0_68], %39 {strides = array<i32>} : memref<2x16xf32, #tpu.memory_space<vmem>>, vector<2x16xf32>,
    %c0_69 = arith.constant 0 : index
    %c0_70 = arith.constant 0 : index
    %96 = vector.load %arg25[%c0_69, %c0_70] : memref<2x16xf32, #tpu.memory_space<vmem>>, vector<2x16xf32>
    tpu.vector_store %arg25[%c0_69, %c0_70], %40 {strides = array<i32>} : memref<2x16xf32, #tpu.memory_space<vmem>>, vector<2x16xf32>,
    return
  }
  func.func @transform_0(%arg0: i32) -> (i32, i32) {
    %c0_i32 = arith.constant 0 : i32
    %c0_i32_0 = arith.constant 0 : i32
    return %arg0, %c0_i32 : i32, i32
  }
  func.func @transform_1(%arg0: i32) -> (i32, i32) {
    %c0_i32 = arith.constant 0 : i32
    %c0_i32_0 = arith.constant 0 : i32
    return %arg0, %c0_i32 : i32, i32
  }
  func.func @transform_2(%arg0: i32) -> (i32, i32) {
    %c0_i32 = arith.constant 0 : i32
    %c0_i32_0 = arith.constant 0 : i32
    %c0_i32_1 = arith.constant 0 : i32
    return %c0_i32, %c0_i32_0 : i32, i32
  }
  func.func @transform_3(%arg0: i32) -> (i32, i32) {
    %c0_i32 = arith.constant 0 : i32
    %c0_i32_0 = arith.constant 0 : i32
    %c0_i32_1 = arith.constant 0 : i32
    return %c0_i32, %c0_i32_0 : i32, i32
  }
  func.func @transform_4(%arg0: i32) -> (i32, i32) {
    %c0_i32 = arith.constant 0 : i32
    %c0_i32_0 = arith.constant 0 : i32
    %c0_i32_1 = arith.constant 0 : i32
    return %c0_i32, %c0_i32_0 : i32, i32
  }
  func.func @transform_5(%arg0: i32) -> (i32, i32) {
    %c0_i32 = arith.constant 0 : i32
    %c0_i32_0 = arith.constant 0 : i32
    %c0_i32_1 = arith.constant 0 : i32
    return %c0_i32, %c0_i32_0 : i32, i32
  }
  func.func @transform_6(%arg0: i32) -> (i32, i32) {
    %c0_i32 = arith.constant 0 : i32
    %c0_i32_0 = arith.constant 0 : i32
    %c0_i32_1 = arith.constant 0 : i32
    return %c0_i32, %c0_i32_0 : i32, i32
  }
  func.func @transform_7(%arg0: i32) -> (i32, i32) {
    %c0_i32 = arith.constant 0 : i32
    %c0_i32_0 = arith.constant 0 : i32
    %c0_i32_1 = arith.constant 0 : i32
    return %c0_i32, %c0_i32_0 : i32, i32
  }
  func.func @transform_8(%arg0: i32) -> (i32, i32) {
    %c0_i32 = arith.constant 0 : i32
    %c0_i32_0 = arith.constant 0 : i32
    %c0_i32_1 = arith.constant 0 : i32
    return %c0_i32, %c0_i32_0 : i32, i32
  }
  func.func @transform_9(%arg0: i32) -> (i32, i32) {
    %c0_i32 = arith.constant 0 : i32
    %c0_i32_0 = arith.constant 0 : i32
    %c0_i32_1 = arith.constant 0 : i32
    return %c0_i32, %c0_i32_0 : i32, i32
  }
  func.func @transform_10(%arg0: i32) -> (i32, i32) {
    %c0_i32 = arith.constant 0 : i32
    %c0_i32_0 = arith.constant 0 : i32
    %c0_i32_1 = arith.constant 0 : i32
    return %c0_i32, %c0_i32_0 : i32, i32
  }
  func.func @transform_11(%arg0: i32) -> (i32, i32) {
    %c0_i32 = arith.constant 0 : i32
    %c0_i32_0 = arith.constant 0 : i32
    %c0_i32_1 = arith.constant 0 : i32
    return %c0_i32, %c0_i32_0 : i32, i32
  }
  func.func @transform_12(%arg0: i32) -> (i32, i32) {
    %c0_i32 = arith.constant 0 : i32
    %c0_i32_0 = arith.constant 0 : i32
    %c0_i32_1 = arith.constant 0 : i32
    return %c0_i32, %c0_i32_0 : i32, i32
  }
  func.func @transform_13(%arg0: i32) -> (i32, i32) {
    %c0_i32 = arith.constant 0 : i32
    %c0_i32_0 = arith.constant 0 : i32
    %c0_i32_1 = arith.constant 0 : i32
    return %c0_i32, %c0_i32_0 : i32, i32
  }
  func.func @transform_14(%arg0: i32) -> (i32, i32) {
    %c0_i32 = arith.constant 0 : i32
    %c0_i32_0 = arith.constant 0 : i32
    %c0_i32_1 = arith.constant 0 : i32
    return %c0_i32, %c0_i32_0 : i32, i32
  }
  func.func @transform_15(%arg0: i32) -> (i32, i32) {
    %c0_i32 = arith.constant 0 : i32
    %c0_i32_0 = arith.constant 0 : i32
    %c0_i32_1 = arith.constant 0 : i32
    return %c0_i32, %c0_i32_0 : i32, i32
  }
  func.func @transform_16(%arg0: i32) -> (i32, i32) {
    %c0_i32 = arith.constant 0 : i32
    %c0_i32_0 = arith.constant 0 : i32
    %c0_i32_1 = arith.constant 0 : i32
    return %c0_i32, %c0_i32_0 : i32, i32
  }
  func.func @transform_17(%arg0: i32) -> (i32, i32) {
    %c0_i32 = arith.constant 0 : i32
    %c0_i32_0 = arith.constant 0 : i32
    %c0_i32_1 = arith.constant 0 : i32
    return %c0_i32, %c0_i32_0 : i32, i32
  }
  func.func @transform_18(%arg0: i32) -> (i32, i32) {
    %c0_i32 = arith.constant 0 : i32
    %c0_i32_0 = arith.constant 0 : i32
    %c0_i32_1 = arith.constant 0 : i32
    return %c0_i32, %c0_i32_0 : i32, i32
  }
  func.func @transform_19(%arg0: i32) -> (i32, i32) {
    %c0_i32 = arith.constant 0 : i32
    %c0_i32_0 = arith.constant 0 : i32
    %c0_i32_1 = arith.constant 0 : i32
    return %c0_i32, %c0_i32_0 : i32, i32
  }
  func.func @transform_20(%arg0: i32) -> (i32, i32) {
    %c0_i32 = arith.constant 0 : i32
    %c0_i32_0 = arith.constant 0 : i32
    %c0_i32_1 = arith.constant 0 : i32
    return %c0_i32, %c0_i32_0 : i32, i32
  }
  func.func @transform_21(%arg0: i32) -> (i32, i32) {
    %c0_i32 = arith.constant 0 : i32
    %c0_i32_0 = arith.constant 0 : i32
    %c0_i32_1 = arith.constant 0 : i32
    return %c0_i32, %c0_i32_0 : i32, i32
  }
  func.func @transform_22(%arg0: i32) -> (i32, i32) {
    %c0_i32 = arith.constant 0 : i32
    %c0_i32_0 = arith.constant 0 : i32
    return %arg0, %c0_i32 : i32, i32
  }
  func.func @transform_23(%arg0: i32) -> (i32, i32) {
    %c0_i32 = arith.constant 0 : i32
    %c0_i32_0 = arith.constant 0 : i32
    return %arg0, %c0_i32 : i32, i32
  }
  func.func @transform_24(%arg0: i32) -> (i32, i32) {
    %c0_i32 = arith.constant 0 : i32
    %c0_i32_0 = arith.constant 0 : i32
    return %arg0, %c0_i32 : i32, i32
  }
}

</mosaic_0001>

<bundles_post_ra>
// kernel: vae_forward.1
= control target key start
LH: loop header
LB: loop body
LE: loop exit
PB: predicated region body
PF: predicated region fallthrough
CT: control target
= control target key end

     0   :  { %s9910_s0 = inlined_call_operand.vmem [shape: f32[2,1024], index: 0, kind: input, shape index: {}]   ;;  %s9911_s1 = inlined_call_operand.vmem [shape: f32[2,16], index: 1, kind: input, shape index: {}]   ;;  %s9912_s2 = inlined_call_operand.hbm [shape: bf16[1024,512], index: 2, kind: input, shape index: {}]   ;;  %s9913_s3 = inlined_call_operand.vmem [shape: f32[1,512], index: 3, kind: input, shape index: {}]   ;;  %s9914_s4 = inlined_call_operand.hbm [shape: bf16[512,256], index: 4, kind: input, shape index: {}]   ;;  %s9915_s5 = inlined_call_operand.vmem [shape: f32[1,256], index: 5, kind: input, shape index: {}]   ;;  %s9916_s6 = inlined_call_operand.vmem [shape: bf16[256,64], index: 6, kind: input, shape index: {}]   ;;  %s9917_s7 = inlined_call_operand.vmem [shape: f32[1,64], index: 7, kind: input, shape index: {}]   ;;  %s9918_s8 = inlined_call_operand.vmem [shape: bf16[64,32], index: 8, kind: input, shape index: {}]   ;;  %s9919_s9 = inlined_call_operand.vmem [shape: f32[1,32], index: 9, kind: input, shape index: {}]   ;;  %s9920_s10 = inlined_call_operand.vmem [shape: bf16[32,32], index: 10, kind: input, shape index: {}]   ;;  %s9921_s11 = inlined_call_operand.vmem [shape: f32[1,32], index: 11, kind: input, shape index: {}]   ;;  %s9922_s12 = inlined_call_operand.vmem [shape: bf16[16,32], index: 12, kind: input, shape index: {}]   ;;  %s9923_s13 = inlined_call_operand.vmem [shape: f32[1,32], index: 13, kind: input, shape index: {}]   ;;  %s9924_s14 = inlined_call_operand.vmem [shape: bf16[32,64], index: 14, kind: input, shape index: {}]   ;;  %s9925_s15 = inlined_call_operand.vmem [shape: f32[1,64], index: 15, kind: input, shape index: {}]   ;;  %s9926_s16 = inlined_call_operand.vmem [shape: bf16[64,256], index: 16, kind: input, shape index: {}]   ;;  %s9927_s17 = inlined_call_operand.vmem [shape: f32[1,256], index: 17, kind: input, shape index: {}]   ;;  %s9928_s18 = inlined_call_operand.hbm [shape: bf16[256,512], index: 18, kind: input, shape index: {}]   ;;  %s9929_s19 = inlined_call_operand.vmem [shape: f32[1,512], index: 19, kind: input, shape index: {}]   ;;  %s9930_s20 = inlined_call_operand.hbm [shape: bf16[512,1024], index: 20, kind: input, shape index: {}]   ;;  %s9931_s21 = inlined_call_operand.vmem [shape: f32[1,1024], index: 21, kind: input, shape index: {}]   ;;  %s9932_s22 = inlined_call_operand.vmem [shape: f32[2,1024], index: 22, kind: output, shape index: {0}]   ;;  %s9933_s23 = inlined_call_operand.hbm [shape: f32[2,16], index: 23, kind: output, shape index: {1}]   ;;  %s9934_s24 = inlined_call_operand.hbm [shape: f32[2,16], index: 24, kind: output, shape index: {2}]  }
   0x1   :  { %9940 = sst [smem:[#allocation18_spill]] %s9910_s0 }
   0x2   :  { %9941 = sst [smem:[#allocation19_spill]] %s9911_s1 }
   0x3   :  { %9942 = sst [smem:[#allocation20_spill]] %s9912_s2 }
   0x4   :  { %9943 = sst [smem:[#allocation21_spill]] %s9913_s3 }
   0x5   :  { %9944 = sst [smem:[#allocation22_spill]] %s9914_s4 }
   0x6   :  { %9945 = sst [smem:[#allocation23_spill]] %s9915_s5 }
   0x7   :  { %9946 = sst [smem:[#allocation24_spill]] %s9916_s6 }
   0x8   :  { %9947 = sst [smem:[#allocation25_spill]] %s9917_s7 }
   0x9   :  { %9948 = sst [smem:[#allocation26_spill]] %s9918_s8 }
   0xa   :  { %9949 = sst [smem:[#allocation27_spill]] %s9932_s22 }
   0xb   :  { %9950 = sst [smem:[#allocation28_spill]] %s9934_s24 }
   0xc   :  { %30 = vsyncpa [#allocation3], 0 }
   0xd   :  { %31 = vsyncpa [#allocation6], 0 }
   0xe   :  { %32 = vsyncpa [#allocation9], 0 }
   0xf   :  { %33 = vsyncpa [#allocation4], 0  ;;  %s9951_s27 = sld [smem:[#allocation22_spill]] }
  0x15   :  { %s58_s28 = sshll.u32 %s9951_s27, 4  ;;  %s59_s28 = int_to_ptr.hbm [resolvable:$true] %s58_s28 }
  0x16   :  { %34 = vsyncpa [#allocation12], 0  ;;  %s9338_s6 = smov [#allocation5]   ;;  %s9952_s7 = sld [smem:[#allocation20_spill]] }
  0x17   :  { %s60_s2 = sshll.u32 %s9338_s6, 4  ;;  %s9339_s3 = smov 128   ;;  %s61_s2 = int_to_ptr.vmem [resolvable:$true] %s60_s2 }
  0x18   :  { %s9340_s25 = smov 8   ;;  %s9341_s8 = smov [#allocation2]  }
  0x19   :  { %66 = dma.hbm_to_vmem [thread:$0]  %s59_s28, 8192, %s61_s2, [#allocation6], %s9339_s3, %s9339_s3, %s9340_s25  }
  0x1a   :  { %s45_s4 = sshll.u32 %s9341_s8, 4  ;;  %s9342_s1 = smov 256   ;;  %s46_s4 = int_to_ptr.vmem [resolvable:$true] %s45_s4 }
  0x1b   :  { %s9343_s22 = smov 16   ;;  %s97_s27 = sshll.u32 %s9928_s18, 4  ;;  %s98_s27 = int_to_ptr.hbm [resolvable:$true] %s97_s27 }
  0x1c   :  { %s43_s30 = sshll.u32 %s9952_s7, 4  ;;  %s9344_s6 = smov [#allocation7]   ;;  %s44_s30 = int_to_ptr.hbm [resolvable:$true] %s43_s30 }
  0x1d   :  { %51 = dma.hbm_to_vmem [thread:$0]  %s44_s30, 32768, %s46_s4, [#allocation3], %s9342_s1, %s9342_s1, %s9343_s22  }
  0x1e   :  { %s99_s24 = sshll.u32 %s9344_s6, 4  ;;  %s112_s7 = sshll.u32 %s9930_s20, 4  ;;  %s100_s24 = int_to_ptr.vmem [resolvable:$true] %s99_s24  ;;  %s113_s7 = int_to_ptr.hbm [resolvable:$true] %s112_s7 }
  0x1f   :  { %105 = dma.hbm_to_vmem [thread:$0]  %s98_s27, 8192, %s100_s24, [#allocation6], %s9342_s1, %s9342_s1, %s9343_s22  }
  0x20   :  { %s9345_s28 = smov [#allocation8]   ;;  %s9346_s3 = smov 512  }
  0x21   :  { %s114_s2 = sshll.u32 %s9345_s28, 4  ;;  %s9347_s25 = smov 32   ;;  %s115_s2 = int_to_ptr.vmem [resolvable:$true] %s114_s2 }
  0x22   :  { %120 = dma.hbm_to_vmem [thread:$0]  %s113_s7, 32768, %s115_s2, [#allocation9], %s9346_s3, %s9346_s3, %s9347_s25  }
  0x23   :  { %9328 = dma.done.wait [#allocation3], 32768  }
  0x24   :  { %9329 = vsyncadd [#allocation3], 4294934528 }
  0x25   :  { %9330 = dma.done.wait [#allocation6], 16384  }
  0x26   :  { %9331 = vsyncadd [#allocation6], 4294950912 }
  0x27   :  { %9332 = dma.done.wait [#allocation9], 32768  }
  0x28   :  { %9333 = vsyncadd [#allocation9], 4294934528  ;;  %v5874_v0 = vld [vmem:[#allocation2 + $0xe0] sm:$0xf]  ;;  %v8488_v1 = vld [vmem:[#allocation2 + $0xec] sm:$0xf0] }
  0x29   :  { %v6002_v2 = vld [vmem:[#allocation2 + $0x1e0] sm:$0xf]  ;;  %v5875_v3 = vor.u32 %v8488_v1, %v5874_v0  ;;  %v8520_v4 = vld [vmem:[#allocation2 + $0x1ec] sm:$0xf0]  ;;  %s9953_s22 = sld [smem:[#allocation18_spill]]  ;;  %vm2835_vm0 = vcmask 523264  }
  0x2a   :  { %v6130_v5 = vld [vmem:[#allocation2 + $0x2e0] sm:$0xf]  ;;  %v8552_v6 = vld [vmem:[#allocation2 + $0x2ec] sm:$0xf0]  ;;  %v6003_v7 = vor.u32 %v8520_v4, %v6002_v2  ;;  %s9954_s1 = sld [smem:[#allocation21_spill]]  ;;  %vm2874_vm1 = vcmask 261120  }
  0x2b   :  { %v6131_v8 = vor.u32 %v8552_v6, %v6130_v5  ;;  %v6258_v9 = vld [vmem:[#allocation2 + $0x3e0] sm:$0xf]  ;;  %v8584_v10 = vld [vmem:[#allocation2 + $0x3ec] sm:$0xf0]  ;;  %1717 = vmatpush.bf16.msra.mxu0 %v5875_v3  ;;  %s9955_s29 = sld [smem:[#allocation23_spill]]  ;;  %vm5714_vm2 = vcmask 123904  }
  0x2c   :  { %v5858_v11 = vld [vmem:[#allocation2 + $0xc0] sm:$0xf]  ;;  %v6259_v12 = vor.u32 %v8584_v10, %v6258_v9  ;;  %v8484_v13 = vld [vmem:[#allocation2 + $0xcc] sm:$0xf0]  ;;  %1730 = vmatpush.bf16.msra.mxu1 %v6003_v7  ;;  %s9956_s28 = sld [smem:[#allocation24_spill]]  ;;  %vm2915_vm3 = vcmask 130048  }
  0x2d   :  { %v5986_v14 = vld [vmem:[#allocation2 + $0x1c0] sm:$0xf]  ;;  %v8516_v15 = vld [vmem:[#allocation2 + $0x1cc] sm:$0xf0]  ;;  %1743 = vmatpush.bf16.msra.mxu2 %v6131_v8  ;;  %v5859_v16 = vor.u32 %v8484_v13, %v5858_v11  ;;  %s9957_s6 = sld [smem:[#allocation26_spill]]  ;;  %s5730_s27 = sshll.u32 %s9933_s23, 4  ;;  %s5731_s27 = int_to_ptr.hbm [resolvable:$true] %s5730_s27 }
  0x2e   :  { %v5987_v17 = vor.u32 %v8516_v15, %v5986_v14  ;;  %v6114_v18 = vld [vmem:[#allocation2 + $0x2c0] sm:$0xf]  ;;  %v8548_v19 = vld [vmem:[#allocation2 + $0x2cc] sm:$0xf0]  ;;  %1756 = vmatpush.bf16.msra.mxu3 %v6259_v12  ;;  %s9958_s20 = sld [smem:[#allocation25_spill]]  ;;  %s9350_s23 = smov [#allocation11]  }
  0x2f   :  { %v6242_v20 = vld [vmem:[#allocation2 + $0x3c0] sm:$0xf]  ;;  %v6115_v21 = vor.u32 %v8548_v19, %v6114_v18  ;;  %v8580_v22 = vld [vmem:[#allocation2 + $0x3cc] sm:$0xf0]  ;;  %1718 = vmatpush.bf16.msra.mxu0 %v5859_v16 }
  0x30   :  { %v5842_v23 = vld [vmem:[#allocation2 + $0xa0] sm:$0xf]  ;;  %v8480_v24 = vld [vmem:[#allocation2 + $0xac] sm:$0xf0]  ;;  %v6243_v25 = vor.u32 %v8580_v22, %v6242_v20  ;;  %1731 = vmatpush.bf16.msra.mxu1 %v5987_v17 }
  0x31   :  { %v5970_v26 = vld [vmem:[#allocation2 + $0x1a0] sm:$0xf]  ;;  %v8512_v27 = vld [vmem:[#allocation2 + $0x1ac] sm:$0xf0]  ;;  %v5843_v29 = vor.u32 %v8480_v24, %v5842_v23  ;;  %1744 = vmatpush.bf16.msra.mxu2 %v6115_v21 }
  0x32   :  { %v6098_v28 = vld [vmem:[#allocation2 + $0x2a0] sm:$0xf]  ;;  %v8544_v30 = vld [vmem:[#allocation2 + $0x2ac] sm:$0xf0]  ;;  %v5971_v33 = vor.u32 %v8512_v27, %v5970_v26  ;;  %1757 = vmatpush.bf16.msra.mxu3 %v6243_v25 }
  0x33   :  { %v6226_v31 = vld [vmem:[#allocation2 + $0x3a0] sm:$0xf]  ;;  %v8576_v32 = vld [vmem:[#allocation2 + $0x3ac] sm:$0xf0]  ;;  %v6099_v34 = vor.u32 %v8544_v30, %v6098_v28  ;;  %1719 = vmatpush.bf16.msra.mxu0 %v5843_v29 }
  0x34   :  { %v5826_v35 = vld [vmem:[#allocation2 + $0x80] sm:$0xf]  ;;  %v8476_v36 = vld [vmem:[#allocation2 + $0x8c] sm:$0xf0]  ;;  %v6227_v38 = vor.u32 %v8576_v32, %v6226_v31  ;;  %1732 = vmatpush.bf16.msra.mxu1 %v5971_v33 }
  0x35   :  { %v5954_v37 = vld [vmem:[#allocation2 + $0x180] sm:$0xf]  ;;  %v8508_v39 = vld [vmem:[#allocation2 + $0x18c] sm:$0xf0]  ;;  %v5827_v44 = vor.u32 %v8476_v36, %v5826_v35  ;;  %1745 = vmatpush.bf16.msra.mxu2 %v6099_v34 }
  0x36   :  { %v6082_v40 = vld [vmem:[#allocation2 + $0x280] sm:$0xf]  ;;  %v8540_v41 = vld [vmem:[#allocation2 + $0x28c] sm:$0xf0]  ;;  %v5955_v45 = vor.u32 %v8508_v39, %v5954_v37  ;;  %1758 = vmatpush.bf16.msra.mxu3 %v6227_v38 }
  0x37   :  { %v6210_v42 = vld [vmem:[#allocation2 + $0x380] sm:$0xf]  ;;  %v8572_v43 = vld [vmem:[#allocation2 + $0x38c] sm:$0xf0]  ;;  %v6083_v46 = vor.u32 %v8540_v41, %v6082_v40  ;;  %1720 = vmatpush.bf16.msra.mxu0 %v5827_v44 }
  0x38   :  { %v5810_v47 = vld [vmem:[#allocation2 + $0x60] sm:$0xf]  ;;  %v8472_v48 = vld [vmem:[#allocation2 + $0x6c] sm:$0xf0]  ;;  %v6211_v50 = vor.u32 %v8572_v43, %v6210_v42  ;;  %1733 = vmatpush.bf16.msra.mxu1 %v5955_v45 }
  0x39   :  { %v5938_v49 = vld [vmem:[#allocation2 + $0x160] sm:$0xf]  ;;  %v8504_v51 = vld [vmem:[#allocation2 + $0x16c] sm:$0xf0]  ;;  %v5811_v56 = vor.u32 %v8472_v48, %v5810_v47  ;;  %1746 = vmatpush.bf16.msra.mxu2 %v6083_v46 }
  0x3a   :  { %v6066_v52 = vld [vmem:[#allocation2 + $0x260] sm:$0xf]  ;;  %v8536_v53 = vld [vmem:[#allocation2 + $0x26c] sm:$0xf0]  ;;  %v5939_v57 = vor.u32 %v8504_v51, %v5938_v49  ;;  %1759 = vmatpush.bf16.msra.mxu3 %v6211_v50 }
  0x3b   :  { %v6194_v54 = vld [vmem:[#allocation2 + $0x360] sm:$0xf]  ;;  %v8568_v55 = vld [vmem:[#allocation2 + $0x36c] sm:$0xf0]  ;;  %v6067_v58 = vor.u32 %v8536_v53, %v6066_v52  ;;  %1721 = vmatpush.bf16.msra.mxu0 %v5811_v56 }
  0x3c   :  { %v5794_v59 = vld [vmem:[#allocation2 + $0x40] sm:$0xf]  ;;  %v8468_v60 = vld [vmem:[#allocation2 + $0x4c] sm:$0xf0]  ;;  %v6195_v62 = vor.u32 %v8568_v55, %v6194_v54  ;;  %1734 = vmatpush.bf16.msra.mxu1 %v5939_v57 }
  0x3d   :  { %v5922_v61 = vld [vmem:[#allocation2 + $0x140] sm:$0xf]  ;;  %v8500_v63 = vld [vmem:[#allocation2 + $0x14c] sm:$0xf0]  ;;  %v5795_v4 = vor.u32 %v8468_v60, %v5794_v59  ;;  %1747 = vmatpush.bf16.msra.mxu2 %v6067_v58 }
  0x3e   :  { %v6050_v0 = vld [vmem:[#allocation2 + $0x240] sm:$0xf]  ;;  %v8532_v1 = vld [vmem:[#allocation2 + $0x24c] sm:$0xf0]  ;;  %v5923_v5 = vor.u32 %v8500_v63, %v5922_v61  ;;  %1760 = vmatpush.bf16.msra.mxu3 %v6195_v62 }
  0x3f   :  { %v6178_v2 = vld [vmem:[#allocation2 + $0x340] sm:$0xf]  ;;  %v8564_v3 = vld [vmem:[#allocation2 + $0x34c] sm:$0xf0]  ;;  %v6051_v6 = vor.u32 %v8532_v1, %v6050_v0  ;;  %1722 = vmatpush.bf16.msra.mxu0 %v5795_v4 }
  0x40   :  { %v5778_v7 = vld [vmem:[#allocation2 + $0x20] sm:$0xf]  ;;  %v8464_v8 = vld [vmem:[#allocation2 + $0x2c] sm:$0xf0]  ;;  %v6179_v10 = vor.u32 %v8564_v3, %v6178_v2  ;;  %1735 = vmatpush.bf16.msra.mxu1 %v5923_v5  ;;  %v140_v2 = vld [vmem:[%s9953_s22] sm:$0xff] }
  0x41   :  { %v5906_v9 = vld [vmem:[#allocation2 + $0x120] sm:$0xf]  ;;  %v8496_v11 = vld [vmem:[#allocation2 + $0x12c] sm:$0xf0]  ;;  %v5779_v16 = vor.u32 %v8464_v8, %v5778_v7  ;;  %1748 = vmatpush.bf16.msra.mxu2 %v6051_v6  ;;  %401 = vst [vmem:[#allocation1] ss:$4 sm:$0xff] %v140_v2 }
  0x42   :  { %v6034_v12 = vld [vmem:[#allocation2 + $0x220] sm:$0xf]  ;;  %v8528_v13 = vld [vmem:[#allocation2 + $0x22c] sm:$0xf0]  ;;  %v5907_v19 = vor.u32 %v8496_v11, %v5906_v9  ;;  %1761 = vmatpush.bf16.msra.mxu3 %v6179_v10 }
  0x43   :  { %v6162_v14 = vld [vmem:[#allocation2 + $0x320] sm:$0xf]  ;;  %v8560_v15 = vld [vmem:[#allocation2 + $0x32c] sm:$0xf0]  ;;  %v6035_v20 = vor.u32 %v8528_v13, %v6034_v12  ;;  %1723 = vmatpush.bf16.msra.mxu0 %v5779_v16 }
  0x44   :  { %v5762_v17 = vld [vmem:[#allocation2] sm:$0xf]  ;;  %v8460_v18 = vld [vmem:[#allocation2 + $0xc] sm:$0xf0]  ;;  %v6163_v24 = vor.u32 %v8560_v15, %v6162_v14  ;;  %1736 = vmatpush.bf16.msra.mxu1 %v5907_v19 }
  0x45   :  { %v5890_v21 = vld [vmem:[#allocation2 + $0x100] sm:$0xf]  ;;  %v8492_v22 = vld [vmem:[#allocation2 + $0x10c] sm:$0xf0]  ;;  %v5763_v31 = vor.u32 %v8460_v18, %v5762_v17  ;;  %1749 = vmatpush.bf16.msra.mxu2 %v6035_v20 }
  0x46   :  { %v6018_v23 = vld [vmem:[#allocation2 + $0x200] sm:$0xf]  ;;  %v8524_v25 = vld [vmem:[#allocation2 + $0x20c] sm:$0xf0]  ;;  %v5891_v35 = vor.u32 %v8492_v22, %v5890_v21  ;;  %1762 = vmatpush.bf16.msra.mxu3 %v6163_v24 }
  0x47   :  { %v6146_v26 = vld [vmem:[#allocation2 + $0x300] sm:$0xf]  ;;  %v8556_v27 = vld [vmem:[#allocation2 + $0x30c] sm:$0xf0]  ;;  %v6019_v36 = vor.u32 %v8524_v25, %v6018_v23  ;;  %1724 = vmatpush.bf16.msra.mxu0 %v5763_v31 }
  0x48   :  { %v6386_v28 = vld [vmem:[#allocation2 + $0x4e0] sm:$0xf]  ;;  %v8616_v29 = vld [vmem:[#allocation2 + $0x4ec] sm:$0xf0]  ;;  %v6147_v39 = vor.u32 %v8556_v27, %v6146_v26  ;;  %1737 = vmatpush.bf16.msra.mxu1 %v5891_v35 }
  0x49   :  { %v6514_v30 = vld [vmem:[#allocation2 + $0x5e0] sm:$0xf]  ;;  %v8648_v32 = vld [vmem:[#allocation2 + $0x5ec] sm:$0xf0]  ;;  %v6387_v40 = vor.u32 %v8616_v29, %v6386_v28  ;;  %1750 = vmatpush.bf16.msra.mxu2 %v6019_v36 }
  0x4a   :  { %v6642_v33 = vld [vmem:[#allocation2 + $0x6e0] sm:$0xf]  ;;  %v8680_v34 = vld [vmem:[#allocation2 + $0x6ec] sm:$0xf0]  ;;  %v6515_v41 = vor.u32 %v8648_v32, %v6514_v30  ;;  %1763 = vmatpush.bf16.msra.mxu3 %v6147_v39 }
  0x4b   :  { %v6770_v37 = vld [vmem:[#allocation2 + $0x7e0] sm:$0xf]  ;;  %v8712_v38 = vld [vmem:[#allocation2 + $0x7ec] sm:$0xf0]  ;;  %v6643_v42 = vor.u32 %v8680_v34, %v6642_v33  ;;  %1769 = vmatpush.bf16.msrb.mxu0 %v6387_v40 }
  0x4c   :  { %v6370_v43 = vld [vmem:[#allocation2 + $0x4c0] sm:$0xf]  ;;  %v8612_v44 = vld [vmem:[#allocation2 + $0x4cc] sm:$0xf0]  ;;  %v6771_v46 = vor.u32 %v8712_v38, %v6770_v37  ;;  %1782 = vmatpush.bf16.msrb.mxu1 %v6515_v41 }
  0x4d   :  { %v6498_v45 = vld [vmem:[#allocation2 + $0x5c0] sm:$0xf]  ;;  %v8644_v47 = vld [vmem:[#allocation2 + $0x5cc] sm:$0xf0]  ;;  %v6371_v52 = vor.u32 %v8612_v44, %v6370_v43  ;;  %1795 = vmatpush.bf16.msrb.mxu2 %v6643_v42 }
  0x4e   :  { %v6626_v48 = vld [vmem:[#allocation2 + $0x6c0] sm:$0xf]  ;;  %v8676_v49 = vld [vmem:[#allocation2 + $0x6cc] sm:$0xf0]  ;;  %v6499_v53 = vor.u32 %v8644_v47, %v6498_v45  ;;  %1808 = vmatpush.bf16.msrb.mxu3 %v6771_v46 }
  0x4f   :  { %v6754_v50 = vld [vmem:[#allocation2 + $0x7c0] sm:$0xf]  ;;  %v8708_v51 = vld [vmem:[#allocation2 + $0x7cc] sm:$0xf0]  ;;  %v6627_v54 = vor.u32 %v8676_v49, %v6626_v48  ;;  %1770 = vmatpush.bf16.msrb.mxu0 %v6371_v52 }
  0x50   :  { %v6354_v55 = vld [vmem:[#allocation2 + $0x4a0] sm:$0xf]  ;;  %v8608_v56 = vld [vmem:[#allocation2 + $0x4ac] sm:$0xf0]  ;;  %v6755_v58 = vor.u32 %v8708_v51, %v6754_v50  ;;  %1783 = vmatpush.bf16.msrb.mxu1 %v6499_v53 }
  0x51   :  { %v6482_v57 = vld [vmem:[#allocation2 + $0x5a0] sm:$0xf]  ;;  %v8640_v59 = vld [vmem:[#allocation2 + $0x5ac] sm:$0xf0]  ;;  %v6355_v0 = vor.u32 %v8608_v56, %v6354_v55  ;;  %1796 = vmatpush.bf16.msrb.mxu2 %v6627_v54 }
  0x52   :  { %v6610_v60 = vld [vmem:[#allocation2 + $0x6a0] sm:$0xf]  ;;  %v8672_v61 = vld [vmem:[#allocation2 + $0x6ac] sm:$0xf0]  ;;  %v6483_v3 = vor.u32 %v8640_v59, %v6482_v57  ;;  %1809 = vmatpush.bf16.msrb.mxu3 %v6755_v58 }
  0x53   :  { %v6738_v62 = vld [vmem:[#allocation2 + $0x7a0] sm:$0xf]  ;;  %v8704_v63 = vld [vmem:[#allocation2 + $0x7ac] sm:$0xf0]  ;;  %v6611_v4 = vor.u32 %v8672_v61, %v6610_v60  ;;  %1771 = vmatpush.bf16.msrb.mxu0 %v6355_v0 }
  0x54   :  { %v6338_v1 = vld [vmem:[#allocation2 + $0x480] sm:$0xf]  ;;  %v8604_v5 = vld [vmem:[#allocation2 + $0x48c] sm:$0xf0]  ;;  %v6739_v7 = vor.u32 %v8704_v63, %v6738_v62  ;;  %1784 = vmatpush.bf16.msrb.mxu1 %v6483_v3 }
  0x55   :  { %v6466_v6 = vld [vmem:[#allocation2 + $0x580] sm:$0xf]  ;;  %v8636_v8 = vld [vmem:[#allocation2 + $0x58c] sm:$0xf0]  ;;  %v6339_v13 = vor.u32 %v8604_v5, %v6338_v1  ;;  %1797 = vmatpush.bf16.msrb.mxu2 %v6611_v4 }
  0x56   :  { %v6594_v9 = vld [vmem:[#allocation2 + $0x680] sm:$0xf]  ;;  %v8668_v10 = vld [vmem:[#allocation2 + $0x68c] sm:$0xf0]  ;;  %v6467_v15 = vor.u32 %v8636_v8, %v6466_v6  ;;  %1810 = vmatpush.bf16.msrb.mxu3 %v6739_v7  ;;  %v8486_v6 = vld [vmem:[#allocation2 + $0xe4] sm:$0xf] }
  0x57   :  { %v6722_v11 = vld [vmem:[#allocation2 + $0x780] sm:$0xf]  ;;  %v8700_v12 = vld [vmem:[#allocation2 + $0x78c] sm:$0xf0]  ;;  %v6595_v16 = vor.u32 %v8668_v10, %v6594_v9  ;;  %1772 = vmatpush.bf16.msrb.mxu0 %v6339_v13  ;;  %v5876_v7 = vld [vmem:[#allocation2 + $0xf0] sm:$0xf0] }
  0x58   :  { %v6322_v14 = vld [vmem:[#allocation2 + $0x460] sm:$0xf]  ;;  %v8600_v17 = vld [vmem:[#allocation2 + $0x46c] sm:$0xf0]  ;;  %v6723_v20 = vor.u32 %v8700_v12, %v6722_v11  ;;  %1785 = vmatpush.bf16.msrb.mxu1 %v6467_v15  ;;  %v8518_v8 = vld [vmem:[#allocation2 + $0x1e4] sm:$0xf] }
  0x59   :  { %v6450_v18 = vld [vmem:[#allocation2 + $0x560] sm:$0xf]  ;;  %v8632_v19 = vld [vmem:[#allocation2 + $0x56c] sm:$0xf0]  ;;  %v6323_v27 = vor.u32 %v8600_v17, %v6322_v14  ;;  %1798 = vmatpush.bf16.msrb.mxu2 %v6595_v16  ;;  %v6004_v9 = vld [vmem:[#allocation2 + $0x1f0] sm:$0xf0] }
  0x5a   :  { %v6578_v21 = vld [vmem:[#allocation2 + $0x660] sm:$0xf]  ;;  %v8664_v22 = vld [vmem:[#allocation2 + $0x66c] sm:$0xf0]  ;;  %v6451_v28 = vor.u32 %v8632_v19, %v6450_v18  ;;  %1811 = vmatpush.bf16.msrb.mxu3 %v6723_v20  ;;  %v8550_v10 = vld [vmem:[#allocation2 + $0x2e4] sm:$0xf] }
  0x5b   :  { %v6706_v23 = vld [vmem:[#allocation2 + $0x760] sm:$0xf]  ;;  %v8696_v24 = vld [vmem:[#allocation2 + $0x76c] sm:$0xf0]  ;;  %v6579_v32 = vor.u32 %v8664_v22, %v6578_v21  ;;  %1773 = vmatpush.bf16.msrb.mxu0 %v6323_v27  ;;  %v6132_v12 = vld [vmem:[#allocation2 + $0x2f0] sm:$0xf0]  ;;  %v5879_v21 = vor.u32 %v8486_v6, %v5876_v7 }
  0x5c   :  { %v6306_v25 = vld [vmem:[#allocation2 + $0x440] sm:$0xf]  ;;  %v8596_v26 = vld [vmem:[#allocation2 + $0x44c] sm:$0xf0]  ;;  %v6707_v37 = vor.u32 %v8696_v24, %v6706_v23  ;;  %1786 = vmatpush.bf16.msrb.mxu1 %v6451_v28  ;;  %v8582_v13 = vld [vmem:[#allocation2 + $0x3e4] sm:$0xf]  ;;  %v6007_v24 = vor.u32 %v8518_v8, %v6004_v9 }
  0x5d   :  { %v6434_v29 = vld [vmem:[#allocation2 + $0x540] sm:$0xf]  ;;  %v406_v30 = vld.sshfl [vmem:[#allocation1 + $0x10] sm:$0xff pattern:$0x73625140]  ;;  %v6307_v45 = vor.u32 %v8596_v26, %v6306_v25  ;;  %1799 = vmatpush.bf16.msrb.mxu2 %v6579_v32  ;;  %v6135_v25 = vor.u32 %v8550_v10, %v6132_v12 }
  0x5e   :  { %v404_v31 = vld.sshfl [vmem:[#allocation1] sm:$0xff pattern:$0x73625140]  ;;  %v9491_v33 = vpack.c.bf16 %v406_v30, %v406_v30  ;;  %v407_v35 = vld.sshfl [vmem:[#allocation1 + $0x18] sm:$0xff pattern:$0x73625140]  ;;  %1812 = vmatpush.bf16.msrb.mxu3 %v6707_v37 }
  0x5f   :  { %v9493_v34 = vpack.c.bf16 %v404_v31, %v404_v31  ;;  %v405_v36 = vld.sshfl [vmem:[#allocation1 + $0x8] sm:$0xff pattern:$0x73625140]  ;;  %v8628_v38 = vld [vmem:[#allocation2 + $0x54c] sm:$0xf0]  ;;  %v9495_v41 = vpack.c.bf16 %v407_v35, %v407_v35  ;;  %1774 = vmatpush.bf16.msrb.mxu0 %v6307_v45 }
  0x60   :  { %v6562_v39 = vld [vmem:[#allocation2 + $0x640] sm:$0xf]  ;;  %v8660_v40 = vld [vmem:[#allocation2 + $0x64c] sm:$0xf0]  ;;  %v9497_v42 = vpack.c.bf16 %v405_v36, %v405_v36  ;;  %1751 = vmatmul.bf16.vlgmr.msra.gmra.mxu2 %v9491_v33  ;;  %v6435_v48 = vor.u32 %v8628_v38, %v6434_v29  ;;  %v6260_v14 = vld [vmem:[#allocation2 + $0x3f0] sm:$0xf0] }
  0x61   :  { %v6690_v43 = vld [vmem:[#allocation2 + $0x740] sm:$0xf]  ;;  %v8692_v44 = vld [vmem:[#allocation2 + $0x74c] sm:$0xf0]  ;;  %1725 = vmatmul.bf16.vlgmr.msra.gmra.mxu0 %v9493_v34  ;;  %1764 = vmatmul.bf16.vlgmr.msra.gmra.mxu3 %v9495_v41  ;;  %v6563_v49 = vor.u32 %v8660_v40, %v6562_v39  ;;  %v8482_v17 = vld [vmem:[#allocation2 + $0xc4] sm:$0xf]  ;;  %v6263_v28 = vor.u32 %v8582_v13, %v6260_v14 }
  0x62   :  { %v6290_v46 = vld [vmem:[#allocation2 + $0x420] sm:$0xf]  ;;  %v8592_v47 = vld [vmem:[#allocation2 + $0x42c] sm:$0xf0]  ;;  %v6691_v53 = vor.u32 %v8692_v44, %v6690_v43  ;;  %1738 = vmatmul.bf16.vlgmr.msra.gmra.mxu1 %v9497_v42  ;;  %v5860_v18 = vld [vmem:[#allocation2 + $0xd0] sm:$0xf0] }
  0x63   :  { %v6418_v50 = vld [vmem:[#allocation2 + $0x520] sm:$0xf]  ;;  %v8624_v51 = vld [vmem:[#allocation2 + $0x52c] sm:$0xf0]  ;;  %v6291_v59 = vor.u32 %v8592_v47, %v6290_v46  ;;  %1787 = vmatpush.bf16.msrb.mxu1 %v6435_v48  ;;  %1800 = vmatpush.bf16.msrb.mxu2 %v6563_v49  ;;  %v8514_v26 = vld [vmem:[#allocation2 + $0x1c4] sm:$0xf]  ;;  %v5863_v39 = vor.u32 %v8482_v17, %v5860_v18 }
  0x64   :  { %v141_v52 = vld [vmem:[%s9953_s22 + $0x8] sm:$0xff]  ;;  %v8656_v55 = vld [vmem:[#allocation2 + $0x62c] sm:$0xf0]  ;;  %v6419_v63 = vor.u32 %v8624_v51, %v6418_v50  ;;  %1813 = vmatpush.bf16.msrb.mxu3 %v6691_v53  ;;  %v5988_v29 = vld [vmem:[#allocation2 + $0x1d0] sm:$0xf0] }
  0x65   :  { %v6546_v54 = vld [vmem:[#allocation2 + $0x620] sm:$0xf]  ;;  %403 = vst [vmem:[#allocation1 + $0x20] ss:$4 sm:$0xff] %v141_v52  ;;  %v8688_v57 = vld [vmem:[#allocation2 + $0x72c] sm:$0xf0]  ;;  %1775 = vmatpush.bf16.msrb.mxu0 %v6291_v59  ;;  %v5991_v43 = vor.u32 %v8514_v26, %v5988_v29 }
  0x66   :  { %v6674_v56 = vld [vmem:[#allocation2 + $0x720] sm:$0xf]  ;;  %v8588_v60 = vld [vmem:[#allocation2 + $0x40c] sm:$0xf0]  ;;  %v6547_v0 = vor.u32 %v8656_v55, %v6546_v54  ;;  %v8546_v30 = vld [vmem:[#allocation2 + $0x2c4] sm:$0xf] }
  0x67   :  { %v6274_v58 = vld [vmem:[#allocation2 + $0x400] sm:$0xf]  ;;  %v8620_v62 = vld [vmem:[#allocation2 + $0x50c] sm:$0xf0]  ;;  %v6675_v4 = vor.u32 %v8688_v57, %v6674_v56  ;;  %1788 = vmatpush.bf16.msrb.mxu1 %v6419_v63  ;;  %v6116_v31 = vld [vmem:[#allocation2 + $0x2d0] sm:$0xf0] }
  0x68   :  { %v6402_v61 = vld [vmem:[#allocation2 + $0x500] sm:$0xf]  ;;  %v8652_v2 = vld [vmem:[#allocation2 + $0x60c] sm:$0xf0]  ;;  %v6275_v11 = vor.u32 %v8588_v60, %v6274_v58  ;;  %1801 = vmatpush.bf16.msrb.mxu2 %v6547_v0  ;;  %v8578_v35 = vld [vmem:[#allocation2 + $0x3c4] sm:$0xf]  ;;  %v6119_v44 = vor.u32 %v8546_v30, %v6116_v31 }
  0x69   :  { %v6530_v1 = vld [vmem:[#allocation2 + $0x600] sm:$0xf]  ;;  %v8684_v5 = vld [vmem:[#allocation2 + $0x70c] sm:$0xf0]  ;;  %v6403_v15 = vor.u32 %v8620_v62, %v6402_v61  ;;  %1814 = vmatpush.bf16.msrb.mxu3 %v6675_v4  ;;  %v6244_v36 = vld [vmem:[#allocation2 + $0x3d0] sm:$0xf0] }
  0x6a   :  { %v6658_v3 = vld [vmem:[#allocation2 + $0x700] sm:$0xf]  ;;  %v6531_v16 = vor.u32 %v8652_v2, %v6530_v1  ;;  %1776 = vmatpush.bf16.msrb.mxu0 %v6275_v11  ;;  %v8478_v45 = vld [vmem:[#allocation2 + $0xa4] sm:$0xf]  ;;  %v5844_v46 = vld [vmem:[#allocation2 + $0xb0] sm:$0xf0]  ;;  %v6247_v48 = vor.u32 %v8578_v35, %v6244_v36 }
  0x6b   :  { %v6659_v20 = vor.u32 %v8684_v5, %v6658_v3  ;;  %1789 = vmatpush.bf16.msrb.mxu1 %v6403_v15  ;;  %v8510_v47 = vld [vmem:[#allocation2 + $0x1a4] sm:$0xf]  ;;  %v5972_v49 = vld [vmem:[#allocation2 + $0x1b0] sm:$0xf0]  ;;  %v5847_v54 = vor.u32 %v8478_v45, %v5844_v46 }
  0x6c   :  { %v410_v19 = vld.sshfl [vmem:[#allocation1 + $0x30] sm:$0xff pattern:$0x73625140]  ;;  %v408_v22 = vld.sshfl [vmem:[#allocation1 + $0x20] sm:$0xff pattern:$0x73625140]  ;;  %1802 = vmatpush.bf16.msrb.mxu2 %v6531_v16  ;;  %v5975_v55 = vor.u32 %v8510_v47, %v5972_v49 }
  0x6d   :  { %v411_v23 = vld.sshfl [vmem:[#allocation1 + $0x38] sm:$0xff pattern:$0x73625140]  ;;  %v409_v27 = vld.sshfl [vmem:[#allocation1 + $0x28] sm:$0xff pattern:$0x73625140]  ;;  %v9506_v32 = vpack.c.bf16 %v410_v19, %v410_v19  ;;  %v9508_v37 = vpack.c.bf16 %v408_v22, %v408_v22  ;;  %1815 = vmatpush.bf16.msrb.mxu3 %v6659_v20 }
  0x6e   :  { %v9510_v38 = vpack.c.bf16 %v411_v23, %v411_v23  ;;  %1821 = vmatpush.bf16.msra.mxu0 %v5879_v21  ;;  %v9512_v40 = vpack.c.bf16 %v409_v27, %v409_v27  ;;  %v8542_v50 = vld [vmem:[#allocation2 + $0x2a4] sm:$0xf]  ;;  %v6100_v51 = vld [vmem:[#allocation2 + $0x2b0] sm:$0xf0] }
  0x6f   :  { %1834 = vmatpush.bf16.msra.mxu1 %v6007_v24  ;;  %v8574_v52 = vld [vmem:[#allocation2 + $0x3a4] sm:$0xf]  ;;  %v6228_v53 = vld [vmem:[#allocation2 + $0x3b0] sm:$0xf0]  ;;  %v6103_v56 = vor.u32 %v8542_v50, %v6100_v51 }
  0x70   :  { %1847 = vmatpush.bf16.msra.mxu2 %v6135_v25  ;;  %v8474_v57 = vld [vmem:[#allocation2 + $0x84] sm:$0xf]  ;;  %v5828_v58 = vld [vmem:[#allocation2 + $0x90] sm:$0xf0]  ;;  %v6231_v60 = vor.u32 %v8574_v52, %v6228_v53 }
  0x71   :  { %1860 = vmatpush.bf16.msra.mxu3 %v6263_v28  ;;  %1803 = vmatmul.bf16.vlgmr.msrb.gmra.mxu2 %v9506_v32  ;;  %v8506_v59 = vld [vmem:[#allocation2 + $0x184] sm:$0xf]  ;;  %v5956_v61 = vld [vmem:[#allocation2 + $0x190] sm:$0xf0]  ;;  %v5831_v2 = vor.u32 %v8474_v57, %v5828_v58 }
  0x72   :  { %1777 = vmatmul.bf16.vlgmr.msrb.gmra.mxu0 %v9508_v37  ;;  %1816 = vmatmul.bf16.vlgmr.msrb.gmra.mxu3 %v9510_v38  ;;  %v8538_v62 = vld [vmem:[#allocation2 + $0x284] sm:$0xf]  ;;  %v6084_v63 = vld [vmem:[#allocation2 + $0x290] sm:$0xf0]  ;;  %v5959_v3 = vor.u32 %v8506_v59, %v5956_v61 }
  0x73   :  { %1822 = vmatpush.bf16.msra.mxu0 %v5863_v39  ;;  %1790 = vmatmul.bf16.vlgmr.msrb.gmra.mxu1 %v9512_v40  ;;  %v8570_v0 = vld [vmem:[#allocation2 + $0x384] sm:$0xf]  ;;  %v6212_v1 = vld [vmem:[#allocation2 + $0x390] sm:$0xf0]  ;;  %v6087_v4 = vor.u32 %v8538_v62, %v6084_v63 }
  0x74   :  { %1835 = vmatpush.bf16.msra.mxu1 %v5991_v43  ;;  %1848 = vmatpush.bf16.msra.mxu2 %v6119_v44  ;;  %v8470_v5 = vld [vmem:[#allocation2 + $0x64] sm:$0xf]  ;;  %v5812_v6 = vld [vmem:[#allocation2 + $0x70] sm:$0xf0]  ;;  %v6215_v8 = vor.u32 %v8570_v0, %v6212_v1 }
  0x75   :  { %1861 = vmatpush.bf16.msra.mxu3 %v6247_v48  ;;  %v8502_v7 = vld [vmem:[#allocation2 + $0x164] sm:$0xf]  ;;  %v5940_v9 = vld [vmem:[#allocation2 + $0x170] sm:$0xf0]  ;;  %v5815_v14 = vor.u32 %v8470_v5, %v5812_v6 }
  0x76   :  { %v8534_v10 = vld [vmem:[#allocation2 + $0x264] sm:$0xf]  ;;  %v6068_v11 = vld [vmem:[#allocation2 + $0x270] sm:$0xf0]  ;;  %v5943_v15 = vor.u32 %v8502_v7, %v5940_v9 }
  0x77   :  { %1823 = vmatpush.bf16.msra.mxu0 %v5847_v54  ;;  %v8566_v12 = vld [vmem:[#allocation2 + $0x364] sm:$0xf]  ;;  %v6196_v13 = vld [vmem:[#allocation2 + $0x370] sm:$0xf0]  ;;  %v6071_v16 = vor.u32 %v8534_v10, %v6068_v11 }
  0x78   :  { %1836 = vmatpush.bf16.msra.mxu1 %v5975_v55  ;;  %1849 = vmatpush.bf16.msra.mxu2 %v6103_v56  ;;  %v8466_v17 = vld [vmem:[#allocation2 + $0x44] sm:$0xf]  ;;  %v5796_v18 = vld [vmem:[#allocation2 + $0x50] sm:$0xf0]  ;;  %v6199_v20 = vor.u32 %v8566_v12, %v6196_v13 }
  0x79   :  { %1862 = vmatpush.bf16.msra.mxu3 %v6231_v60  ;;  %v8498_v19 = vld [vmem:[#allocation2 + $0x144] sm:$0xf]  ;;  %v5924_v21 = vld [vmem:[#allocation2 + $0x150] sm:$0xf0]  ;;  %v5799_v26 = vor.u32 %v8466_v17, %v5796_v18 }
  0x7a   :  { %v8530_v22 = vld [vmem:[#allocation2 + $0x244] sm:$0xf]  ;;  %v6052_v23 = vld [vmem:[#allocation2 + $0x250] sm:$0xf0]  ;;  %v5927_v27 = vor.u32 %v8498_v19, %v5924_v21 }
  0x7b   :  { %1824 = vmatpush.bf16.msra.mxu0 %v5831_v2  ;;  %v8562_v24 = vld [vmem:[#allocation2 + $0x344] sm:$0xf]  ;;  %v6180_v25 = vld [vmem:[#allocation2 + $0x350] sm:$0xf0]  ;;  %v6055_v28 = vor.u32 %v8530_v22, %v6052_v23 }
  0x7c   :  { %1837 = vmatpush.bf16.msra.mxu1 %v5959_v3  ;;  %1850 = vmatpush.bf16.msra.mxu2 %v6087_v4  ;;  %v8462_v29 = vld [vmem:[#allocation2 + $0x24] sm:$0xf]  ;;  %v5780_v30 = vld [vmem:[#allocation2 + $0x30] sm:$0xf0]  ;;  %v6183_v35 = vor.u32 %v8562_v24, %v6180_v25 }
  0x7d   :  { %1863 = vmatpush.bf16.msra.mxu3 %v6215_v8  ;;  %v8494_v31 = vld [vmem:[#allocation2 + $0x124] sm:$0xf]  ;;  %v5908_v36 = vld [vmem:[#allocation2 + $0x130] sm:$0xf0]  ;;  %v5783_v46 = vor.u32 %v8462_v29, %v5780_v30 }
  0x7e   :  { %v8526_v39 = vld [vmem:[#allocation2 + $0x224] sm:$0xf]  ;;  %v6036_v43 = vld [vmem:[#allocation2 + $0x230] sm:$0xf0]  ;;  %v5911_v49 = vor.u32 %v8494_v31, %v5908_v36 }
  0x7f   :  { %1825 = vmatpush.bf16.msra.mxu0 %v5815_v14  ;;  %v8558_v44 = vld [vmem:[#allocation2 + $0x324] sm:$0xf]  ;;  %v6164_v45 = vld [vmem:[#allocation2 + $0x330] sm:$0xf0]  ;;  %v6039_v50 = vor.u32 %v8526_v39, %v6036_v43 }
  0x80   :  { %1838 = vmatpush.bf16.msra.mxu1 %v5943_v15  ;;  %1851 = vmatpush.bf16.msra.mxu2 %v6071_v16  ;;  %v8458_v47 = vld [vmem:[#allocation2 + $0x4] sm:$0xf]  ;;  %v5764_v48 = vld [vmem:[#allocation2 + $0x10] sm:$0xf0]  ;;  %v6167_v54 = vor.u32 %v8558_v44, %v6164_v45 }
  0x81   :  { %1864 = vmatpush.bf16.msra.mxu3 %v6199_v20  ;;  %v8490_v51 = vld [vmem:[#allocation2 + $0x104] sm:$0xf]  ;;  %v5892_v52 = vld [vmem:[#allocation2 + $0x110] sm:$0xf0]  ;;  %v5767_v61 = vor.u32 %v8458_v47, %v5764_v48 }
  0x82   :  { %v8522_v53 = vld [vmem:[#allocation2 + $0x204] sm:$0xf]  ;;  %v6020_v55 = vld [vmem:[#allocation2 + $0x210] sm:$0xf0]  ;;  %v5895_v1 = vor.u32 %v8490_v51, %v5892_v52 }
  0x83   :  { %1826 = vmatpush.bf16.msra.mxu0 %v5799_v26  ;;  %v8554_v56 = vld [vmem:[#allocation2 + $0x304] sm:$0xf]  ;;  %v6148_v57 = vld [vmem:[#allocation2 + $0x310] sm:$0xf0]  ;;  %v6023_v2 = vor.u32 %v8522_v53, %v6020_v55 }
  0x84   :  { %1839 = vmatpush.bf16.msra.mxu1 %v5927_v27  ;;  %1852 = vmatpush.bf16.msra.mxu2 %v6055_v28  ;;  %v8614_v58 = vld [vmem:[#allocation2 + $0x4e4] sm:$0xf]  ;;  %v6388_v59 = vld [vmem:[#allocation2 + $0x4f0] sm:$0xf0]  ;;  %v6151_v5 = vor.u32 %v8554_v56, %v6148_v57 }
  0x85   :  { %1865 = vmatpush.bf16.msra.mxu3 %v6183_v35  ;;  %v8646_v60 = vld [vmem:[#allocation2 + $0x5e4] sm:$0xf]  ;;  %v6516_v62 = vld [vmem:[#allocation2 + $0x5f0] sm:$0xf0]  ;;  %v6391_v6 = vor.u32 %v8614_v58, %v6388_v59 }
  0x86   :  { %v8678_v63 = vld [vmem:[#allocation2 + $0x6e4] sm:$0xf]  ;;  %v6644_v0 = vld [vmem:[#allocation2 + $0x6f0] sm:$0xf0]  ;;  %v6519_v7 = vor.u32 %v8646_v60, %v6516_v62 }
  0x87   :  { %1827 = vmatpush.bf16.msra.mxu0 %v5783_v46  ;;  %v8710_v3 = vld [vmem:[#allocation2 + $0x7e4] sm:$0xf]  ;;  %v6772_v4 = vld [vmem:[#allocation2 + $0x7f0] sm:$0xf0]  ;;  %v6647_v8 = vor.u32 %v8678_v63, %v6644_v0 }
  0x88   :  { %1840 = vmatpush.bf16.msra.mxu1 %v5911_v49  ;;  %1853 = vmatpush.bf16.msra.mxu2 %v6039_v50  ;;  %v8610_v9 = vld [vmem:[#allocation2 + $0x4c4] sm:$0xf]  ;;  %v6372_v10 = vld [vmem:[#allocation2 + $0x4d0] sm:$0xf0]  ;;  %v6775_v12 = vor.u32 %v8710_v3, %v6772_v4 }
  0x89   :  { %1866 = vmatpush.bf16.msra.mxu3 %v6167_v54  ;;  %v8642_v11 = vld [vmem:[#allocation2 + $0x5c4] sm:$0xf]  ;;  %v6500_v13 = vld [vmem:[#allocation2 + $0x5d0] sm:$0xf0]  ;;  %v6375_v18 = vor.u32 %v8610_v9, %v6372_v10 }
  0x8a   :  { %v8674_v14 = vld [vmem:[#allocation2 + $0x6c4] sm:$0xf]  ;;  %v6628_v15 = vld [vmem:[#allocation2 + $0x6d0] sm:$0xf0]  ;;  %v6503_v21 = vor.u32 %v8642_v11, %v6500_v13 }
  0x8b   :  { %1828 = vmatpush.bf16.msra.mxu0 %v5767_v61  ;;  %v8706_v16 = vld [vmem:[#allocation2 + $0x7c4] sm:$0xf]  ;;  %v6756_v17 = vld [vmem:[#allocation2 + $0x7d0] sm:$0xf0]  ;;  %v6631_v22 = vor.u32 %v8674_v14, %v6628_v15 }
  0x8c   :  { %1841 = vmatpush.bf16.msra.mxu1 %v5895_v1  ;;  %1854 = vmatpush.bf16.msra.mxu2 %v6023_v2  ;;  %v8606_v19 = vld [vmem:[#allocation2 + $0x4a4] sm:$0xf]  ;;  %v6356_v20 = vld [vmem:[#allocation2 + $0x4b0] sm:$0xf0]  ;;  %v6759_v26 = vor.u32 %v8706_v16, %v6756_v17 }
  0x8d   :  { %1867 = vmatpush.bf16.msra.mxu3 %v6151_v5  ;;  %v8638_v23 = vld [vmem:[#allocation2 + $0x5a4] sm:$0xf]  ;;  %v6484_v24 = vld [vmem:[#allocation2 + $0x5b0] sm:$0xf0]  ;;  %v6359_v30 = vor.u32 %v8606_v19, %v6356_v20 }
  0x8e   :  { %v8670_v25 = vld [vmem:[#allocation2 + $0x6a4] sm:$0xf]  ;;  %v6612_v27 = vld [vmem:[#allocation2 + $0x6b0] sm:$0xf0]  ;;  %1829 = vmatmul.bf16.vlgmr.msra.gmra.mxu0 %v9493_v34  ;;  %v6487_v31 = vor.u32 %v8638_v23, %v6484_v24 }
  0x8f   :  { %1873 = vmatpush.bf16.msrb.mxu0 %v6391_v6  ;;  %v8702_v28 = vld [vmem:[#allocation2 + $0x7a4] sm:$0xf]  ;;  %v6740_v29 = vld [vmem:[#allocation2 + $0x7b0] sm:$0xf0]  ;;  %1855 = vmatmul.bf16.vlgmr.msra.gmra.mxu2 %v9491_v33  ;;  %v6615_v35 = vor.u32 %v8670_v25, %v6612_v27 }
  0x90   :  { %1886 = vmatpush.bf16.msrb.mxu1 %v6519_v7  ;;  %1899 = vmatpush.bf16.msrb.mxu2 %v6647_v8  ;;  %v8602_v36 = vld [vmem:[#allocation2 + $0x484] sm:$0xf]  ;;  %v6340_v39 = vld [vmem:[#allocation2 + $0x490] sm:$0xf0]  ;;  %v6743_v44 = vor.u32 %v8702_v28, %v6740_v29 }
  0x91   :  { %1912 = vmatpush.bf16.msrb.mxu3 %v6775_v12  ;;  %1842 = vmatmul.bf16.vlgmr.msra.gmra.mxu1 %v9497_v42  ;;  %v8634_v43 = vld [vmem:[#allocation2 + $0x584] sm:$0xf]  ;;  %v6468_v45 = vld [vmem:[#allocation2 + $0x590] sm:$0xf0]  ;;  %v6343_v50 = vor.u32 %v8602_v36, %v6340_v39  ;;  %v5882_v39 = vld [vmem:[#allocation2 + $0xe8] sm:$0xf] }
  0x92   :  { %1868 = vmatmul.bf16.vlgmr.msra.gmra.mxu3 %v9495_v41  ;;  %v8666_v46 = vld [vmem:[#allocation2 + $0x684] sm:$0xf]  ;;  %v6596_v47 = vld [vmem:[#allocation2 + $0x690] sm:$0xf0]  ;;  %v6471_v51 = vor.u32 %v8634_v43, %v6468_v45  ;;  %v8489_v43 = vld [vmem:[#allocation2 + $0xf4] sm:$0xf0] }
  0x93   :  { %1874 = vmatpush.bf16.msrb.mxu0 %v6375_v18  ;;  %v8698_v48 = vld [vmem:[#allocation2 + $0x784] sm:$0xf]  ;;  %v6724_v49 = vld [vmem:[#allocation2 + $0x790] sm:$0xf0]  ;;  %v6599_v52 = vor.u32 %v8666_v46, %v6596_v47  ;;  %v8521_v46 = vld [vmem:[#allocation2 + $0x1f4] sm:$0xf0] }
  0x94   :  { %1887 = vmatpush.bf16.msrb.mxu1 %v6503_v21  ;;  %1900 = vmatpush.bf16.msrb.mxu2 %v6631_v22  ;;  %v8598_v53 = vld [vmem:[#allocation2 + $0x464] sm:$0xf]  ;;  %v6324_v54 = vld [vmem:[#allocation2 + $0x470] sm:$0xf0]  ;;  %v6727_v56 = vor.u32 %v8698_v48, %v6724_v49  ;;  %v6138_v47 = vld [vmem:[#allocation2 + $0x2e8] sm:$0xf] }
  0x95   :  { %1913 = vmatpush.bf16.msrb.mxu3 %v6759_v26  ;;  %v8630_v55 = vld [vmem:[#allocation2 + $0x564] sm:$0xf]  ;;  %v6452_v57 = vld [vmem:[#allocation2 + $0x570] sm:$0xf0]  ;;  %v6327_v62 = vor.u32 %v8598_v53, %v6324_v54  ;;  %v8553_v48 = vld [vmem:[#allocation2 + $0x2f4] sm:$0xf0]  ;;  %v5883_v54 = vor.u32 %v8489_v43, %v5882_v39 }
  0x96   :  { %v8662_v58 = vld [vmem:[#allocation2 + $0x664] sm:$0xf]  ;;  %v6580_v59 = vld [vmem:[#allocation2 + $0x670] sm:$0xf0]  ;;  %v6455_v63 = vor.u32 %v8630_v55, %v6452_v57  ;;  %v5866_v57 = vld [vmem:[#allocation2 + $0xc8] sm:$0xf] }
  0x97   :  { %1875 = vmatpush.bf16.msrb.mxu0 %v6359_v30  ;;  %v8694_v60 = vld [vmem:[#allocation2 + $0x764] sm:$0xf]  ;;  %v6708_v61 = vld [vmem:[#allocation2 + $0x770] sm:$0xf0]  ;;  %v6583_v0 = vor.u32 %v8662_v58, %v6580_v59  ;;  %v8485_v58 = vld [vmem:[#allocation2 + $0xd4] sm:$0xf0] }
  0x98   :  { %1888 = vmatpush.bf16.msrb.mxu1 %v6487_v31  ;;  %1901 = vmatpush.bf16.msrb.mxu2 %v6615_v35  ;;  %v8594_v1 = vld [vmem:[#allocation2 + $0x444] sm:$0xf]  ;;  %v6308_v2 = vld [vmem:[#allocation2 + $0x450] sm:$0xf0]  ;;  %v6711_v4 = vor.u32 %v8694_v60, %v6708_v61  ;;  %v5994_v59 = vld [vmem:[#allocation2 + $0x1c8] sm:$0xf] }
  0x99   :  { %1914 = vmatpush.bf16.msrb.mxu3 %v6743_v44  ;;  %v8626_v3 = vld [vmem:[#allocation2 + $0x544] sm:$0xf]  ;;  %v6436_v5 = vld [vmem:[#allocation2 + $0x550] sm:$0xf0]  ;;  %v6311_v10 = vor.u32 %v8594_v1, %v6308_v2  ;;  %v6010_v44 = vld [vmem:[#allocation2 + $0x1e8] sm:$0xf]  ;;  %v5867_v2 = vor.u32 %v8485_v58, %v5866_v57 }
  0x9a   :  { %v8658_v6 = vld [vmem:[#allocation2 + $0x644] sm:$0xf]  ;;  %v6564_v7 = vld [vmem:[#allocation2 + $0x650] sm:$0xf0]  ;;  %v6439_v11 = vor.u32 %v8626_v3, %v6436_v5  ;;  %v6011_v55 = vor.u32 %v8521_v46, %v6010_v44  ;;  %v8517_v61 = vld [vmem:[#allocation2 + $0x1d4] sm:$0xf0] }
  0x9b   :  { %1876 = vmatpush.bf16.msrb.mxu0 %v6343_v50  ;;  %v8690_v8 = vld [vmem:[#allocation2 + $0x744] sm:$0xf]  ;;  %v6692_v9 = vld [vmem:[#allocation2 + $0x750] sm:$0xf0]  ;;  %v6567_v12 = vor.u32 %v8658_v6, %v6564_v7  ;;  %v8581_v1 = vld [vmem:[#allocation2 + $0x3d4] sm:$0xf0]  ;;  %v5995_v3 = vor.u32 %v8517_v61, %v5994_v59 }
  0x9c   :  { %1889 = vmatpush.bf16.msrb.mxu1 %v6471_v51  ;;  %1902 = vmatpush.bf16.msrb.mxu2 %v6599_v52  ;;  %v8590_v13 = vld [vmem:[#allocation2 + $0x424] sm:$0xf]  ;;  %v6292_v14 = vld [vmem:[#allocation2 + $0x430] sm:$0xf0]  ;;  %v6695_v16 = vor.u32 %v8690_v8, %v6692_v9  ;;  %v6266_v51 = vld [vmem:[#allocation2 + $0x3e8] sm:$0xf] }
  0x9d   :  { %1915 = vmatpush.bf16.msrb.mxu3 %v6727_v56  ;;  %v8622_v15 = vld [vmem:[#allocation2 + $0x524] sm:$0xf]  ;;  %v6420_v17 = vld [vmem:[#allocation2 + $0x530] sm:$0xf0]  ;;  %v6295_v22 = vor.u32 %v8590_v13, %v6292_v14  ;;  %v8585_v52 = vld [vmem:[#allocation2 + $0x3f4] sm:$0xf0]  ;;  %v6139_v56 = vor.u32 %v8553_v48, %v6138_v47 }
  0x9e   :  { %v8654_v18 = vld [vmem:[#allocation2 + $0x624] sm:$0xf]  ;;  %v6548_v19 = vld [vmem:[#allocation2 + $0x630] sm:$0xf0]  ;;  %v6423_v25 = vor.u32 %v8622_v15, %v6420_v17  ;;  %v6267_v60 = vor.u32 %v8585_v52, %v6266_v51  ;;  %v5850_v5 = vld [vmem:[#allocation2 + $0xa8] sm:$0xf] }
  0x9f   :  { %1877 = vmatpush.bf16.msrb.mxu0 %v6327_v62  ;;  %v8686_v20 = vld [vmem:[#allocation2 + $0x724] sm:$0xf]  ;;  %v6676_v21 = vld [vmem:[#allocation2 + $0x730] sm:$0xf0]  ;;  %v6551_v26 = vor.u32 %v8654_v18, %v6548_v19  ;;  %v6122_v62 = vld [vmem:[#allocation2 + $0x2c8] sm:$0xf] }
  0xa0   :  { %1890 = vmatpush.bf16.msrb.mxu1 %v6455_v63  ;;  %1903 = vmatpush.bf16.msrb.mxu2 %v6583_v0  ;;  %v8586_v23 = vld [vmem:[#allocation2 + $0x404] sm:$0xf]  ;;  %v6276_v24 = vld [vmem:[#allocation2 + $0x410] sm:$0xf0]  ;;  %v6679_v30 = vor.u32 %v8686_v20, %v6676_v21  ;;  %v8549_v63 = vld [vmem:[#allocation2 + $0x2d4] sm:$0xf0] }
  0xa1   :  { %1916 = vmatpush.bf16.msrb.mxu3 %v6711_v4  ;;  %v8618_v27 = vld [vmem:[#allocation2 + $0x504] sm:$0xf]  ;;  %v6404_v28 = vld [vmem:[#allocation2 + $0x510] sm:$0xf0]  ;;  %v6279_v45 = vor.u32 %v8586_v23, %v6276_v24  ;;  %v6250_v0 = vld [vmem:[#allocation2 + $0x3c8] sm:$0xf]  ;;  %v6123_v4 = vor.u32 %v8549_v63, %v6122_v62 }
  0xa2   :  { %v8650_v29 = vld [vmem:[#allocation2 + $0x604] sm:$0xf]  ;;  %v6532_v31 = vld [vmem:[#allocation2 + $0x610] sm:$0xf0]  ;;  %v6407_v49 = vor.u32 %v8618_v27, %v6404_v28  ;;  %v8481_v6 = vld [vmem:[#allocation2 + $0xb4] sm:$0xf0]  ;;  %v6251_v8 = vor.u32 %v8581_v1, %v6250_v0 }
  0xa3   :  { %1878 = vmatpush.bf16.msrb.mxu0 %v6311_v10  ;;  %v8682_v35 = vld [vmem:[#allocation2 + $0x704] sm:$0xf]  ;;  %v6660_v36 = vld [vmem:[#allocation2 + $0x710] sm:$0xf0]  ;;  %v6535_v50 = vor.u32 %v8650_v29, %v6532_v31  ;;  %v5978_v7 = vld [vmem:[#allocation2 + $0x1a8] sm:$0xf]  ;;  %v5851_v14 = vor.u32 %v8481_v6, %v5850_v5 }
  0xa4   :  { %1891 = vmatpush.bf16.msrb.mxu1 %v6439_v11  ;;  %1904 = vmatpush.bf16.msrb.mxu2 %v6567_v12  ;;  %v6663_v53 = vor.u32 %v8682_v35, %v6660_v36  ;;  %v8513_v9 = vld [vmem:[#allocation2 + $0x1b4] sm:$0xf0]  ;;  %v6106_v10 = vld [vmem:[#allocation2 + $0x2a8] sm:$0xf] }
  0xa5   :  { %1917 = vmatpush.bf16.msrb.mxu3 %v6695_v16  ;;  %v8545_v11 = vld [vmem:[#allocation2 + $0x2b4] sm:$0xf0]  ;;  %v6234_v12 = vld [vmem:[#allocation2 + $0x3a8] sm:$0xf]  ;;  %v5979_v15 = vor.u32 %v8513_v9, %v5978_v7 }
  0xa6   :  { %v8577_v13 = vld [vmem:[#allocation2 + $0x3b4] sm:$0xf0]  ;;  %v6107_v16 = vor.u32 %v8545_v11, %v6106_v10  ;;  %v5834_v17 = vld [vmem:[#allocation2 + $0x88] sm:$0xf] }
  0xa7   :  { %1879 = vmatpush.bf16.msrb.mxu0 %v6295_v22  ;;  %v8477_v18 = vld [vmem:[#allocation2 + $0x94] sm:$0xf0]  ;;  %v5962_v19 = vld [vmem:[#allocation2 + $0x188] sm:$0xf]  ;;  %v6235_v20 = vor.u32 %v8577_v13, %v6234_v12 }
  0xa8   :  { %1892 = vmatpush.bf16.msrb.mxu1 %v6423_v25  ;;  %1905 = vmatpush.bf16.msrb.mxu2 %v6551_v26  ;;  %v8509_v21 = vld [vmem:[#allocation2 + $0x194] sm:$0xf0]  ;;  %v6090_v22 = vld [vmem:[#allocation2 + $0x288] sm:$0xf]  ;;  %v5835_v26 = vor.u32 %v8477_v18, %v5834_v17 }
  0xa9   :  { %1918 = vmatpush.bf16.msrb.mxu3 %v6679_v30  ;;  %v8541_v23 = vld [vmem:[#allocation2 + $0x294] sm:$0xf0]  ;;  %v6218_v24 = vld [vmem:[#allocation2 + $0x388] sm:$0xf]  ;;  %v5963_v27 = vor.u32 %v8509_v21, %v5962_v19 }
  0xaa   :  { %v8573_v25 = vld [vmem:[#allocation2 + $0x394] sm:$0xf0]  ;;  %v6091_v28 = vor.u32 %v8541_v23, %v6090_v22  ;;  %v5818_v29 = vld [vmem:[#allocation2 + $0x68] sm:$0xf] }
  0xab   :  { %1880 = vmatpush.bf16.msrb.mxu0 %v6279_v45  ;;  %v8473_v30 = vld [vmem:[#allocation2 + $0x74] sm:$0xf0]  ;;  %v5946_v31 = vld [vmem:[#allocation2 + $0x168] sm:$0xf]  ;;  %v6219_v35 = vor.u32 %v8573_v25, %v6218_v24 }
  0xac   :  { %1893 = vmatpush.bf16.msrb.mxu1 %v6407_v49  ;;  %1906 = vmatpush.bf16.msrb.mxu2 %v6535_v50  ;;  %v8505_v36 = vld [vmem:[#allocation2 + $0x174] sm:$0xf0]  ;;  %v6074_v39 = vld [vmem:[#allocation2 + $0x268] sm:$0xf]  ;;  %v5819_v46 = vor.u32 %v8473_v30, %v5818_v29 }
  0xad   :  { %1919 = vmatpush.bf16.msrb.mxu3 %v6663_v53  ;;  %v8537_v43 = vld [vmem:[#allocation2 + $0x274] sm:$0xf0]  ;;  %v6202_v44 = vld [vmem:[#allocation2 + $0x368] sm:$0xf]  ;;  %v5947_v47 = vor.u32 %v8505_v36, %v5946_v31 }
  0xae   :  { %1881 = vmatmul.bf16.vlgmr.msrb.gmra.mxu0 %v9508_v37  ;;  %v8569_v45 = vld [vmem:[#allocation2 + $0x374] sm:$0xf0]  ;;  %v6075_v48 = vor.u32 %v8537_v43, %v6074_v39  ;;  %v5802_v49 = vld [vmem:[#allocation2 + $0x48] sm:$0xf] }
  0xaf   :  { %1925 = vmatpush.bf16.msra.mxu0 %v5883_v54  ;;  %1907 = vmatmul.bf16.vlgmr.msrb.gmra.mxu2 %v9506_v32  ;;  %v8469_v50 = vld [vmem:[#allocation2 + $0x54] sm:$0xf0]  ;;  %v5930_v51 = vld [vmem:[#allocation2 + $0x148] sm:$0xf]  ;;  %v6203_v52 = vor.u32 %v8569_v45, %v6202_v44 }
  0xb0   :  { %1938 = vmatpush.bf16.msra.mxu1 %v6011_v55  ;;  %1951 = vmatpush.bf16.msra.mxu2 %v6139_v56  ;;  %v8501_v53 = vld [vmem:[#allocation2 + $0x154] sm:$0xf0]  ;;  %v6058_v54 = vld [vmem:[#allocation2 + $0x248] sm:$0xf]  ;;  %v5803_v58 = vor.u32 %v8469_v50, %v5802_v49 }
  0xb1   :  { %1964 = vmatpush.bf16.msra.mxu3 %v6267_v60  ;;  %1894 = vmatmul.bf16.vlgmr.msrb.gmra.mxu1 %v9512_v40  ;;  %v8533_v55 = vld [vmem:[#allocation2 + $0x254] sm:$0xf0]  ;;  %v6186_v56 = vld [vmem:[#allocation2 + $0x348] sm:$0xf]  ;;  %v5931_v59 = vor.u32 %v8501_v53, %v5930_v51 }
  0xb2   :  { %1920 = vmatmul.bf16.vlgmr.msrb.gmra.mxu3 %v9510_v38  ;;  %v8565_v57 = vld [vmem:[#allocation2 + $0x354] sm:$0xf0]  ;;  %v6059_v60 = vor.u32 %v8533_v55, %v6058_v54  ;;  %v5786_v61 = vld [vmem:[#allocation2 + $0x28] sm:$0xf] }
  0xb3   :  { %1926 = vmatpush.bf16.msra.mxu0 %v5867_v2  ;;  %v8465_v62 = vld [vmem:[#allocation2 + $0x34] sm:$0xf0]  ;;  %v5914_v63 = vld [vmem:[#allocation2 + $0x128] sm:$0xf]  ;;  %v6187_v0 = vor.u32 %v8565_v57, %v6186_v56 }
  0xb4   :  { %1939 = vmatpush.bf16.msra.mxu1 %v5995_v3  ;;  %1952 = vmatpush.bf16.msra.mxu2 %v6123_v4  ;;  %v8497_v1 = vld [vmem:[#allocation2 + $0x134] sm:$0xf0]  ;;  %v6042_v2 = vld [vmem:[#allocation2 + $0x228] sm:$0xf]  ;;  %v5787_v6 = vor.u32 %v8465_v62, %v5786_v61 }
  0xb5   :  { %1965 = vmatpush.bf16.msra.mxu3 %v6251_v8  ;;  %v8529_v3 = vld [vmem:[#allocation2 + $0x234] sm:$0xf0]  ;;  %v6170_v4 = vld [vmem:[#allocation2 + $0x328] sm:$0xf]  ;;  %v5915_v9 = vor.u32 %v8497_v1, %v5914_v63 }
  0xb6   :  { %v8561_v5 = vld [vmem:[#allocation2 + $0x334] sm:$0xf0]  ;;  %v5770_v7 = vld [vmem:[#allocation2 + $0x8] sm:$0xf]  ;;  %v6043_v10 = vor.u32 %v8529_v3, %v6042_v2 }
  0xb7   :  { %1927 = vmatpush.bf16.msra.mxu0 %v5851_v14  ;;  %v8461_v8 = vld [vmem:[#allocation2 + $0x14] sm:$0xf0]  ;;  %v5898_v11 = vld [vmem:[#allocation2 + $0x108] sm:$0xf]  ;;  %v6171_v14 = vor.u32 %v8561_v5, %v6170_v4 }
  0xb8   :  { %1940 = vmatpush.bf16.msra.mxu1 %v5979_v15  ;;  %1953 = vmatpush.bf16.msra.mxu2 %v6107_v16  ;;  %v8493_v12 = vld [vmem:[#allocation2 + $0x114] sm:$0xf0]  ;;  %v6026_v13 = vld [vmem:[#allocation2 + $0x208] sm:$0xf]  ;;  %v5771_v21 = vor.u32 %v8461_v8, %v5770_v7 }
  0xb9   :  { %1966 = vmatpush.bf16.msra.mxu3 %v6235_v20  ;;  %v8525_v15 = vld [vmem:[#allocation2 + $0x214] sm:$0xf0]  ;;  %v6154_v16 = vld [vmem:[#allocation2 + $0x308] sm:$0xf]  ;;  %v5899_v25 = vor.u32 %v8493_v12, %v5898_v11 }
  0xba   :  { %v8557_v17 = vld [vmem:[#allocation2 + $0x314] sm:$0xf0]  ;;  %v6394_v18 = vld [vmem:[#allocation2 + $0x4e8] sm:$0xf] }
  0xbb   :  { %1928 = vmatpush.bf16.msra.mxu0 %v5835_v26  ;;  %v8617_v19 = vld [vmem:[#allocation2 + $0x4f4] sm:$0xf0]  ;;  %v6522_v20 = vld [vmem:[#allocation2 + $0x5e8] sm:$0xf]  ;;  %v6027_v26 = vor.u32 %v8525_v15, %v6026_v13  ;;  %v6155_v29 = vor.u32 %v8557_v17, %v6154_v16 }
  0xbc   :  { %1941 = vmatpush.bf16.msra.mxu1 %v5963_v27  ;;  %1954 = vmatpush.bf16.msra.mxu2 %v6091_v28  ;;  %v8649_v22 = vld [vmem:[#allocation2 + $0x5f4] sm:$0xf0]  ;;  %v6650_v23 = vld [vmem:[#allocation2 + $0x6e8] sm:$0xf]  ;;  %v6395_v30 = vor.u32 %v8617_v19, %v6394_v18 }
  0xbd   :  { %1967 = vmatpush.bf16.msra.mxu3 %v6219_v35  ;;  %v8681_v24 = vld [vmem:[#allocation2 + $0x6f4] sm:$0xf0]  ;;  %v6778_v27 = vld [vmem:[#allocation2 + $0x7e8] sm:$0xf]  ;;  %v6523_v31 = vor.u32 %v8649_v22, %v6522_v20 }
  0xbe   :  { %v8713_v28 = vld [vmem:[#allocation2 + $0x7f4] sm:$0xf0]  ;;  %v6651_v35 = vor.u32 %v8681_v24, %v6650_v23  ;;  %v6378_v36 = vld [vmem:[#allocation2 + $0x4c8] sm:$0xf] }
  0xbf   :  { %1929 = vmatpush.bf16.msra.mxu0 %v5819_v46  ;;  %v8613_v39 = vld [vmem:[#allocation2 + $0x4d4] sm:$0xf0]  ;;  %v6506_v43 = vld [vmem:[#allocation2 + $0x5c8] sm:$0xf]  ;;  %v6779_v44 = vor.u32 %v8713_v28, %v6778_v27 }
  0xc0   :  { %1942 = vmatpush.bf16.msra.mxu1 %v5947_v47  ;;  %1955 = vmatpush.bf16.msra.mxu2 %v6075_v48  ;;  %v8645_v45 = vld [vmem:[#allocation2 + $0x5d4] sm:$0xf0]  ;;  %v6634_v46 = vld [vmem:[#allocation2 + $0x6c8] sm:$0xf]  ;;  %v6379_v50 = vor.u32 %v8613_v39, %v6378_v36 }
  0xc1   :  { %1968 = vmatpush.bf16.msra.mxu3 %v6203_v52  ;;  %v8677_v47 = vld [vmem:[#allocation2 + $0x6d4] sm:$0xf0]  ;;  %v6762_v48 = vld [vmem:[#allocation2 + $0x7c8] sm:$0xf]  ;;  %v6507_v51 = vor.u32 %v8645_v45, %v6506_v43 }
  0xc2   :  { %v8709_v49 = vld [vmem:[#allocation2 + $0x7d4] sm:$0xf0]  ;;  %v6635_v52 = vor.u32 %v8677_v47, %v6634_v46  ;;  %v6362_v53 = vld [vmem:[#allocation2 + $0x4a8] sm:$0xf] }
  0xc3   :  { %1930 = vmatpush.bf16.msra.mxu0 %v5803_v58  ;;  %v8609_v54 = vld [vmem:[#allocation2 + $0x4b4] sm:$0xf0]  ;;  %v6490_v55 = vld [vmem:[#allocation2 + $0x5a8] sm:$0xf]  ;;  %v6763_v56 = vor.u32 %v8709_v49, %v6762_v48 }
  0xc4   :  { %1943 = vmatpush.bf16.msra.mxu1 %v5931_v59  ;;  %1956 = vmatpush.bf16.msra.mxu2 %v6059_v60  ;;  %v8641_v57 = vld [vmem:[#allocation2 + $0x5b4] sm:$0xf0]  ;;  %v6618_v58 = vld [vmem:[#allocation2 + $0x6a8] sm:$0xf]  ;;  %v6363_v62 = vor.u32 %v8609_v54, %v6362_v53 }
  0xc5   :  { %1969 = vmatpush.bf16.msra.mxu3 %v6187_v0  ;;  %v8673_v59 = vld [vmem:[#allocation2 + $0x6b4] sm:$0xf0]  ;;  %v6746_v60 = vld [vmem:[#allocation2 + $0x7a8] sm:$0xf]  ;;  %v6491_v63 = vor.u32 %v8641_v57, %v6490_v55 }
  0xc6   :  { %v8705_v61 = vld [vmem:[#allocation2 + $0x7b4] sm:$0xf0]  ;;  %v6619_v0 = vor.u32 %v8673_v59, %v6618_v58  ;;  %v6346_v1 = vld [vmem:[#allocation2 + $0x488] sm:$0xf] }
  0xc7   :  { %1931 = vmatpush.bf16.msra.mxu0 %v5787_v6  ;;  %v8605_v2 = vld [vmem:[#allocation2 + $0x494] sm:$0xf0]  ;;  %v6474_v3 = vld [vmem:[#allocation2 + $0x588] sm:$0xf]  ;;  %v6747_v4 = vor.u32 %v8705_v61, %v6746_v60 }
  0xc8   :  { %1944 = vmatpush.bf16.msra.mxu1 %v5915_v9  ;;  %1957 = vmatpush.bf16.msra.mxu2 %v6043_v10  ;;  %v8637_v5 = vld [vmem:[#allocation2 + $0x594] sm:$0xf0]  ;;  %v6602_v6 = vld [vmem:[#allocation2 + $0x688] sm:$0xf]  ;;  %v6347_v10 = vor.u32 %v8605_v2, %v6346_v1 }
  0xc9   :  { %1970 = vmatpush.bf16.msra.mxu3 %v6171_v14  ;;  %v8669_v7 = vld [vmem:[#allocation2 + $0x694] sm:$0xf0]  ;;  %v6730_v8 = vld [vmem:[#allocation2 + $0x788] sm:$0xf]  ;;  %v6475_v11 = vor.u32 %v8637_v5, %v6474_v3 }
  0xca   :  { %v8701_v9 = vld [vmem:[#allocation2 + $0x794] sm:$0xf0]  ;;  %v6603_v12 = vor.u32 %v8669_v7, %v6602_v6  ;;  %v6330_v13 = vld [vmem:[#allocation2 + $0x468] sm:$0xf]  ;;  %v8487_v6 = vld [vmem:[#allocation2 + $0xec] sm:$0xf] }
  0xcb   :  { %1932 = vmatpush.bf16.msra.mxu0 %v5771_v21  ;;  %v8601_v14 = vld [vmem:[#allocation2 + $0x474] sm:$0xf0]  ;;  %v6458_v15 = vld [vmem:[#allocation2 + $0x568] sm:$0xf]  ;;  %v6731_v16 = vor.u32 %v8701_v9, %v6730_v8  ;;  %v5884_v7 = vld [vmem:[#allocation2 + $0xf8] sm:$0xf0] }
  0xcc   :  { %1945 = vmatpush.bf16.msra.mxu1 %v5899_v25  ;;  %1958 = vmatpush.bf16.msra.mxu2 %v6027_v26  ;;  %v8633_v17 = vld [vmem:[#allocation2 + $0x574] sm:$0xf0]  ;;  %v6586_v18 = vld [vmem:[#allocation2 + $0x668] sm:$0xf]  ;;  %v6331_v22 = vor.u32 %v8601_v14, %v6330_v13  ;;  %v8519_v8 = vld [vmem:[#allocation2 + $0x1ec] sm:$0xf] }
  0xcd   :  { %1971 = vmatpush.bf16.msra.mxu3 %v6155_v29  ;;  %v8665_v19 = vld [vmem:[#allocation2 + $0x674] sm:$0xf0]  ;;  %v6714_v20 = vld [vmem:[#allocation2 + $0x768] sm:$0xf]  ;;  %v6459_v24 = vor.u32 %v8633_v17, %v6458_v15  ;;  %v6140_v13 = vld [vmem:[#allocation2 + $0x2f8] sm:$0xf0] }
  0xce   :  { %1933 = vmatmul.bf16.vlgmr.msra.gmra.mxu0 %v9493_v34  ;;  %v8697_v21 = vld [vmem:[#allocation2 + $0x774] sm:$0xf0]  ;;  %v6314_v23 = vld [vmem:[#allocation2 + $0x448] sm:$0xf]  ;;  %v6587_v25 = vor.u32 %v8665_v19, %v6586_v18  ;;  %v8583_v17 = vld [vmem:[#allocation2 + $0x3ec] sm:$0xf] }
  0xcf   :  { %1977 = vmatpush.bf16.msrb.mxu0 %v6395_v30  ;;  %1959 = vmatmul.bf16.vlgmr.msra.gmra.mxu2 %v9491_v33  ;;  %v8597_v26 = vld [vmem:[#allocation2 + $0x454] sm:$0xf0]  ;;  %v6442_v27 = vld [vmem:[#allocation2 + $0x548] sm:$0xf]  ;;  %v6715_v29 = vor.u32 %v8697_v21, %v6714_v20  ;;  %v6268_v18 = vld [vmem:[#allocation2 + $0x3f8] sm:$0xf0]  ;;  %v5887_v20 = vor.u32 %v8487_v6, %v5884_v7 }
  0xd0   :  { %1990 = vmatpush.bf16.msrb.mxu1 %v6523_v31  ;;  %2003 = vmatpush.bf16.msrb.mxu2 %v6651_v35  ;;  %v8629_v28 = vld [vmem:[#allocation2 + $0x554] sm:$0xf0]  ;;  %v6570_v30 = vld [vmem:[#allocation2 + $0x648] sm:$0xf]  ;;  %v6315_v43 = vor.u32 %v8597_v26, %v6314_v23  ;;  %v8515_v26 = vld [vmem:[#allocation2 + $0x1cc] sm:$0xf] }
  0xd1   :  { %2016 = vmatpush.bf16.msrb.mxu3 %v6779_v44  ;;  %1946 = vmatmul.bf16.vlgmr.msra.gmra.mxu1 %v9497_v42  ;;  %v8661_v31 = vld [vmem:[#allocation2 + $0x654] sm:$0xf0]  ;;  %v6698_v36 = vld [vmem:[#allocation2 + $0x748] sm:$0xf]  ;;  %v6443_v45 = vor.u32 %v8629_v28, %v6442_v27  ;;  %v6092_v6 = vld [vmem:[#allocation2 + $0x298] sm:$0xf0] }
  0xd2   :  { %1972 = vmatmul.bf16.vlgmr.msra.gmra.mxu3 %v9495_v41  ;;  %v9533_v35 = vld [vmem:[%s9954_s1] sm:$0xf]  ;;  %v6298_v44 = vld [vmem:[#allocation2 + $0x428] sm:$0xf]  ;;  %v6571_v46 = vor.u32 %v8661_v31, %v6570_v30  ;;  %v5996_v30 = vld [vmem:[#allocation2 + $0x1d8] sm:$0xf0] }
  0xd3   :  { %1978 = vmatpush.bf16.msrb.mxu0 %v6379_v50  ;;  %v8693_v39 = vld [vmem:[#allocation2 + $0x754] sm:$0xf0]  ;;  %v6426_v48 = vld [vmem:[#allocation2 + $0x528] sm:$0xf]  ;;  %v429_v49 = vperm.slane %v9533_v35, 0 }
  0xd4   :  { %1991 = vmatpush.bf16.msrb.mxu1 %v6507_v51  ;;  %2004 = vmatpush.bf16.msrb.mxu2 %v6635_v52  ;;  %v8593_v47 = vld [vmem:[#allocation2 + $0x434] sm:$0xf0]  ;;  %v6699_v50 = vor.u32 %v8693_v39, %v6698_v36  ;;  %v6554_v52 = vld [vmem:[#allocation2 + $0x628] sm:$0xf]  ;;  %v8547_v31 = vld [vmem:[#allocation2 + $0x2cc] sm:$0xf] }
  0xd5   :  { %2017 = vmatpush.bf16.msrb.mxu3 %v6763_v56  ;;  %v8625_v51 = vld [vmem:[#allocation2 + $0x534] sm:$0xf0]  ;;  %v6682_v54 = vld [vmem:[#allocation2 + $0x728] sm:$0xf]  ;;  %v6299_v56 = vor.u32 %v8593_v47, %v6298_v44  ;;  %v6124_v36 = vld [vmem:[#allocation2 + $0x2d8] sm:$0xf0]  ;;  %v5999_v47 = vor.u32 %v8515_v26, %v5996_v30 }
  0xd6   :  { %v8657_v53 = vld [vmem:[#allocation2 + $0x634] sm:$0xf0]  ;;  %v6282_v57 = vld [vmem:[#allocation2 + $0x408] sm:$0xf]  ;;  %v6427_v60 = vor.u32 %v8625_v51, %v6426_v48  ;;  %v6252_v44 = vld [vmem:[#allocation2 + $0x3d8] sm:$0xf0]  ;;  %v6127_v48 = vor.u32 %v8547_v31, %v6124_v36 }
  0xd7   :  { %1979 = vmatpush.bf16.msrb.mxu0 %v6363_v62  ;;  %v8689_v55 = vld [vmem:[#allocation2 + $0x734] sm:$0xf0]  ;;  %v6555_v61 = vor.u32 %v8657_v53, %v6554_v52  ;;  %v6410_v62 = vld [vmem:[#allocation2 + $0x508] sm:$0xf]  ;;  %v8511_v51 = vld [vmem:[#allocation2 + $0x1ac] sm:$0xf] }
  0xd8   :  { %1992 = vmatpush.bf16.msrb.mxu1 %v6491_v63  ;;  %2005 = vmatpush.bf16.msrb.mxu2 %v6619_v0  ;;  %v8589_v58 = vld [vmem:[#allocation2 + $0x414] sm:$0xf0]  ;;  %v6538_v0 = vld [vmem:[#allocation2 + $0x608] sm:$0xf]  ;;  %v6683_v2 = vor.u32 %v8689_v55, %v6682_v54  ;;  %v5980_v54 = vld [vmem:[#allocation2 + $0x1b8] sm:$0xf0] }
  0xd9   :  { %2018 = vmatpush.bf16.msrb.mxu3 %v6747_v4  ;;  %v8621_v63 = vld [vmem:[#allocation2 + $0x514] sm:$0xf0]  ;;  %v6666_v4 = vld [vmem:[#allocation2 + $0x708] sm:$0xf]  ;;  %v8543_v55 = vld [vmem:[#allocation2 + $0x2ac] sm:$0xf] }
  0xda   :  { %v8653_v3 = vld [vmem:[#allocation2 + $0x614] sm:$0xf0]  ;;  %v6411_v15 = vor.u32 %v8621_v63, %v6410_v62  ;;  %v8475_v63 = vld [vmem:[#allocation2 + $0x8c] sm:$0xf] }
  0xdb   :  { %1980 = vmatpush.bf16.msrb.mxu0 %v6347_v10  ;;  %v8685_v5 = vld [vmem:[#allocation2 + $0x714] sm:$0xf0]  ;;  %v6283_v10 = vor.u32 %v8589_v58, %v6282_v57  ;;  %v8575_v57 = vld [vmem:[#allocation2 + $0x3ac] sm:$0xf]  ;;  %v6236_v58 = vld [vmem:[#allocation2 + $0x3b8] sm:$0xf0] }
  0xdc   :  { %1993 = vmatpush.bf16.msrb.mxu1 %v6475_v11  ;;  %2006 = vmatpush.bf16.msrb.mxu2 %v6603_v12  ;;  %v6012_v11 = vld [vmem:[#allocation2 + $0x1f8] sm:$0xf0]  ;;  %v8551_v12 = vld [vmem:[#allocation2 + $0x2ec] sm:$0xf]  ;;  %v6667_v19 = vor.u32 %v8685_v5, %v6666_v4 }
  0xdd   :  { %2019 = vmatpush.bf16.msrb.mxu3 %v6731_v16  ;;  %v6539_v16 = vor.u32 %v8653_v3, %v6538_v0  ;;  %v6143_v23 = vor.u32 %v8551_v12, %v6140_v13  ;;  %v5836_v0 = vld [vmem:[#allocation2 + $0x98] sm:$0xf0]  ;;  %v6239_v3 = vor.u32 %v8575_v57, %v6236_v58  ;;  %v8539_v5 = vld [vmem:[#allocation2 + $0x28c] sm:$0xf] }
  0xde   :  { %v1726_v59 = vpop.f32.mrf.mxu0  ;;  %v5964_v4 = vld [vmem:[#allocation2 + $0x198] sm:$0xf0]  ;;  %v8571_v7 = vld [vmem:[#allocation2 + $0x38c] sm:$0xf]  ;;  %v6095_v12 = vor.u32 %v8539_v5, %v6092_v6 }
  0xdf   :  { %1981 = vmatpush.bf16.msrb.mxu0 %v6331_v22  ;;  %v1727_v1 = vadd.f32 %v1726_v59, %v429_v49  ;;  %v1739_v9 = vpop.f32.mrf.mxu1  ;;  %v6015_v22 = vor.u32 %v8519_v8, %v6012_v11  ;;  %v8479_v49 = vld [vmem:[#allocation2 + $0xac] sm:$0xf]  ;;  %v6220_v8 = vld [vmem:[#allocation2 + $0x398] sm:$0xf0] }
  0xe0   :  { %1994 = vmatpush.bf16.msrb.mxu1 %v6459_v24  ;;  %2007 = vmatpush.bf16.msrb.mxu2 %v6587_v25  ;;  %v8483_v24 = vld [vmem:[#allocation2 + $0xcc] sm:$0xf]  ;;  %v5868_v25 = vld [vmem:[#allocation2 + $0xd8] sm:$0xf0] }
  0xe1   :  { %2020 = vmatpush.bf16.msrb.mxu3 %v6715_v29  ;;  %v1740_v14 = vadd.f32 %v1739_v9, %v1727_v1  ;;  %v6271_v29 = vor.u32 %v8583_v17, %v6268_v18  ;;  %v8507_v1 = vld [vmem:[#allocation2 + $0x18c] sm:$0xf]  ;;  %v5839_v9 = vor.u32 %v8475_v63, %v5836_v0  ;;  %v6223_v18 = vor.u32 %v8571_v7, %v6220_v8  ;;  %v6172_v63 = vld [vmem:[#allocation2 + $0x338] sm:$0xf0] }
  0xe2   :  { %v5967_v11 = vor.u32 %v8507_v1, %v5964_v4  ;;  %v8471_v13 = vld [vmem:[#allocation2 + $0x6c] sm:$0xf]  ;;  %v5900_v6 = vld [vmem:[#allocation2 + $0x118] sm:$0xf0] }
  0xe3   :  { %1982 = vmatpush.bf16.msrb.mxu0 %v6315_v43  ;;  %v1752_v21 = vpop.f32.mrf.mxu2  ;;  %v8579_v43 = vld [vmem:[#allocation2 + $0x3cc] sm:$0xf] }
  0xe4   :  { %1995 = vmatpush.bf16.msrb.mxu1 %v6443_v45  ;;  %2008 = vmatpush.bf16.msrb.mxu2 %v6571_v46  ;;  %v1753_v27 = vadd.f32 %v1752_v21, %v1740_v14  ;;  %v1765_v28 = vpop.f32.mrf.mxu3  ;;  %v5871_v46 = vor.u32 %v8483_v24, %v5868_v25  ;;  %v6255_v53 = vor.u32 %v8579_v43, %v6252_v44  ;;  %v5820_v14 = vld [vmem:[#allocation2 + $0x78] sm:$0xf0]  ;;  %v8499_v30 = vld [vmem:[#allocation2 + $0x14c] sm:$0xf] }
  0xe5   :  { %2021 = vmatpush.bf16.msrb.mxu3 %v6699_v50  ;;  %v5852_v50 = vld [vmem:[#allocation2 + $0xb8] sm:$0xf0]  ;;  %v5823_v25 = vor.u32 %v8471_v13, %v5820_v14  ;;  %v8531_v43 = vld [vmem:[#allocation2 + $0x24c] sm:$0xf] }
  0xe6   :  { %v1728_v39 = vpop.f32.mrf.mxu0  ;;  %v1766_v45 = vadd.f32 %v1765_v28, %v1753_v27  ;;  %v5855_v59 = vor.u32 %v8479_v49, %v5852_v50  ;;  %v6076_v21 = vld [vmem:[#allocation2 + $0x278] sm:$0xf0]  ;;  %v8467_v28 = vld [vmem:[#allocation2 + $0x4c] sm:$0xf] }
  0xe7   :  { %1983 = vmatpush.bf16.msrb.mxu0 %v6299_v56  ;;  %v1741_v52 = vpop.f32.mrf.mxu1  ;;  %v6108_v56 = vld [vmem:[#allocation2 + $0x2b8] sm:$0xf0]  ;;  %v8459_v1 = vld [vmem:[#allocation2 + $0xc] sm:$0xf] }
  0xe8   :  { %1996 = vmatpush.bf16.msrb.mxu1 %v6427_v60  ;;  %2009 = vmatpush.bf16.msrb.mxu2 %v6555_v61  ;;  %v5983_v61 = vor.u32 %v8511_v51, %v5980_v54  ;;  %v6111_v62 = vor.u32 %v8543_v55, %v6108_v56  ;;  %v5932_v39 = vld [vmem:[#allocation2 + $0x158] sm:$0xf0]  ;;  %v8463_v54 = vld [vmem:[#allocation2 + $0x2c] sm:$0xf] }
  0xe9   :  { %2022 = vmatpush.bf16.msrb.mxu3 %v6683_v2  ;;  %v6060_v44 = vld [vmem:[#allocation2 + $0x258] sm:$0xf0]  ;;  %v5935_v52 = vor.u32 %v8499_v30, %v5932_v39  ;;  %v8495_v56 = vld [vmem:[#allocation2 + $0x12c] sm:$0xf] }
  0xea   :  { %v5788_v55 = vld [vmem:[#allocation2 + $0x38] sm:$0xf0]  ;;  %v8491_v5 = vld [vmem:[#allocation2 + $0x10c] sm:$0xf] }
  0xeb   :  { %1984 = vmatpush.bf16.msrb.mxu0 %v6283_v10  ;;  %v1754_v60 = vpop.f32.mrf.mxu2  ;;  %v5791_v0 = vor.u32 %v8463_v54, %v5788_v55  ;;  %v8523_v7 = vld [vmem:[#allocation2 + $0x20c] sm:$0xf]  ;;  %v6380_v30 = vld [vmem:[#allocation2 + $0x4d8] sm:$0xf0] }
  0xec   :  { %1997 = vmatpush.bf16.msrb.mxu1 %v6411_v15  ;;  %2010 = vmatpush.bf16.msrb.mxu2 %v6539_v16  ;;  %v1767_v2 = vpop.f32.mrf.mxu3  ;;  %v8503_v15 = vld [vmem:[#allocation2 + $0x16c] sm:$0xf]  ;;  %v6508_v39 = vld [vmem:[#allocation2 + $0x5d8] sm:$0xf0] }
  0xed   :  { %2023 = vmatpush.bf16.msrb.mxu3 %v6667_v19  ;;  %v5948_v19 = vld [vmem:[#allocation2 + $0x178] sm:$0xf0]  ;;  %v8527_v60 = vld [vmem:[#allocation2 + $0x22c] sm:$0xf] }
  0xee   :  { %1985 = vmatmul.bf16.vlgmr.msrb.gmra.mxu0 %v9508_v37  ;;  %v5951_v26 = vor.u32 %v8503_v15, %v5948_v19  ;;  %v5772_v2 = vld [vmem:[#allocation2 + $0x18] sm:$0xf0]  ;;  %v8615_v14 = vld [vmem:[#allocation2 + $0x4ec] sm:$0xf] }
  0xef   :  { %2029 = vmatpush.bf16.msra.mxu0 %v5887_v20  ;;  %2011 = vmatmul.bf16.vlgmr.msrb.gmra.mxu2 %v9506_v32  ;;  %v1778_v10 = vpop.f32.mrf.mxu0  ;;  %v8535_v20 = vld [vmem:[#allocation2 + $0x26c] sm:$0xf]  ;;  %v6396_v15 = vld [vmem:[#allocation2 + $0x4f8] sm:$0xf0] }
  0xf0   :  { %2042 = vmatpush.bf16.msra.mxu1 %v6015_v22  ;;  %2055 = vmatpush.bf16.msra.mxu2 %v6143_v23  ;;  %v1779_v16 = vadd.f32 %v1778_v10, %v1766_v45  ;;  %v1791_v17 = vpop.f32.mrf.mxu1  ;;  %v8567_v22 = vld [vmem:[#allocation2 + $0x36c] sm:$0xf]  ;;  %v6204_v23 = vld [vmem:[#allocation2 + $0x378] sm:$0xf0]  ;;  %v6079_v27 = vor.u32 %v8535_v20, %v6076_v21  ;;  %v5903_v21 = vor.u32 %v8491_v5, %v5900_v6 }
  0xf1   :  { %2068 = vmatpush.bf16.msra.mxu3 %v6271_v29  ;;  %1998 = vmatmul.bf16.vlgmr.msrb.gmra.mxu1 %v9512_v40  ;;  %v5804_v29 = vld [vmem:[#allocation2 + $0x58] sm:$0xf0]  ;;  %v6207_v36 = vor.u32 %v8567_v22, %v6204_v23  ;;  %v8679_v19 = vld [vmem:[#allocation2 + $0x6ec] sm:$0xf] }
  0xf2   :  { %2024 = vmatmul.bf16.vlgmr.msrb.gmra.mxu3 %v9510_v38  ;;  %v1792_v24 = vadd.f32 %v1791_v17, %v1779_v16  ;;  %v5807_v49 = vor.u32 %v8467_v28, %v5804_v29  ;;  %v6028_v10 = vld [vmem:[#allocation2 + $0x218] sm:$0xf0]  ;;  %v8647_v16 = vld [vmem:[#allocation2 + $0x5ec] sm:$0xf]  ;;  %v5775_v17 = vor.u32 %v8459_v1, %v5772_v2 }
  0xf3   :  { %2030 = vmatpush.bf16.msra.mxu0 %v5871_v46  ;;  %v6652_v20 = vld [vmem:[#allocation2 + $0x6f8] sm:$0xf0]  ;;  %v6031_v22 = vor.u32 %v8523_v7, %v6028_v10  ;;  %v8711_v23 = vld [vmem:[#allocation2 + $0x7ec] sm:$0xf] }
  0xf4   :  { %2043 = vmatpush.bf16.msra.mxu1 %v5999_v47  ;;  %2056 = vmatpush.bf16.msra.mxu2 %v6127_v48  ;;  %v1804_v31 = vpop.f32.mrf.mxu2  ;;  %v8563_v47 = vld [vmem:[#allocation2 + $0x34c] sm:$0xf]  ;;  %v6188_v48 = vld [vmem:[#allocation2 + $0x358] sm:$0xf0]  ;;  %v6655_v28 = vor.u32 %v8679_v19, %v6652_v20 }
  0xf5   :  { %2069 = vmatpush.bf16.msra.mxu3 %v6255_v53  ;;  %v1805_v45 = vadd.f32 %v1804_v31, %v1792_v24  ;;  %v1817_v46 = vpop.f32.mrf.mxu3  ;;  %v6063_v53 = vor.u32 %v8531_v43, %v6060_v44  ;;  %v6191_v58 = vor.u32 %v8563_v47, %v6188_v48  ;;  %v6780_v24 = vld [vmem:[#allocation2 + $0x7f8] sm:$0xf0]  ;;  %v8611_v29 = vld [vmem:[#allocation2 + $0x4cc] sm:$0xf] }
  0xf6   :  { %v8643_v31 = vld [vmem:[#allocation2 + $0x5cc] sm:$0xf]  ;;  %v6636_v44 = vld [vmem:[#allocation2 + $0x6d8] sm:$0xf0]  ;;  %v6383_v47 = vor.u32 %v8611_v29, %v6380_v30 }
  0xf7   :  { %2031 = vmatpush.bf16.msra.mxu0 %v5855_v59  ;;  %v9540_v50 = vadd.f32 %v1817_v46, %v1805_v45  ;;  %v1780_v51 = vpop.f32.mrf.mxu0  ;;  %v5916_v59 = vld [vmem:[#allocation2 + $0x138] sm:$0xf0]  ;;  %v8675_v43 = vld [vmem:[#allocation2 + $0x6cc] sm:$0xf]  ;;  %v6511_v48 = vor.u32 %v8643_v31, %v6508_v39 }
  0xf8   :  { %2044 = vmatpush.bf16.msra.mxu1 %v5983_v61  ;;  %2057 = vmatpush.bf16.msra.mxu2 %v6111_v62  ;;  %v1793_v57 = vpop.f32.mrf.mxu1  ;;  %v6044_v61 = vld [vmem:[#allocation2 + $0x238] sm:$0xf0]  ;;  %v8559_v62 = vld [vmem:[#allocation2 + $0x32c] sm:$0xf] }
  0xf9   :  { %2070 = vmatpush.bf16.msra.mxu3 %v6239_v3  ;;  %v5919_v3 = vor.u32 %v8495_v56, %v5916_v59  ;;  %v6047_v4 = vor.u32 %v8527_v60, %v6044_v61  ;;  %v8707_v45 = vld [vmem:[#allocation2 + $0x7cc] sm:$0xf]  ;;  %v6764_v46 = vld [vmem:[#allocation2 + $0x7d8] sm:$0xf0] }
  0xfa   :  { %v8607_v51 = vld [vmem:[#allocation2 + $0x4ac] sm:$0xf]  ;;  %v6767_v54 = vor.u32 %v8707_v45, %v6764_v46  ;;  %v6492_v55 = vld [vmem:[#allocation2 + $0x5b8] sm:$0xf0] }
  0xfb   :  { %2032 = vmatpush.bf16.msra.mxu0 %v5839_v9  ;;  %v6175_v9 = vor.u32 %v8559_v62, %v6172_v63  ;;  %v8671_v56 = vld [vmem:[#allocation2 + $0x6ac] sm:$0xf]  ;;  %v6620_v57 = vld [vmem:[#allocation2 + $0x6b8] sm:$0xf0] }
  0xfc   :  { %2045 = vmatpush.bf16.msra.mxu1 %v5967_v11  ;;  %2058 = vmatpush.bf16.msra.mxu2 %v6095_v12  ;;  %v1806_v8 = vpop.f32.mrf.mxu2  ;;  %v8555_v11 = vld [vmem:[#allocation2 + $0x30c] sm:$0xf]  ;;  %v6156_v12 = vld [vmem:[#allocation2 + $0x318] sm:$0xf0]  ;;  %v6623_v62 = vor.u32 %v8671_v56, %v6620_v57  ;;  %v430_v56 = vperm.slane %v9533_v35, 1 }
  0xfd   :  { %2071 = vmatpush.bf16.msra.mxu3 %v6223_v18  ;;  %v1819_v13 = vpop.f32.mrf.mxu3  ;;  %v6524_v18 = vld [vmem:[#allocation2 + $0x5f8] sm:$0xf0]  ;;  %v8603_v63 = vld [vmem:[#allocation2 + $0x48c] sm:$0xf]  ;;  %v8729_v35 = vld [vmem:[#allocation5 + $0x74] sm:$0xf0] }
  0xfe   :  { %v6748_v59 = vld [vmem:[#allocation2 + $0x7b8] sm:$0xf0]  ;;  %v8699_v5 = vld [vmem:[#allocation2 + $0x78c] sm:$0xf] }
  0xff   :  { %2033 = vmatpush.bf16.msra.mxu0 %v5823_v25  ;;  %v6159_v25 = vor.u32 %v8555_v11, %v6156_v12  ;;  %v6476_v2 = vld [vmem:[#allocation2 + $0x598] sm:$0xf0]  ;;  %v8599_v8 = vld [vmem:[#allocation2 + $0x46c] sm:$0xf] }
 0x100   :  { %2046 = vmatpush.bf16.msra.mxu1 %v5951_v26  ;;  %2059 = vmatpush.bf16.msra.mxu2 %v6079_v27  ;;  %v6399_v26 = vor.u32 %v8615_v14, %v6396_v15  ;;  %v6527_v27 = vor.u32 %v8647_v16, %v6524_v18  ;;  %v8631_v10 = vld [vmem:[#allocation2 + $0x56c] sm:$0xf]  ;;  %v6460_v13 = vld [vmem:[#allocation2 + $0x578] sm:$0xf0] }
 0x101   :  { %2072 = vmatpush.bf16.msra.mxu3 %v6207_v36  ;;  %v6783_v36 = vor.u32 %v8711_v23, %v6780_v24  ;;  %v8663_v14 = vld [vmem:[#allocation2 + $0x66c] sm:$0xf]  ;;  %v6588_v15 = vld [vmem:[#allocation2 + $0x678] sm:$0xf0]  ;;  %v6463_v19 = vor.u32 %v8631_v10, %v6460_v13 }
 0x102   :  { %v8695_v16 = vld [vmem:[#allocation2 + $0x76c] sm:$0xf]  ;;  %v6591_v20 = vor.u32 %v8663_v14, %v6588_v15  ;;  %v6700_v31 = vld [vmem:[#allocation2 + $0x758] sm:$0xf0] }
 0x103   :  { %2034 = vmatpush.bf16.msra.mxu0 %v5807_v49  ;;  %v6639_v49 = vor.u32 %v8675_v43, %v6636_v44  ;;  %v8627_v23 = vld [vmem:[#allocation2 + $0x54c] sm:$0xf]  ;;  %v6300_v46 = vld [vmem:[#allocation2 + $0x438] sm:$0xf0] }
 0x104   :  { %2047 = vmatpush.bf16.msra.mxu1 %v5935_v52  ;;  %2060 = vmatpush.bf16.msra.mxu2 %v6063_v53  ;;  %v6364_v52 = vld [vmem:[#allocation2 + $0x4b8] sm:$0xf0]  ;;  %v8639_v53 = vld [vmem:[#allocation2 + $0x5ac] sm:$0xf] }
 0x105   :  { %2073 = vmatpush.bf16.msra.mxu3 %v6191_v58  ;;  %v8703_v58 = vld [vmem:[#allocation2 + $0x7ac] sm:$0xf]  ;;  %v6367_v60 = vor.u32 %v8607_v51, %v6364_v52  ;;  %v6495_v61 = vor.u32 %v8639_v53, %v6492_v55  ;;  %v6428_v51 = vld [vmem:[#allocation2 + $0x538] sm:$0xf0] }
 0x106   :  { %v6751_v1 = vor.u32 %v8703_v58, %v6748_v59  ;;  %v8691_v30 = vld [vmem:[#allocation2 + $0x74c] sm:$0xf]  ;;  %v6556_v53 = vld [vmem:[#allocation2 + $0x638] sm:$0xf0] }
 0x107   :  { %2035 = vmatpush.bf16.msra.mxu0 %v5791_v0  ;;  %v6348_v0 = vld [vmem:[#allocation2 + $0x498] sm:$0xf0]  ;;  %v8591_v45 = vld [vmem:[#allocation2 + $0x42c] sm:$0xf] }
 0x108   :  { %2048 = vmatpush.bf16.msra.mxu1 %v5919_v3  ;;  %2061 = vmatpush.bf16.msra.mxu2 %v6047_v4  ;;  %v8667_v3 = vld [vmem:[#allocation2 + $0x68c] sm:$0xf]  ;;  %v6604_v4 = vld [vmem:[#allocation2 + $0x698] sm:$0xf0]  ;;  %v6303_v57 = vor.u32 %v8591_v45, %v6300_v46  ;;  %v6810_v45 = vld [vmem:[#allocation5 + $0x30] sm:$0xf] }
 0x109   :  { %2074 = vmatpush.bf16.msra.mxu3 %v6175_v9  ;;  %v6607_v7 = vor.u32 %v8667_v3, %v6604_v4  ;;  %v6332_v9 = vld [vmem:[#allocation2 + $0x478] sm:$0xf0]  ;;  %v8655_v52 = vld [vmem:[#allocation2 + $0x62c] sm:$0xf]  ;;  %v6874_v46 = vld [vmem:[#allocation5 + $0xb0] sm:$0xf] }
 0x10a   :  { %v6335_v18 = vor.u32 %v8599_v8, %v6332_v9  ;;  %v6684_v55 = vld [vmem:[#allocation2 + $0x738] sm:$0xf0]  ;;  %v8587_v58 = vld [vmem:[#allocation2 + $0x40c] sm:$0xf]  ;;  %v8745_v8 = vld [vmem:[#allocation5 + $0xf4] sm:$0xf0] }
 0x10b   :  { %2036 = vmatpush.bf16.msra.mxu0 %v5775_v17  ;;  %v9546_v6 = vpop.f32.mrf.mxu0  ;;  %v6716_v17 = vld [vmem:[#allocation2 + $0x778] sm:$0xf0]  ;;  %v8683_v3 = vld [vmem:[#allocation2 + $0x70c] sm:$0xf] }
 0x10c   :  { %2049 = vmatpush.bf16.msra.mxu1 %v5903_v21  ;;  %2062 = vmatpush.bf16.msra.mxu2 %v6031_v22  ;;  %v8595_v21 = vld [vmem:[#allocation2 + $0x44c] sm:$0xf]  ;;  %v6316_v22 = vld [vmem:[#allocation2 + $0x458] sm:$0xf0] }
 0x10d   :  { %2075 = vmatpush.bf16.msra.mxu3 %v6159_v25  ;;  %v6719_v25 = vor.u32 %v8695_v16, %v6716_v17  ;;  %v6834_v16 = vld [vmem:[#allocation5 + $0x60] sm:$0xf]  ;;  %v8727_v17 = vld [vmem:[#allocation5 + $0x64] sm:$0xf0] }
 0x10e   :  { %2037 = vmatmul.bf16.vlgmr.msra.gmra.mxu0 %v9493_v34  ;;  %v6732_v34 = vld [vmem:[#allocation2 + $0x798] sm:$0xf0]  ;;  %v9548_v11 = vpop.f32.mrf.mxu1 }
 0x10f   :  { %2081 = vmatpush.bf16.msrb.mxu0 %v6399_v26  ;;  %2063 = vmatmul.bf16.vlgmr.msra.gmra.mxu2 %v9491_v33  ;;  %v8635_v33 = vld [vmem:[#allocation2 + $0x58c] sm:$0xf]  ;;  %v6735_v12 = vor.u32 %v8699_v5, %v6732_v34  ;;  %v6444_v26 = vld [vmem:[#allocation2 + $0x558] sm:$0xf0]  ;;  %v6842_v34 = vld [vmem:[#allocation5 + $0x70] sm:$0xf] }
 0x110   :  { %2094 = vmatpush.bf16.msrb.mxu1 %v6527_v27  ;;  %2107 = vmatpush.bf16.msrb.mxu2 %v6655_v28  ;;  %v8659_v27 = vld [vmem:[#allocation2 + $0x64c] sm:$0xf]  ;;  %v6572_v28 = vld [vmem:[#allocation2 + $0x658] sm:$0xf0]  ;;  %v6447_v43 = vor.u32 %v8627_v23, %v6444_v26  ;;  %v6843_v13 = vor.u32 %v8729_v35, %v6842_v34  ;;  %v8725_v23 = vld [vmem:[#allocation5 + $0x54] sm:$0xf0] }
 0x111   :  { %2120 = vmatpush.bf16.msrb.mxu3 %v6783_v36  ;;  %2050 = vmatmul.bf16.vlgmr.msra.gmra.mxu1 %v9497_v42  ;;  %v6479_v42 = vor.u32 %v8635_v33, %v6476_v2  ;;  %v6319_v36 = vor.u32 %v8595_v21, %v6316_v22  ;;  %v6575_v44 = vor.u32 %v8659_v27, %v6572_v28  ;;  %v6540_v2 = vld [vmem:[#allocation2 + $0x618] sm:$0xf0]  ;;  %v6826_v22 = vld [vmem:[#allocation5 + $0x50] sm:$0xf] }
 0x112   :  { %2076 = vmatmul.bf16.vlgmr.msra.gmra.mxu3 %v9495_v41  ;;  %v6351_v41 = vor.u32 %v8603_v63, %v6348_v0  ;;  %v9550_v24 = vpop.f32.mrf.mxu2  ;;  %v6412_v63 = vld [vmem:[#allocation2 + $0x518] sm:$0xf0]  ;;  %v6827_v26 = vor.u32 %v8725_v23, %v6826_v22  ;;  %v6858_v34 = vld [vmem:[#allocation5 + $0x90] sm:$0xf]  ;;  %v8744_v22 = vld [vmem:[#allocation5 + $0xf4] sm:$0xf] }
 0x113   :  { %2082 = vmatpush.bf16.msrb.mxu0 %v6383_v47  ;;  %v1832_v39 = vpop.f32.mrf.mxu0  ;;  %v8623_v47 = vld [vmem:[#allocation2 + $0x52c] sm:$0xf]  ;;  %v6668_v5 = vld [vmem:[#allocation2 + $0x718] sm:$0xf0] }
 0x114   :  { %2095 = vmatpush.bf16.msrb.mxu1 %v6511_v48  ;;  %2108 = vmatpush.bf16.msrb.mxu2 %v6639_v49  ;;  %v6703_v49 = vor.u32 %v8691_v30, %v6700_v31  ;;  %v6431_v59 = vor.u32 %v8623_v47, %v6428_v51  ;;  %v8723_v30 = vld [vmem:[#allocation5 + $0x44] sm:$0xf0]  ;;  %v6882_v31 = vld [vmem:[#allocation5 + $0xc0] sm:$0xf]  ;;  %v8761_v39 = vld [vmem:[#allocation5 + $0x174] sm:$0xf0] }
 0x115   :  { %2121 = vmatpush.bf16.msrb.mxu3 %v6767_v54  ;;  %v9552_v29 = vpop.f32.mrf.mxu3  ;;  %v8687_v54 = vld [vmem:[#allocation2 + $0x72c] sm:$0xf]  ;;  %v8759_v51 = vld [vmem:[#allocation5 + $0x164] sm:$0xf0]  ;;  %v6908_v23 = vld [vmem:[#allocation5 + $0xf8] sm:$0xf0] }
 0x116   :  { %v1845_v48 = vpop.f32.mrf.mxu1  ;;  %v6687_v33 = vor.u32 %v8687_v54, %v6684_v55 }
 0x117   :  { %2083 = vmatpush.bf16.msrb.mxu0 %v6367_v60  ;;  %v6559_v60 = vor.u32 %v8655_v52, %v6556_v53 }
 0x118   :  { %2096 = vmatpush.bf16.msrb.mxu1 %v6495_v61  ;;  %2109 = vmatpush.bf16.msrb.mxu2 %v6623_v62  ;;  %v6284_v61 = vld [vmem:[#allocation2 + $0x418] sm:$0xf0]  ;;  %v8619_v62 = vld [vmem:[#allocation2 + $0x50c] sm:$0xf] }
 0x119   :  { %2122 = vmatpush.bf16.msrb.mxu3 %v6751_v1  ;;  %v8651_v1 = vld [vmem:[#allocation2 + $0x60c] sm:$0xf]  ;;  %v6415_v9 = vor.u32 %v8619_v62, %v6412_v63  ;;  %v6954_v62 = vld [vmem:[#allocation5 + $0x150] sm:$0xf]  ;;  %v8757_v63 = vld [vmem:[#allocation5 + $0x154] sm:$0xf0] }
 0x11a   :  { %v1858_v0 = vpop.f32.mrf.mxu2  ;;  %v6543_v10 = vor.u32 %v8651_v1, %v6540_v2 }
 0x11b   :  { %2084 = vmatpush.bf16.msrb.mxu0 %v6351_v41  ;;  %v1831_v41 = vadd.f32 %v9546_v6, %v430_v56  ;;  %v6835_v6 = vor.u32 %v8727_v17, %v6834_v16  ;;  %v6802_v56 = vld [vmem:[#allocation5 + $0x20] sm:$0xf]  ;;  %v6955_v0 = vor.u32 %v8757_v63, %v6954_v62  ;;  %v8731_v16 = vld [vmem:[#allocation5 + $0x84] sm:$0xf0]  ;;  %v8728_v17 = vld [vmem:[#allocation5 + $0x74] sm:$0xf] }
 0x11c   :  { %2097 = vmatpush.bf16.msrb.mxu1 %v6479_v42  ;;  %2110 = vmatpush.bf16.msrb.mxu2 %v6607_v7  ;;  %v6287_v42 = vor.u32 %v8587_v58, %v6284_v61  ;;  %v6906_v7 = vld [vmem:[#allocation5 + $0xf0] sm:$0xf]  ;;  %v6866_v58 = vld [vmem:[#allocation5 + $0xa0] sm:$0xf]  ;;  %v8738_v62 = vld [vmem:[#allocation5 + $0xc4] sm:$0xf] }
 0x11d   :  { %2123 = vmatpush.bf16.msrb.mxu3 %v6735_v12  ;;  %v1871_v4 = vpop.f32.mrf.mxu3  ;;  %v6671_v12 = vor.u32 %v8683_v3, %v6668_v5  ;;  %v6907_v14 = vor.u32 %v8745_v8, %v6906_v7  ;;  %v1844_v15 = vadd.f32 %v9548_v11, %v1831_v41  ;;  %v6890_v11 = vld [vmem:[#allocation5 + $0xd0] sm:$0xf]  ;;  %v8717_v5 = vld [vmem:[#allocation5 + $0x14] sm:$0xf0]  ;;  %v8755_v7 = vld [vmem:[#allocation5 + $0x144] sm:$0xf0] }
 0x11e   :  { %v6794_v4 = vld [vmem:[#allocation5 + $0x10] sm:$0xf]  ;;  %v8733_v41 = vld [vmem:[#allocation5 + $0x94] sm:$0xf0]  ;;  %v6884_v63 = vld [vmem:[#allocation5 + $0xc8] sm:$0xf0] }
 0x11f   :  { %2085 = vmatpush.bf16.msrb.mxu0 %v6335_v18  ;;  %v6898_v18 = vld [vmem:[#allocation5 + $0xe0] sm:$0xf]  ;;  %v1857_v21 = vadd.f32 %v9550_v24, %v1844_v15  ;;  %v8739_v24 = vld [vmem:[#allocation5 + $0xc4] sm:$0xf0] }
 0x120   :  { %2098 = vmatpush.bf16.msrb.mxu1 %v6463_v19  ;;  %2111 = vmatpush.bf16.msrb.mxu2 %v6591_v20  ;;  %v8743_v19 = vld [vmem:[#allocation5 + $0xe4] sm:$0xf0]  ;;  %v6850_v15 = vld [vmem:[#allocation5 + $0x80] sm:$0xf] }
 0x121   :  { %2124 = vmatpush.bf16.msrb.mxu3 %v6719_v25  ;;  %v6899_v20 = vor.u32 %v8743_v19, %v6898_v18  ;;  %v8741_v25 = vld [vmem:[#allocation5 + $0xd4] sm:$0xf0]  ;;  %v1870_v27 = vadd.f32 %v9552_v29, %v1857_v21  ;;  %v6844_v19 = vld [vmem:[#allocation5 + $0x78] sm:$0xf0] }
 0x122   :  { %v6891_v28 = vor.u32 %v8741_v25, %v6890_v11  ;;  %v8737_v29 = vld [vmem:[#allocation5 + $0xb4] sm:$0xf0] }
 0x123   :  { %2086 = vmatpush.bf16.msrb.mxu0 %v6319_v36  ;;  %v6970_v36 = vld [vmem:[#allocation5 + $0x170] sm:$0xf]  ;;  %v6875_v55 = vor.u32 %v8737_v29, %v6874_v46  ;;  %v8753_v21 = vld [vmem:[#allocation5 + $0x134] sm:$0xf0]  ;;  %v6828_v29 = vld [vmem:[#allocation5 + $0x58] sm:$0xf0] }
 0x124   :  { %2099 = vmatpush.bf16.msrb.mxu1 %v6447_v43  ;;  %2112 = vmatpush.bf16.msrb.mxu2 %v6575_v44  ;;  %v6971_v43 = vor.u32 %v8761_v39, %v6970_v36  ;;  %v6883_v44 = vor.u32 %v8739_v24, %v6882_v31  ;;  %v6911_v31 = vor.u32 %v8744_v22, %v6908_v23  ;;  %v6836_v24 = vld [vmem:[#allocation5 + $0x68] sm:$0xf0]  ;;  %v6930_v36 = vld [vmem:[#allocation5 + $0x120] sm:$0xf]  ;;  %v8751_v39 = vld [vmem:[#allocation5 + $0x124] sm:$0xf0] }
 0x125   :  { %2125 = vmatpush.bf16.msrb.mxu3 %v6703_v49  ;;  %v6962_v49 = vld [vmem:[#allocation5 + $0x160] sm:$0xf]  ;;  %v8749_v46 = vld [vmem:[#allocation5 + $0x114] sm:$0xf0]  ;;  %v6796_v22 = vld [vmem:[#allocation5 + $0x18] sm:$0xf0] }
 0x126   :  { %v6963_v52 = vor.u32 %v8759_v51, %v6962_v49  ;;  %v8740_v49 = vld [vmem:[#allocation5 + $0xd4] sm:$0xf] }
 0x127   :  { %2087 = vmatpush.bf16.msrb.mxu0 %v6303_v57  ;;  %v8719_v57 = vld [vmem:[#allocation5 + $0x24] sm:$0xf0]  ;;  %v8732_v23 = vld [vmem:[#allocation5 + $0x94] sm:$0xf] }
 0x128   :  { %2100 = vmatpush.bf16.msrb.mxu1 %v6431_v59  ;;  %2113 = vmatpush.bf16.msrb.mxu2 %v6559_v60  ;;  %v8735_v60 = vld [vmem:[#allocation5 + $0xa4] sm:$0xf0] }
 0x129   :  { %2126 = vmatpush.bf16.msrb.mxu3 %v6687_v33  ;;  %v6803_v33 = vor.u32 %v8719_v57, %v6802_v56  ;;  %v6867_v3 = vor.u32 %v8735_v60, %v6866_v58  ;;  %v6972_v56 = vld [vmem:[#allocation5 + $0x178] sm:$0xf0]  ;;  %v6820_v60 = vld [vmem:[#allocation5 + $0x48] sm:$0xf0] }
 0x12b   :  { %2088 = vmatpush.bf16.msrb.mxu0 %v6287_v42  ;;  %v6946_v42 = vld [vmem:[#allocation5 + $0x140] sm:$0xf] }
 0x12c   :  { %2101 = vmatpush.bf16.msrb.mxu1 %v6415_v9  ;;  %2114 = vmatpush.bf16.msrb.mxu2 %v6543_v10  ;;  %v6947_v8 = vor.u32 %v8755_v7, %v6946_v42  ;;  %v6795_v10 = vor.u32 %v8717_v5, %v6794_v4  ;;  %v8736_v4 = vld [vmem:[#allocation5 + $0xb4] sm:$0xf]  ;;  %v6964_v42 = vld [vmem:[#allocation5 + $0x168] sm:$0xf0] }
 0x12d   :  { %2127 = vmatpush.bf16.msrb.mxu3 %v6671_v12  ;;  %v6786_v12 = vld [vmem:[#allocation5] sm:$0xf] }
 0x12e   :  { %2089 = vmatmul.bf16.vlgmr.msrb.gmra.mxu0 %v9508_v37  ;;  %v6818_v37 = vld [vmem:[#allocation5 + $0x40] sm:$0xf]  ;;  %v1895_v48 = vpop.f32.mrf.mxu1 }
 0x12f   :  { %2531 = vmatpush.bf16.msra.mxu0 %v6843_v13  ;;  %2102 = vmatmul.bf16.vlgmr.msrb.gmra.mxu1 %v9512_v40  ;;  %v6819_v40 = vor.u32 %v8723_v30, %v6818_v37  ;;  %v8715_v13 = vld [vmem:[#allocation5 + $0x4] sm:$0xf0]  ;;  %v6847_v37 = vor.u32 %v8728_v17, %v6844_v19  ;;  %v8726_v30 = vld [vmem:[#allocation5 + $0x64] sm:$0xf]  ;;  %v6956_v17 = vld [vmem:[#allocation5 + $0x158] sm:$0xf0] }
 0x130   :  { %2544 = vmatpush.bf16.msra.mxu1 %v6907_v14  ;;  %2115 = vmatmul.bf16.vlgmr.msrb.gmra.mxu2 %v9506_v32  ;;  %v1882_v32 = vpop.f32.mrf.mxu0  ;;  %v6859_v14 = vor.u32 %v8733_v41, %v6858_v34  ;;  %v6876_v34 = vld [vmem:[#allocation5 + $0xb8] sm:$0xf0]  ;;  %v8758_v41 = vld [vmem:[#allocation5 + $0x164] sm:$0xf] }
 0x131   :  { %2128 = vmatmul.bf16.vlgmr.msrb.gmra.mxu3 %v9510_v38  ;;  %v8721_v38 = vld [vmem:[#allocation5 + $0x34] sm:$0xf0]  ;;  %v1883_v47 = vadd.f32 %v1882_v32, %v1870_v27  ;;  %2557 = vmatpush.bf16.msra.mxu2 %v6971_v43  ;;  %v2133_v27 = vmax.f32 %v9540_v50, 0.0  ;;  %v8742_v43 = vld [vmem:[#allocation5 + $0xe4] sm:$0xf]  ;;  %v6931_v32 = vor.u32 %v8751_v39, %v6930_v36  ;;  %v6839_v50 = vor.u32 %v8726_v30, %v6836_v24 }
 0x132   :  { %v6811_v53 = vor.u32 %v8721_v38, %v6810_v45  ;;  %v1908_v59 = vpop.f32.mrf.mxu2  ;;  %v6922_v38 = vld [vmem:[#allocation5 + $0x110] sm:$0xf]  ;;  %v6967_v7 = vor.u32 %v8758_v41, %v6964_v42  ;;  %v8714_v36 = vld [vmem:[#allocation5 + $0x4] sm:$0xf] }
 0x133   :  { %2532 = vmatpush.bf16.msra.mxu0 %v6835_v6  ;;  %v1896_v54 = vadd.f32 %v1895_v48, %v1883_v47  ;;  %v9566_v45 = vpack.c.bf16 %v2133_v27, %v2133_v27  ;;  %v8724_v48 = vld [vmem:[#allocation5 + $0x54] sm:$0xf]  ;;  %v6923_v51 = vor.u32 %v8749_v46, %v6922_v38  ;;  %v8754_v27 = vld [vmem:[#allocation5 + $0x144] sm:$0xf]  ;;  %v6852_v38 = vld [vmem:[#allocation5 + $0x88] sm:$0xf0] }
 0x134   :  { %2545 = vmatpush.bf16.msra.mxu1 %v6899_v20  ;;  %v6938_v20 = vld [vmem:[#allocation5 + $0x130] sm:$0xf]  ;;  %v6831_v57 = vor.u32 %v8724_v48, %v6828_v29  ;;  %v8750_v29 = vld [vmem:[#allocation5 + $0x124] sm:$0xf] }
 0x135   :  { %2558 = vmatpush.bf16.msra.mxu2 %v6963_v52  ;;  %v1921_v61 = vpop.f32.mrf.mxu3  ;;  %v1909_v1 = vadd.f32 %v1908_v59, %v1896_v54  ;;  %v6939_v11 = vor.u32 %v8753_v21, %v6938_v20  ;;  %v6892_v52 = vld [vmem:[#allocation5 + $0xd8] sm:$0xf0]  ;;  %v8747_v54 = vld [vmem:[#allocation5 + $0x104] sm:$0xf0]  ;;  %v8722_v59 = vld [vmem:[#allocation5 + $0x44] sm:$0xf] }
 0x136   :  { %v1897_v35 = vpop.f32.mrf.mxu1  ;;  %v6895_v58 = vor.u32 %v8740_v49, %v6892_v52  ;;  %v8716_v21 = vld [vmem:[#allocation5 + $0x14] sm:$0xf]  ;;  %v6932_v49 = vld [vmem:[#allocation5 + $0x128] sm:$0xf0] }
 0x137   :  { %2533 = vmatpush.bf16.msra.mxu0 %v6827_v26  ;;  %v1922_v9 = vadd.f32 %v1921_v61, %v1909_v1  ;;  %v6787_v26 = vor.u32 %v8715_v13, %v6786_v12  ;;  %v6887_v1 = vor.u32 %v8738_v62, %v6884_v63  ;;  %v6804_v12 = vld [vmem:[#allocation5 + $0x28] sm:$0xf0]  ;;  %v8734_v13 = vld [vmem:[#allocation5 + $0xa4] sm:$0xf]  ;;  %v6799_v30 = vor.u32 %v8716_v21, %v6796_v22  ;;  %v8767_v21 = vld [vmem:[#allocation5 + $0x1a4] sm:$0xf0] }
 0x138   :  { %2546 = vmatpush.bf16.msra.mxu1 %v6891_v28  ;;  %v1884_v2 = vpop.f32.mrf.mxu0  ;;  %v6851_v28 = vor.u32 %v8731_v16, %v6850_v15  ;;  %v8756_v16 = vld [vmem:[#allocation5 + $0x154] sm:$0xf]  ;;  %v8746_v62 = vld [vmem:[#allocation5 + $0x104] sm:$0xf]  ;;  %v6916_v63 = vld [vmem:[#allocation5 + $0x108] sm:$0xf0] }
 0x139   :  { %2559 = vmatpush.bf16.msra.mxu2 %v6955_v0  ;;  %v2134_v25 = vmax.f32 %v1922_v9, 0.0  ;;  %v8720_v2 = vld [vmem:[#allocation5 + $0x34] sm:$0xf]  ;;  %v6879_v9 = vor.u32 %v8736_v4, %v6876_v34  ;;  %v6959_v19 = vor.u32 %v8756_v16, %v6956_v17  ;;  %v8773_v34 = vld [vmem:[#allocation5 + $0x1d4] sm:$0xf0] }
 0x13a   :  { %v1910_v18 = vpop.f32.mrf.mxu2 }
 0x13b   :  { %2534 = vmatpush.bf16.msra.mxu0 %v6819_v40  ;;  %v6900_v40 = vld [vmem:[#allocation5 + $0xe8] sm:$0xf0] }
 0x13c   :  { %2547 = vmatpush.bf16.msra.mxu1 %v6883_v44  ;;  %v9564_v44 = vpack.c.bf16 %v2134_v25, %v2134_v25  ;;  %v6903_v47 = vor.u32 %v8742_v43, %v6900_v40  ;;  %v6860_v25 = vld [vmem:[#allocation5 + $0x98] sm:$0xf0]  ;;  %v6788_v43 = vld [vmem:[#allocation5 + $0x8] sm:$0xf0]  ;;  %v8752_v40 = vld [vmem:[#allocation5 + $0x134] sm:$0xf] }
 0x13d   :  { %2560 = vmatpush.bf16.msra.mxu2 %v6947_v8  ;;  %v1923_v6 = vpop.f32.mrf.mxu3  ;;  %v6863_v39 = vor.u32 %v8732_v23, %v6860_v25 }
 0x13f   :  { %2535 = vmatpush.bf16.msra.mxu0 %v6811_v53  ;;  %v6914_v53 = vld [vmem:[#allocation5 + $0x100] sm:$0xf] }
 0x140   :  { %2548 = vmatpush.bf16.msra.mxu1 %v6875_v55  ;;  %v8760_v55 = vld [vmem:[#allocation5 + $0x174] sm:$0xf]  ;;  %v6915_v61 = vor.u32 %v8747_v54, %v6914_v53  ;;  %v6791_v53 = vor.u32 %v8714_v36, %v6788_v43  ;;  %v8777_v54 = vld [vmem:[#allocation5 + $0x1f4] sm:$0xf0] }
 0x141   :  { %2561 = vmatpush.bf16.msra.mxu2 %v6939_v11  ;;  %v6975_v0 = vor.u32 %v8760_v55, %v6972_v56  ;;  %v8776_v36 = vld [vmem:[#allocation5 + $0x1f4] sm:$0xf] }
 0x143   :  { %2536 = vmatpush.bf16.msra.mxu0 %v6803_v33  ;;  %v6823_v33 = vor.u32 %v8722_v59, %v6820_v60  ;;  %v6924_v59 = vld [vmem:[#allocation5 + $0x118] sm:$0xf0] }
 0x144   :  { %2549 = vmatpush.bf16.msra.mxu1 %v6867_v3  ;;  %v6812_v3 = vld [vmem:[#allocation5 + $0x38] sm:$0xf0] }
 0x145   :  { %2562 = vmatpush.bf16.msra.mxu2 %v6931_v32  ;;  %v6815_v8 = vor.u32 %v8720_v2, %v6812_v3  ;;  %v6940_v32 = vld [vmem:[#allocation5 + $0x138] sm:$0xf0]  ;;  %v7026_v2 = vld [vmem:[#allocation5 + $0x1e0] sm:$0xf]  ;;  %v8775_v3 = vld [vmem:[#allocation5 + $0x1e4] sm:$0xf0] }
 0x146   :  { %v7027_v4 = vor.u32 %v8775_v3, %v7026_v2  ;;  %v6988_v2 = vld [vmem:[#allocation5 + $0x198] sm:$0xf0] }
 0x147   :  { %2537 = vmatpush.bf16.msra.mxu0 %v6795_v10  ;;  %v8718_v10 = vld [vmem:[#allocation5 + $0x24] sm:$0xf] }
 0x148   :  { %2550 = vmatpush.bf16.msra.mxu1 %v6859_v14  ;;  %v6868_v14 = vld [vmem:[#allocation5 + $0xa8] sm:$0xf0]  ;;  %v6807_v6 = vor.u32 %v8718_v10, %v6804_v12 }
 0x149   :  { %2563 = vmatpush.bf16.msra.mxu2 %v6923_v51  ;;  %v6871_v20 = vor.u32 %v8734_v13, %v6868_v14  ;;  %v7034_v51 = vld [vmem:[#allocation5 + $0x1f0] sm:$0xf] }
 0x14a   :  { %v7035_v56 = vor.u32 %v8777_v54, %v7034_v51  ;;  %v7002_v14 = vld [vmem:[#allocation5 + $0x1b0] sm:$0xf] }
 0x14b   :  { %2538 = vmatpush.bf16.msra.mxu0 %v6787_v26  ;;  %v1934_v5 = vpop.f32.mrf.mxu0 }
 0x14c   :  { %2551 = vmatpush.bf16.msra.mxu1 %v6851_v28  ;;  %v6948_v28 = vld [vmem:[#allocation5 + $0x148] sm:$0xf0]  ;;  %2570 = vmatpush.bf16.msra.mxu3 %v7035_v56 }
 0x14d   :  { %2564 = vmatpush.bf16.msra.mxu2 %v6915_v61 }
 0x14e   :  { %2539 = vmatmul.bf16.vlgmr.msra.gmra.mxu0 %v9566_v45  ;;  %v9570_v35 = vpop.f32.mrf.mxu1 }
 0x14f   :  { %2583 = vmatpush.bf16.msrb.mxu0 %v6847_v37  ;;  %2552 = vmatmul.bf16.vlgmr.msra.gmra.mxu1 %v9564_v44  ;;  %v6951_v37 = vor.u32 %v8754_v27, %v6948_v28  ;;  %v8765_v27 = vld [vmem:[#allocation5 + $0x194] sm:$0xf0] }
 0x150   :  { %2596 = vmatpush.bf16.msrb.mxu1 %v6911_v31  ;;  %v9575_v31 = vld [vmem:[%s9954_s1] sm:$0xf]  ;;  %2571 = vmatpush.bf16.msra.mxu3 %v7027_v4 }
 0x151   :  { %2609 = vmatpush.bf16.msrb.mxu2 %v6975_v0  ;;  %v431_v24 = vperm.slane %v9575_v31, 2 }
 0x152   :  { %v1960_v15 = vpop.f32.mrf.mxu2 }
 0x153   :  { %2584 = vmatpush.bf16.msrb.mxu0 %v6839_v50  ;;  %v1936_v11 = vpop.f32.mrf.mxu0  ;;  %v8730_v50 = vld [vmem:[#allocation5 + $0x84] sm:$0xf]  ;;  %v1935_v52 = vadd.f32 %v1934_v5, %v431_v24  ;;  %v7018_v5 = vld [vmem:[#allocation5 + $0x1d0] sm:$0xf] }
 0x154   :  { %2597 = vmatpush.bf16.msrb.mxu1 %v6903_v47  ;;  %v6943_v47 = vor.u32 %v8752_v40, %v6940_v32  ;;  %v6855_v55 = vor.u32 %v8730_v50, %v6852_v38  ;;  %v8774_v40 = vld [vmem:[#allocation5 + $0x1e4] sm:$0xf]  ;;  %v7028_v32 = vld [vmem:[#allocation5 + $0x1e8] sm:$0xf0] }
 0x155   :  { %2610 = vmatpush.bf16.msrb.mxu2 %v6967_v7  ;;  %v1973_v18 = vpop.f32.mrf.mxu3  ;;  %v1948_v60 = vadd.f32 %v9570_v35, %v1935_v52  ;;  %v7019_v7 = vor.u32 %v8773_v34, %v7018_v5  ;;  %v7031_v38 = vor.u32 %v8774_v40, %v7028_v32  ;;  %v8770_v52 = vld [vmem:[#allocation5 + $0x1c4] sm:$0xf]  ;;  %v6980_v34 = vld [vmem:[#allocation5 + $0x188] sm:$0xf0]  ;;  %v8793_v40 = vld [vmem:[%s9956_s28 + $0x78] sm:$0xff] }
 0x156   :  { %v1949_v26 = vpop.f32.mrf.mxu1  ;;  %v8762_v5 = vld [vmem:[#allocation5 + $0x184] sm:$0xf]  ;;  %v8784_v32 = vld [vmem:[%s9956_s28 + $0x30] sm:$0xff] }
 0x157   :  { %2585 = vmatpush.bf16.msrb.mxu0 %v6831_v57  ;;  %v6935_v57 = vor.u32 %v8750_v29, %v6932_v49  ;;  %v1961_v0 = vadd.f32 %v1960_v15, %v1948_v60  ;;  %2572 = vmatpush.bf16.msra.mxu3 %v7019_v7  ;;  %v8769_v15 = vld [vmem:[#allocation5 + $0x1b4] sm:$0xf0]  ;;  %v6986_v26 = vld [vmem:[#allocation5 + $0x190] sm:$0xf] }
 0x158   :  { %2598 = vmatpush.bf16.msrb.mxu1 %v6895_v58  ;;  %v8748_v58 = vld [vmem:[#allocation5 + $0x114] sm:$0xf]  ;;  %v6987_v28 = vor.u32 %v8765_v27, %v6986_v26 }
 0x159   :  { %2611 = vmatpush.bf16.msrb.mxu2 %v6959_v19  ;;  %v6927_v61 = vor.u32 %v8748_v58, %v6924_v59  ;;  %v7003_v19 = vor.u32 %v8769_v15, %v7002_v14  ;;  %v7004_v58 = vld [vmem:[#allocation5 + $0x1b8] sm:$0xf0]  ;;  %v432_v59 = vperm.slane %v9575_v31, 3 }
 0x15a   :  { %v1962_v46 = vpop.f32.mrf.mxu2 }
 0x15b   :  { %2586 = vmatpush.bf16.msrb.mxu0 %v6823_v33  ;;  %v6919_v33 = vor.u32 %v8746_v62, %v6916_v63  ;;  %v6996_v62 = vld [vmem:[#allocation5 + $0x1a8] sm:$0xf0] }
 0x15c   :  { %2599 = vmatpush.bf16.msrb.mxu1 %v6887_v1  ;;  %v1974_v1 = vadd.f32 %v1973_v18, %v1961_v0 }
 0x15d   :  { %2612 = vmatpush.bf16.msrb.mxu2 %v6951_v37  ;;  %v1975_v48 = vpop.f32.mrf.mxu3  ;;  %v6978_v37 = vld [vmem:[#allocation5 + $0x180] sm:$0xf] }
 0x15e   :  { %v7020_v48 = vld [vmem:[#allocation5 + $0x1d8] sm:$0xf0] }
 0x15f   :  { %2587 = vmatpush.bf16.msrb.mxu0 %v6815_v8  ;;  %v7010_v8 = vld [vmem:[#allocation5 + $0x1c0] sm:$0xf] }
 0x160   :  { %2600 = vmatpush.bf16.msrb.mxu1 %v6879_v9  ;;  %v8771_v9 = vld [vmem:[#allocation5 + $0x1c4] sm:$0xf0] }
 0x161   :  { %2613 = vmatpush.bf16.msrb.mxu2 %v6943_v47  ;;  %v8772_v47 = vld [vmem:[#allocation5 + $0x1d4] sm:$0xf] }
 0x162   :  { %v7023_v29 = vor.u32 %v8772_v47, %v7020_v48  ;;  %v8782_v47 = vld [vmem:[%s9956_s28 + $0x20] sm:$0xff]  ;;  %v8781_v48 = vld [vmem:[%s9956_s28 + $0x18] sm:$0xff] }
 0x163   :  { %2588 = vmatpush.bf16.msrb.mxu0 %v6807_v6 }
 0x164   :  { %2601 = vmatpush.bf16.msrb.mxu1 %v6871_v20  ;;  %v6994_v20 = vld [vmem:[#allocation5 + $0x1a0] sm:$0xf] }
 0x165   :  { %2614 = vmatpush.bf16.msrb.mxu2 %v6935_v57  ;;  %v6995_v11 = vor.u32 %v8767_v21, %v6994_v20  ;;  %v8768_v57 = vld [vmem:[#allocation5 + $0x1b4] sm:$0xf] }
 0x166   :  { %v7007_v60 = vor.u32 %v8768_v57, %v7004_v58  ;;  %v8789_v57 = vld [vmem:[%s9956_s28 + $0x58] sm:$0xff]  ;;  %v8788_v58 = vld [vmem:[%s9956_s28 + $0x50] sm:$0xff] }
 0x167   :  { %2589 = vmatpush.bf16.msrb.mxu0 %v6799_v30  ;;  %v8763_v30 = vld [vmem:[#allocation5 + $0x184] sm:$0xf0] }
 0x168   :  { %2602 = vmatpush.bf16.msrb.mxu1 %v6863_v39  ;;  %v6979_v24 = vor.u32 %v8763_v30, %v6978_v37  ;;  %v7036_v39 = vld [vmem:[#allocation5 + $0x1f8] sm:$0xf0] }
 0x169   :  { %2615 = vmatpush.bf16.msrb.mxu2 %v6927_v61  ;;  %v7039_v43 = vor.u32 %v8776_v36, %v7036_v39  ;;  %v8766_v61 = vld [vmem:[#allocation5 + $0x1a4] sm:$0xf] }
 0x16b   :  { %2590 = vmatpush.bf16.msrb.mxu0 %v6791_v53  ;;  %v1986_v35 = vpop.f32.mrf.mxu0  ;;  %v7012_v53 = vld [vmem:[#allocation5 + $0x1c8] sm:$0xf0] }
 0x16c   :  { %2603 = vmatpush.bf16.msrb.mxu1 %v6855_v55  ;;  %v1987_v41 = vadd.f32 %v1986_v35, %v1974_v1  ;;  %v7015_v55 = vor.u32 %v8770_v52, %v7012_v53  ;;  %v8764_v1 = vld [vmem:[#allocation5 + $0x194] sm:$0xf]  ;;  %v8779_v53 = vld [vmem:[%s9956_s28 + $0x8] sm:$0xff] }
 0x16d   :  { %2616 = vmatpush.bf16.msrb.mxu2 %v6919_v33  ;;  %v6999_v33 = vor.u32 %v8766_v61, %v6996_v62  ;;  %v6991_v4 = vor.u32 %v8764_v1, %v6988_v2 }
 0x16e   :  { %2591 = vmatmul.bf16.vlgmr.msrb.gmra.mxu0 %v9566_v45  ;;  %v1999_v42 = vpop.f32.mrf.mxu1 }
 0x16f   :  { %2604 = vmatmul.bf16.vlgmr.msrb.gmra.mxu1 %v9564_v44  ;;  %v2000_v45 = vadd.f32 %v1999_v42, %v1987_v41  ;;  %v7011_v44 = vor.u32 %v8771_v9, %v7010_v8  ;;  %v6983_v41 = vor.u32 %v8762_v5, %v6980_v34 }
 0x170   :  { %2784 = vmatpush.bf16.msra.mxu1 %v8793_v40 }
 0x171   :  { %2573 = vmatpush.bf16.msra.mxu3 %v7011_v44 }
 0x172   :  { %v2012_v10 = vpop.f32.mrf.mxu2 }
 0x173   :  { %v2013_v12 = vadd.f32 %v2012_v10, %v2000_v45  ;;  %v1988_v17 = vpop.f32.mrf.mxu0 }
 0x175   :  { %v2025_v13 = vpop.f32.mrf.mxu3  ;;  %2574 = vmatpush.bf16.msra.mxu3 %v7003_v19 }
 0x176   :  { %v2026_v16 = vadd.f32 %v2025_v13, %v2013_v12  ;;  %v2001_v18 = vpop.f32.mrf.mxu1 }
 0x178   :  { %v2135_v6 = vmax.f32 %v2026_v16, 0.0 }
 0x179   :  { %2575 = vmatpush.bf16.msra.mxu3 %v6995_v11 }
 0x17a   :  { %v2204_v22 = vpack.c.bf16 %v2135_v6, %v2135_v6  ;;  %v2014_v23 = vpop.f32.mrf.mxu2  ;;  %v2201_v6 = vld [vmem:[%s9955_s29] sm:$0x3]  ;;  %s9966_s29 = sld [smem:[#allocation28_spill]] }
 0x17b   :  { %v2207_v20 = vperm.slane %v2201_v6, 0  ;;  %v2208_v27 = vperm.slane %v2201_v6, 1 }
 0x17c   :  { %2565 = vmatmul.bf16.vlgmr.msra.gmra.mxu2 %v2204_v22 }
 0x17d   :  { %v2027_v25 = vpop.f32.mrf.mxu3  ;;  %2576 = vmatpush.bf16.msra.mxu3 %v6987_v28 }
 0x180   :  { %s5741_s0 = sshll.u32 %s9966_s29, 4  ;;  %s5742_s0 = int_to_ptr.hbm [resolvable:$true] %s5741_s0 }
 0x181   :  { %2577 = vmatpush.bf16.msra.mxu3 %v6979_v24 }
 0x185   :  { %2622 = vmatpush.bf16.msrb.mxu3 %v7039_v43  ;;  %v8785_v43 = vld [vmem:[%s9956_s28 + $0x38] sm:$0xff] }
 0x186   :  { %2771 = vmatpush.bf16.msra.mxu0 %v8785_v43 }
 0x189   :  { %2623 = vmatpush.bf16.msrb.mxu3 %v7031_v38  ;;  %v8783_v38 = vld [vmem:[%s9956_s28 + $0x28] sm:$0xff] }
 0x18a   :  { %2772 = vmatpush.bf16.msra.mxu0 %v8784_v32 }
 0x18b   :  { %v2038_v50 = vpop.f32.mrf.mxu0 }
 0x18c   :  { %2617 = vmatmul.bf16.vlgmr.msrb.gmra.mxu2 %v2204_v22  ;;  %v2039_v3 = vadd.f32 %v2038_v50, %v432_v59  ;;  %v8792_v50 = vld [vmem:[%s9956_s28 + $0x70] sm:$0xff]  ;;  %v8787_v59 = vld [vmem:[%s9956_s28 + $0x48] sm:$0xff] }
 0x18d   :  { %2624 = vmatpush.bf16.msrb.mxu3 %v7023_v29  ;;  %2785 = vmatpush.bf16.msra.mxu1 %v8792_v50 }
 0x18e   :  { %v2051_v46 = vpop.f32.mrf.mxu1  ;;  %2773 = vmatpush.bf16.msra.mxu0 %v8783_v38  ;;  %v8802_v38 = vld [vmem:[%s9924_s14 + $0x8] sm:$0xff] }
 0x18f   :  { %v2052_v35 = vadd.f32 %v2051_v46, %v2039_v3 }
 0x191   :  { %2625 = vmatpush.bf16.msrb.mxu3 %v7015_v55  ;;  %v8778_v55 = vld [vmem:[%s9956_s28] sm:$0xff] }
 0x192   :  { %v2064_v49 = vpop.f32.mrf.mxu2  ;;  %2774 = vmatpush.bf16.msra.mxu0 %v8782_v47  ;;  %v7170_v47 = vld [vmem:[%s9926_s16 + $0x30] sm:$0xf] }
 0x193   :  { %v2040_v54 = vpop.f32.mrf.mxu0  ;;  %v2065_v42 = vadd.f32 %v2064_v49, %v2052_v35  ;;  %v8780_v49 = vld [vmem:[%s9956_s28 + $0x10] sm:$0xff] }
 0x194   :  { %v8791_v54 = vld [vmem:[%s9956_s28 + $0x68] sm:$0xff] }
 0x195   :  { %v2077_v51 = vpop.f32.mrf.mxu3  ;;  %2626 = vmatpush.bf16.msrb.mxu3 %v7007_v60  ;;  %2786 = vmatpush.bf16.msra.mxu1 %v8791_v54  ;;  %v8786_v60 = vld [vmem:[%s9956_s28 + $0x40] sm:$0xff] }
 0x196   :  { %v2053_v56 = vpop.f32.mrf.mxu1  ;;  %v2078_v31 = vadd.f32 %v2077_v51, %v2065_v42  ;;  %2775 = vmatpush.bf16.msra.mxu0 %v8781_v48  ;;  %v8796_v42 = vld [vmem:[%s9957_s6 + $0x10] sm:$0xff]  ;;  %v8810_v48 = vld [vmem:[%s9926_s16 + $0x34] sm:$0xf0] }
 0x197   :  { %v8790_v56 = vld [vmem:[%s9956_s28 + $0x60] sm:$0xff]  ;;  %s9959_s28 = sld [smem:[#allocation19_spill]] }
 0x199   :  { %2627 = vmatpush.bf16.msrb.mxu3 %v6999_v33  ;;  %2787 = vmatpush.bf16.msra.mxu1 %v8790_v56  ;;  %v7164_v56 = vld [vmem:[%s9926_s16 + $0x28] sm:$0xf0] }
 0x19a   :  { %v2066_v63 = vpop.f32.mrf.mxu2  ;;  %2776 = vmatpush.bf16.msra.mxu0 %v8780_v49  ;;  %v7171_v49 = vor.u32 %v8810_v48, %v7170_v47  ;;  %v7244_v48 = vld [vmem:[#allocation7 + $0x80] sm:$0xf] }
 0x19d   :  { %v2079_v0 = vpop.f32.mrf.mxu3  ;;  %2628 = vmatpush.bf16.msrb.mxu3 %v6991_v4  ;;  %2788 = vmatpush.bf16.msra.mxu1 %v8789_v57 }
 0x19e   :  { %2777 = vmatpush.bf16.msra.mxu0 %v8779_v53  ;;  %v8808_v53 = vld [vmem:[%s9926_s16 + $0x24] sm:$0xf0] }
 0x1a1   :  { %2629 = vmatpush.bf16.msrb.mxu3 %v6983_v41  ;;  %2789 = vmatpush.bf16.msra.mxu1 %v8788_v58  ;;  %v8797_v41 = vld [vmem:[%s9957_s6 + $0x18] sm:$0xff] }
 0x1a2   :  { %2778 = vmatpush.bf16.msra.mxu0 %v8778_v55  ;;  %2843 = vmatpush.bf16.msra.mxu2 %v8797_v41  ;;  %v8807_v55 = vld [vmem:[%s9926_s16 + $0x24] sm:$0xf] }
 0x1a3   :  { %v7167_v58 = vor.u32 %v8807_v55, %v7164_v56  ;;  %v8803_v41 = vld [vmem:[%s9926_s16 + $0x4] sm:$0xf]  ;;  %v8859_v55 = vld [vmem:[#allocation7 + $0x184] sm:$0xf]  ;;  %v7374_v56 = vld [vmem:[#allocation7 + $0x190] sm:$0xf0] }
 0x1a5   :  { %2790 = vmatpush.bf16.msra.mxu1 %v8787_v59  ;;  %v9147_v59 = vld [vmem:[%s9923_s13] ss:$0 sm:$0xff]  ;;  %s9967_s13 = sld [smem:[#allocation27_spill]] }
 0x1a6   :  { %2844 = vmatpush.bf16.msra.mxu2 %v8796_v42  ;;  %3033 = vmatpush.bf16.msrb.mxu0 %v7171_v49  ;;  %v7372_v49 = vld [vmem:[#allocation7 + $0x180] sm:$0xf] }
 0x1a9   :  { %2791 = vmatpush.bf16.msra.mxu1 %v8786_v60 }
 0x1ab   :  { %v2090_v7 = vpop.f32.mrf.mxu0 }
 0x1ac   :  { %v2103_v45 = vpop.f32.mrf.mxu1  ;;  %v2091_v8 = vadd.f32 %v2090_v7, %v2078_v31  ;;  %v8795_v31 = vld [vmem:[%s9957_s6 + $0x8] sm:$0xff]  ;;  %v8794_v7 = vld [vmem:[%s9957_s6] sm:$0xff]  ;;  %s5739_s6 = sshll.u32 %s9350_s23, 4  ;;  %s5740_s6 = int_to_ptr.vmem [resolvable:$true] %s5739_s6 }
 0x1ad   :  { %2845 = vmatpush.bf16.msra.mxu2 %v8795_v31  ;;  %v7148_v31 = vld [vmem:[%s9926_s16 + $0x8] sm:$0xf0] }
 0x1ae   :  { %v2104_v9 = vadd.f32 %v2103_v45, %v2091_v8 }
 0x1b1   :  { %2846 = vmatpush.bf16.msra.mxu2 %v8794_v7  ;;  %v7151_v7 = vor.u32 %v8803_v41, %v7148_v31  ;;  %v8821_v41 = vld [vmem:[#allocation7 + $0x4c] sm:$0xf0] }
 0x1b3   :  { %v2116_v10 = vpop.f32.mrf.mxu2  ;;  %v2092_v13 = vpop.f32.mrf.mxu0 }
 0x1b4   :  { %v2117_v44 = vadd.f32 %v2116_v10, %v2104_v9  ;;  %v2129_v12 = vpop.f32.mrf.mxu3  ;;  %v2105_v14 = vpop.f32.mrf.mxu1  ;;  %v9144_v9 = vld [vmem:[%s9958_s20] ss:$0 sm:$0xff] }
 0x1b6   :  { %v2130_v15 = vadd.f32 %v2129_v12, %v2117_v44 }
 0x1b8   :  { %v2136_v16 = vmax.f32 %v2130_v15, 0.0 }
 0x1ba   :  { %v2205_v17 = vpack.c.bf16 %v2136_v16, %v2136_v16  ;;  %v8799_v16 = vld [vmem:[%s9920_s10 + $0x8] sm:$0xff] }
 0x1bb   :  { %v2118_v18 = vpop.f32.mrf.mxu2 }
 0x1bc   :  { %v2131_v19 = vpop.f32.mrf.mxu3  ;;  %2578 = vmatmul.bf16.vlgmr.msra.gmra.mxu3 %v2205_v17  ;;  %v9145_v18 = vld [vmem:[%s9919_s9] ss:$0 sm:$0xff]  ;;  %s9348_s9 = smov 112  }
 0x1bd   :  { %2884 = vmatpush.bf16.msra.mxu3 %v8799_v16  ;;  %v8871_v16 = vld [vmem:[#allocation7 + $0x1e4] sm:$0xf] }
 0x1cb   :  { %v2540_v21 = vpop.f32.mrf.mxu0 }
 0x1cc   :  { %v2541_v22 = vadd.f32 %v2540_v21, %v2207_v20  ;;  %v2553_v23 = vpop.f32.mrf.mxu1  ;;  %2630 = vmatmul.bf16.vlgmr.msrb.gmra.mxu3 %v2205_v17  ;;  %v8798_v17 = vld [vmem:[%s9920_s10] sm:$0xff] }
 0x1cd   :  { %2885 = vmatpush.bf16.msra.mxu3 %v8798_v17  ;;  %v7422_v17 = vld [vmem:[#allocation7 + $0x1f0] sm:$0xf0] }
 0x1ce   :  { %v2554_v11 = vadd.f32 %v2553_v23, %v2541_v22  ;;  %v9146_v23 = vld [vmem:[%s9921_s11] ss:$0 sm:$0xff] }
 0x1d1   :  { %2963 = vmatpush.bf16.msrb.mxu3 %v8802_v38  ;;  %v7390_v38 = vld [vmem:[#allocation7 + $0x1b0] sm:$0xf0] }
 0x1d3   :  { %v2542_v25 = vpop.f32.mrf.mxu0 }
 0x1d4   :  { %v2555_v26 = vpop.f32.mrf.mxu1 }
 0x1eb   :  { %v2592_v28 = vpop.f32.mrf.mxu0 }
 0x1ec   :  { %v2593_v37 = vadd.f32 %v2592_v28, %v2208_v27  ;;  %v2605_v30 = vpop.f32.mrf.mxu1 }
 0x1ee   :  { %v2606_v24 = vadd.f32 %v2605_v30, %v2593_v37  ;;  %v8800_v30 = vld [vmem:[%s9922_s12] sm:$0xff] }
 0x1ef   :  { %2926 = vmatpush.bf16.msrb.mxu2 %v8800_v30  ;;  %v8833_v30 = vld [vmem:[#allocation7 + $0xac] sm:$0xf0] }
 0x1f3   :  { %v2594_v36 = vpop.f32.mrf.mxu0 }
 0x1f4   :  { %v2607_v39 = vpop.f32.mrf.mxu1 }
 0x1ff   :  { %v2566_v46 = vpop.f32.mrf.mxu2 }
 0x200   :  { %v2567_v61 = vadd.f32 %v2566_v46, %v2554_v11  ;;  %v8801_v46 = vld [vmem:[%s9924_s14] sm:$0xff] }
 0x201   :  { %2964 = vmatpush.bf16.msrb.mxu3 %v8801_v46 }
 0x207   :  { %v2568_v29 = vpop.f32.mrf.mxu2 }
 0x208   :  { %v8809_v29 = vld [vmem:[%s9926_s16 + $0x34] sm:$0xf] }
 0x20f   :  { %v2618_v51 = vpop.f32.mrf.mxu2 }
 0x210   :  { %v2619_v2 = vadd.f32 %v2618_v51, %v2606_v24  ;;  %v2891_v24 = vld [vmem:[%s9959_s28] sm:$0x3]  ;;  %v7172_v51 = vld [vmem:[%s9926_s16 + $0x38] sm:$0xf0] }
 0x211   :  { %v2892_v36 = vmul.f32 0.5, %v2891_v24  ;;  %v7175_v54 = vor.u32 %v8809_v29, %v7172_v51  ;;  %v8829_v29 = vld [vmem:[#allocation7 + $0x8c] sm:$0xf0] }
 0x213   :  { %3046 = vmatpush.bf16.msrb.mxu1 %v7175_v54  ;;  %v7246_v54 = vld [vmem:[#allocation7 + $0x90] sm:$0xf0] }
 0x217   :  { %v2620_v52 = vpop.f32.mrf.mxu2  ;;  %3047 = vmatpush.bf16.msrb.mxu1 %v7167_v58 }
 0x218   :  { %v7162_v52 = vld [vmem:[%s9926_s16 + $0x20] sm:$0xf] }
 0x219   :  { %v7163_v57 = vor.u32 %v8808_v53, %v7162_v52  ;;  %v8861_v52 = vld [vmem:[#allocation7 + $0x18c] sm:$0xf0]  ;;  %v8827_v53 = vld [vmem:[#allocation7 + $0x84] sm:$0xf] }
 0x21a   :  { %v7373_v58 = vor.u32 %v8861_v52, %v7372_v49  ;;  %v7302_v52 = vld [vmem:[#allocation7 + $0xf8] sm:$0xf0] }
 0x21b   :  { %3034 = vmatpush.bf16.msrb.mxu0 %v7163_v57  ;;  %v7245_v57 = vor.u32 %v8829_v29, %v7244_v48  ;;  %v8874_v48 = vld [vmem:[#allocation7 + $0x1f4] sm:$0xf0]  ;;  %v8840_v29 = vld [vmem:[#allocation7 + $0xec] sm:$0xf] }
 0x23f   :  { %v2579_v62 = vpop.f32.mrf.mxu3 }
 0x240   :  { %v2580_v63 = vadd.f32 %v2579_v62, %v2567_v61 }
 0x242   :  { %v2635_v0 = vmax.f32 %v2580_v63, 0.0 }
 0x244   :  { %v2670_v33 = vpack.c.bf16 %v2635_v0, %v2635_v0 }
 0x246   :  { %2779 = vmatmul.bf16.vlgmr.msra.gmra.mxu0 %v2670_v33  ;;  %v7154_v33 = vld [vmem:[%s9926_s16 + $0x10] sm:$0xf] }
 0x247   :  { %v2581_v1 = vpop.f32.mrf.mxu3 }
 0x248   :  { %v8806_v1 = vld [vmem:[%s9926_s16 + $0x14] sm:$0xf0] }
 0x24f   :  { %v2631_v3 = vpop.f32.mrf.mxu3 }
 0x250   :  { %v2632_v4 = vadd.f32 %v2631_v3, %v2619_v2  ;;  %v8805_v2 = vld [vmem:[%s9926_s16 + $0x14] sm:$0xf]  ;;  %v7155_v3 = vor.u32 %v8806_v1, %v7154_v33  ;;  %v8823_v33 = vld [vmem:[#allocation7 + $0x64] sm:$0xf]  ;;  %v7230_v1 = vld [vmem:[#allocation7 + $0x70] sm:$0xf0] }
 0x252   :  { %v2636_v5 = vmax.f32 %v2632_v4, 0.0  ;;  %v7156_v4 = vld [vmem:[%s9926_s16 + $0x18] sm:$0xf0]  ;;  %3035 = vmatpush.bf16.msrb.mxu0 %v7155_v3 }
 0x253   :  { %v7358_v3 = vld [vmem:[#allocation7 + $0x170] sm:$0xf0] }
 0x254   :  { %v2671_v34 = vpack.c.bf16 %v2636_v5, %v2636_v5  ;;  %v7159_v5 = vor.u32 %v8805_v2, %v7156_v4  ;;  %v8855_v2 = vld [vmem:[#allocation7 + $0x164] sm:$0xf] }
 0x255   :  { %v7361_v31 = vor.u32 %v8855_v2, %v7358_v3  ;;  %v7286_v3 = vld [vmem:[#allocation7 + $0xd8] sm:$0xf0] }
 0x256   :  { %2792 = vmatmul.bf16.vlgmr.msra.gmra.mxu1 %v2671_v34  ;;  %v7146_v34 = vld [vmem:[%s9926_s16] sm:$0xf] }
 0x257   :  { %v2633_v35 = vpop.f32.mrf.mxu3  ;;  %3048 = vmatpush.bf16.msrb.mxu1 %v7159_v5 }
 0x258   :  { %v8804_v35 = vld [vmem:[%s9926_s16 + $0x4] sm:$0xf0] }
 0x259   :  { %v7147_v42 = vor.u32 %v8804_v35, %v7146_v34  ;;  %v7233_v34 = vor.u32 %v8823_v33, %v7230_v1  ;;  %v7212_v35 = vld [vmem:[#allocation7 + $0x40] sm:$0xf]  ;;  %v8870_v33 = vld [vmem:[#allocation7 + $0x1d4] sm:$0xf0]  ;;  %v8836_v1 = vld [vmem:[#allocation7 + $0xcc] sm:$0xf] }
 0x25b   :  { %3036 = vmatpush.bf16.msrb.mxu0 %v7147_v42  ;;  %3049 = vmatpush.bf16.msrb.mxu1 %v7151_v7  ;;  %v7340_v42 = vld [vmem:[#allocation7 + $0x140] sm:$0xf]  ;;  %v8853_v7 = vld [vmem:[#allocation7 + $0x14c] sm:$0xf0] }
 0x2c3   :  { %v2780_v45 = vpop.f32.mrf.mxu0 }
 0x2c4   :  { %v2781_v10 = vadd.f32 %v9144_v9, %v2780_v45  ;;  %v7292_v45 = vld [vmem:[#allocation7 + $0xe0] sm:$0xf] }
 0x2c5   :  { %v7420_v9 = vld [vmem:[#allocation7 + $0x1e0] sm:$0xf] }
 0x2cb   :  { %v2782_v8 = vpop.f32.mrf.mxu0 }
 0x2cc   :  { %v8841_v8 = vld [vmem:[#allocation7 + $0xec] sm:$0xf0] }
 0x2d3   :  { %v2793_v44 = vpop.f32.mrf.mxu1 }
 0x2d4   :  { %v2794_v12 = vadd.f32 %v2793_v44, %v2781_v10  ;;  %v7293_v10 = vor.u32 %v8841_v8, %v7292_v45  ;;  %v8873_v44 = vld [vmem:[#allocation7 + $0x1ec] sm:$0xf0]  ;;  %v8819_v45 = vld [vmem:[#allocation7 + $0x44] sm:$0xf]  ;;  %v7214_v8 = vld [vmem:[#allocation7 + $0x50] sm:$0xf0] }
 0x2d6   :  { %v2797_v13 = vmax.f32 %v2794_v12, 0.0  ;;  %v8839_v12 = vld [vmem:[#allocation7 + $0xe4] sm:$0xf] }
 0x2d8   :  { %v2807_v14 = vpack.c.bf16 %v2797_v13, %v2797_v13  ;;  %v7294_v13 = vld [vmem:[#allocation7 + $0xf0] sm:$0xf0] }
 0x2da   :  { %7120 = vmatmul.msk.bf16.vlgmr.msra.gmra.mxu2 %vm2835_vm0, %v2807_v14  ;;  %v7421_v14 = vor.u32 %v8873_v44, %v7420_v9  ;;  %v8851_v9 = vld [vmem:[#allocation7 + $0x144] sm:$0xf]  ;;  %v9148_v44 = vld [vmem:[%s9925_s15] ss:$0 sm:$0xff] }
 0x2db   :  { %v2795_v15 = vpop.f32.mrf.mxu1  ;;  %3453 = vmatpush.bf16.msra.mxu2 %v7293_v10  ;;  %v7342_v10 = vld [vmem:[#allocation7 + $0x150] sm:$0xf0] }
 0x2dc   :  { %v7297_v15 = vor.u32 %v8839_v12, %v7294_v13  ;;  %v7213_v12 = vor.u32 %v8821_v41, %v7212_v35  ;;  %v7341_v13 = vor.u32 %v8853_v7, %v7340_v42  ;;  %v7289_v41 = vor.u32 %v8836_v1, %v7286_v3  ;;  %v8834_v7 = vld [vmem:[#allocation7 + $0xb4] sm:$0xf0]  ;;  %v8848_v1 = vld [vmem:[#allocation7 + $0x12c] sm:$0xf] }
 0x2de   :  { %3479 = vmatpush.bf16.msra.mxu0 %v7297_v15  ;;  %v7196_v15 = vld [vmem:[#allocation7 + $0x20] sm:$0xf] }
 0x35d   :  { %v2848_v19 = vpop.f32.mrf.mxu2 }
 0x35e   :  { %v2849_v6 = vadd.f32 %v9145_v18, %v2848_v19  ;;  %v7276_v18 = vld [vmem:[#allocation7 + $0xc0] sm:$0xf]  ;;  %v7425_v19 = vor.u32 %v8871_v16, %v7422_v17  ;;  %v8817_v16 = vld [vmem:[#allocation7 + $0x2c] sm:$0xf0] }
 0x35f   :  { %v7324_v17 = vld [vmem:[#allocation7 + $0x120] sm:$0xf] }
 0x360   :  { %v2852_v20 = vmax.f32 %v2849_v6, 0.0  ;;  %v8837_v6 = vld [vmem:[#allocation7 + $0xcc] sm:$0xf0]  ;;  %3492 = vmatpush.bf16.msra.mxu1 %v7425_v19 }
 0x361   :  { %v8849_v19 = vld [vmem:[#allocation7 + $0x12c] sm:$0xf0] }
 0x362   :  { %v2858_v21 = vpack.c.bf16 %v2852_v20, %v2852_v20  ;;  %v7404_v20 = vld [vmem:[#allocation7 + $0x1c0] sm:$0xf] }
 0x364   :  { %7129 = vmatmul.msk.bf16.vlgmr.msra.gmra.mxu3 %vm2874_vm1, %v2858_v21  ;;  %v8869_v21 = vld [vmem:[#allocation7 + $0x1cc] sm:$0xf0] }
 0x365   :  { %v2850_v22 = vpop.f32.mrf.mxu2  ;;  %3466 = vmatpush.bf16.msra.mxu3 %v7421_v14  ;;  %v7217_v14 = vor.u32 %v8819_v45, %v7214_v8  ;;  %v7396_v45 = vld [vmem:[#allocation7 + $0x1a8] sm:$0xf] }
 0x366   :  { %v7277_v22 = vor.u32 %v8837_v6, %v7276_v18  ;;  %v7345_v18 = vor.u32 %v8851_v9, %v7342_v10  ;;  %v8815_v6 = vld [vmem:[#allocation7 + $0x24] sm:$0xf]  ;;  %v8866_v9 = vld [vmem:[#allocation7 + $0x1b4] sm:$0xf0]  ;;  %v8832_v10 = vld [vmem:[#allocation7 + $0xac] sm:$0xf] }
 0x368   :  { %3454 = vmatpush.bf16.msra.mxu2 %v7277_v22  ;;  %v7326_v22 = vld [vmem:[#allocation7 + $0x130] sm:$0xf0] }
 0x3e7   :  { %v2887_v11 = vpop.f32.mrf.mxu3 }
 0x3e8   :  { %v2888_v25 = vadd.f32 %v9146_v23, %v2887_v11  ;;  %v7405_v23 = vor.u32 %v8869_v21, %v7404_v20  ;;  %v8835_v11 = vld [vmem:[#allocation7 + $0xc4] sm:$0xf]  ;;  %v7198_v20 = vld [vmem:[#allocation7 + $0x30] sm:$0xf0] }
 0x3e9   :  { %v8847_v21 = vld [vmem:[#allocation7 + $0x124] sm:$0xf] }
 0x3ea   :  { %v2893_v26 = vmul.f32 0.5, %v2888_v25  ;;  %5715 = vst.msk [vmem:[#allocation10] sm:$0x3] %vm5714_vm2, %v2888_v25  ;;  %3467 = vmatpush.bf16.msra.mxu3 %v7405_v23  ;;  %v7197_v23 = vor.u32 %v8817_v16, %v7196_v15  ;;  %v7398_v15 = vld [vmem:[#allocation7 + $0x1b8] sm:$0xf0] }
 0x3ec   :  { %v2894_v27 = vmul.f32 1.442695, %v2893_v26  ;;  %v8867_v26 = vld [vmem:[#allocation7 + $0x1c4] sm:$0xf] }
 0x3ee   :  { %9149 = vpow2.f32 %v2894_v27 }
 0x3ef   :  { %v2889_v28 = vpop.f32.mrf.mxu3 }
 0x3f0   :  { %v7406_v28 = vld [vmem:[#allocation7 + $0x1d0] sm:$0xf0] }
 0x3f1   :  { %v7409_v24 = vor.u32 %v8867_v26, %v7406_v28  ;;  %v7201_v28 = vor.u32 %v8815_v6, %v7198_v20  ;;  %v8862_v20 = vld [vmem:[#allocation7 + $0x194] sm:$0xf0] }
 0x3f3   :  { %3493 = vmatpush.bf16.msra.mxu1 %v7409_v24  ;;  %v8811_v24 = vld [vmem:[#allocation7 + $0x4] sm:$0xf] }
 0x3f4   :  { %v9150_v37 = vpop.eup %9149 }
 0x3f5   :  { %2897 = vrot.lane.b32.xlu0 %v9150_v37, %s9348_s9  ;;  %v7260_v37 = vld [vmem:[#allocation7 + $0xa0] sm:$0xf] }
 0x3fd   :  { %5717 = vrot.lane.b32.xlu0 %v2888_v25, %s9348_s9 }
 0x467   :  { %v2898_v39 = vpop.permute.xlu0 %2897 }
 0x468   :  { %v2900_v43 = vmul.f32 %v2898_v39, %v2892_v36  ;;  %v7388_v36 = vld [vmem:[#allocation7 + $0x1a0] sm:$0xf]  ;;  %v8865_v39 = vld [vmem:[#allocation7 + $0x1ac] sm:$0xf0] }
 0x469   :  { %v7389_v46 = vor.u32 %v8865_v39, %v7388_v36  ;;  %v7329_v39 = vor.u32 %v8847_v21, %v7326_v22  ;;  %v8828_v21 = vld [vmem:[#allocation7 + $0x8c] sm:$0xf]  ;;  %v7254_v22 = vld [vmem:[#allocation7 + $0x98] sm:$0xf0] }
 0x46a   :  { %v2901_v40 = vadd.f32 %v2900_v43, %v2888_v25  ;;  %v7278_v25 = vld [vmem:[#allocation7 + $0xd0] sm:$0xf0]  ;;  %v8831_v43 = vld [vmem:[#allocation7 + $0xa4] sm:$0xf] }
 0x46b   :  { %v7281_v27 = vor.u32 %v8835_v11, %v7278_v25  ;;  %3468 = vmatpush.bf16.msra.mxu3 %v7389_v46  ;;  %v7180_v11 = vld [vmem:[#allocation7] sm:$0xf]  ;;  %v8813_v25 = vld [vmem:[#allocation7 + $0xc] sm:$0xf0]  ;;  %v7428_v46 = vld [vmem:[#allocation7 + $0x1e8] sm:$0xf] }
 0x46c   :  { %v2905_v32 = vpack.c.bf16 %v2901_v40, %v2901_v40  ;;  %v7261_v40 = vor.u32 %v8833_v30, %v7260_v37  ;;  %v7308_v37 = vld [vmem:[#allocation7 + $0x100] sm:$0xf]  ;;  %v8845_v30 = vld [vmem:[#allocation7 + $0x10c] sm:$0xf0]  ;;  %v7181_v49 = vor.u32 %v8813_v25, %v7180_v11  ;;  %v7257_v11 = vor.u32 %v8828_v21, %v7254_v22  ;;  %v8860_v25 = vld [vmem:[#allocation7 + $0x18c] sm:$0xf] }
 0x46d   :  { %3480 = vmatpush.bf16.msra.mxu0 %v7281_v27  ;;  %v7325_v27 = vor.u32 %v8849_v19, %v7324_v17  ;;  %v7252_v17 = vld [vmem:[#allocation7 + $0x88] sm:$0xf]  ;;  %v7660_v21 = vld [vmem:[#allocation8 + $0x1c0] sm:$0xf] }
 0x46e   :  { %7134 = vmatmul.msk.bf16.vlgmr.msrb.gmra.mxu2 %vm2915_vm3, %v2905_v32  ;;  %v7262_v32 = vld [vmem:[#allocation7 + $0xb0] sm:$0xf0]  ;;  %v7380_v19 = vld [vmem:[#allocation7 + $0x188] sm:$0xf]  ;;  %v8935_v22 = vld [vmem:[#allocation8 + $0x1dc] sm:$0xf0] }
 0x46f   :  { %v5718_v50 = vpop.permute.xlu0 %5717  ;;  %v7265_v47 = vor.u32 %v8831_v43, %v7262_v32  ;;  %3455 = vmatpush.bf16.msra.mxu2 %v7261_v40  ;;  %3469 = vmatpush.bf16.msra.mxu3 %v7373_v58  ;;  %v7182_v43 = vld [vmem:[#allocation7 + $0x10] sm:$0xf0]  ;;  %v8843_v40 = vld [vmem:[#allocation7 + $0x104] sm:$0xf]  ;;  %vm5701_vm3 = vcmask 1041408  }
 0x470   :  { %5720 = vst.msk [vmem:[#allocation11] sm:$0x3] %vm5714_vm2, %v5718_v50  ;;  %v8863_v50 = vld [vmem:[#allocation7 + $0x1a4] sm:$0xf]  ;;  %v7310_v32 = vld [vmem:[#allocation7 + $0x110] sm:$0xf0] }
 0x471   :  { %v7393_v51 = vor.u32 %v8863_v50, %v7390_v38  ;;  %3481 = vmatpush.bf16.msra.mxu0 %v7265_v47  ;;  %v7300_v50 = vld [vmem:[#allocation7 + $0xe8] sm:$0xf]  ;;  %v8842_v38 = vld [vmem:[#allocation7 + $0xf4] sm:$0xf0]  ;;  %5744 = dma.vmem_to_hbm [thread:$0]  %s5740_s6, 32, %s5742_s0, [#allocation12]  }
 0x472   :  { %v7301_v58 = vor.u32 %v8842_v38, %v7300_v50  ;;  %v8856_v50 = vld [vmem:[#allocation7 + $0x16c] sm:$0xf]  ;;  %v7366_v38 = vld [vmem:[#allocation7 + $0x178] sm:$0xf0] }
 0x473   :  { %3494 = vmatpush.bf16.msra.mxu1 %v7393_v51  ;;  %3456 = vmatpush.bf16.msra.mxu2 %v7245_v57  ;;  %v7309_v51 = vor.u32 %v8845_v30, %v7308_v37  ;;  %v7313_v57 = vor.u32 %v8843_v40, %v7310_v32  ;;  %v8826_v37 = vld [vmem:[#allocation7 + $0x74] sm:$0xf0]  ;;  %v7364_v30 = vld [vmem:[#allocation7 + $0x168] sm:$0xf] }
 0x4f1   :  { %v2928_v60 = vpop.f32.mrf.mxu2 }
 0x4f2   :  { %v2929_v61 = vadd.f32 %v9147_v59, %v2928_v60  ;;  %v7249_v59 = vor.u32 %v8827_v53, %v7246_v54  ;;  %v7228_v60 = vld [vmem:[#allocation7 + $0x60] sm:$0xf]  ;;  %v8872_v53 = vld [vmem:[#allocation7 + $0x1ec] sm:$0xf]  ;;  %v7430_v54 = vld [vmem:[#allocation7 + $0x1f8] sm:$0xf0] }
 0x4f4   :  { %v2932_v62 = vmax.f32 %v2929_v61, 0.0  ;;  %v8825_v61 = vld [vmem:[#allocation7 + $0x6c] sm:$0xf0]  ;;  %3482 = vmatpush.bf16.msra.mxu0 %v7249_v59  ;;  %v7429_v59 = vor.u32 %v8874_v48, %v7428_v46  ;;  %v7220_v46 = vld [vmem:[#allocation7 + $0x48] sm:$0xf] }
 0x4f5   :  { %v7229_v4 = vor.u32 %v8825_v61, %v7228_v60  ;;  %v7284_v60 = vld [vmem:[#allocation7 + $0xc8] sm:$0xf]  ;;  %v8838_v61 = vld [vmem:[#allocation7 + $0xd4] sm:$0xf0] }
 0x4f6   :  { %v2938_v63 = vpack.c.bf16 %v2932_v62, %v2932_v62  ;;  %v7356_v62 = vld [vmem:[#allocation7 + $0x160] sm:$0xf]  ;;  %v8822_v48 = vld [vmem:[#allocation7 + $0x54] sm:$0xf0] }
 0x4f7   :  { %3457 = vmatpush.bf16.msra.mxu2 %v7229_v4  ;;  %v8868_v4 = vld [vmem:[#allocation7 + $0x1cc] sm:$0xf] }
 0x4f8   :  { %7143 = vmatmul.msk.bf16.vlgmr.msrb.gmra.mxu3 %vm2874_vm1, %v2938_v63  ;;  %v7377_v63 = vor.u32 %v8859_v55, %v7374_v56  ;;  %3483 = vmatpush.bf16.msra.mxu0 %v7233_v34  ;;  %v7185_v56 = vor.u32 %v8811_v24, %v7182_v43  ;;  %v7285_v34 = vor.u32 %v8838_v61, %v7284_v60  ;;  %v7238_v43 = vld [vmem:[#allocation7 + $0x78] sm:$0xf0]  ;;  %v7332_v61 = vld [vmem:[#allocation7 + $0x128] sm:$0xf] }
 0x4f9   :  { %v2930_v0 = vpop.f32.mrf.mxu2 }
 0x4fa   :  { %v8857_v0 = vld [vmem:[#allocation7 + $0x16c] sm:$0xf0]  ;;  %3495 = vmatpush.bf16.msra.mxu1 %v7377_v63  ;;  %v7433_v63 = vor.u32 %v8872_v53, %v7430_v54  ;;  %v8820_v53 = vld [vmem:[#allocation7 + $0x4c] sm:$0xf]  ;;  %v7222_v54 = vld [vmem:[#allocation7 + $0x58] sm:$0xf0] }
 0x4fb   :  { %v7357_v5 = vor.u32 %v8857_v0, %v7356_v62  ;;  %3458 = vmatpush.bf16.msra.mxu2 %v7213_v12  ;;  %v7305_v62 = vor.u32 %v8840_v29, %v7302_v52  ;;  %v7412_v0 = vld [vmem:[#allocation7 + $0x1c8] sm:$0xf]  ;;  %v7397_v12 = vor.u32 %v8866_v9, %v7396_v45  ;;  %v8844_v45 = vld [vmem:[#allocation7 + $0x10c] sm:$0xf] }
 0x4fc   :  { %3484 = vmatpush.bf16.msra.mxu0 %v7217_v14  ;;  %v7413_v35 = vor.u32 %v8870_v33, %v7412_v0  ;;  %v8864_v14 = vld [vmem:[#allocation7 + $0x1ac] sm:$0xf]  ;;  %v7348_v29 = vld [vmem:[#allocation7 + $0x148] sm:$0xf]  ;;  %v7206_v33 = vld [vmem:[#allocation7 + $0x38] sm:$0xf0] }
 0x4fd   :  { %3470 = vmatpush.bf16.msra.mxu3 %v7357_v5  ;;  %v7414_v5 = vld [vmem:[#allocation7 + $0x1d8] sm:$0xf0]  ;;  %v7401_v16 = vor.u32 %v8864_v14, %v7398_v15 }
 0x4fe   :  { %3496 = vmatpush.bf16.msra.mxu1 %v7361_v31  ;;  %v7417_v42 = vor.u32 %v8868_v4, %v7414_v5  ;;  %v7268_v31 = vld [vmem:[#allocation7 + $0xa8] sm:$0xf] }
 0x4ff   :  { %3459 = vmatpush.bf16.msra.mxu2 %v7197_v23  ;;  %v7269_v8 = vor.u32 %v8834_v7, %v7268_v31  ;;  %v7381_v23 = vor.u32 %v8862_v20, %v7380_v19  ;;  %v7188_v5 = vld [vmem:[#allocation7 + $0x8] sm:$0xf]  ;;  %v8812_v31 = vld [vmem:[#allocation7 + $0xc] sm:$0xf]  ;;  %v7190_v7 = vld [vmem:[#allocation7 + $0x18] sm:$0xf0] }
 0x500   :  { %3485 = vmatpush.bf16.msra.mxu0 %v7201_v28  ;;  %v7236_v28 = vld [vmem:[#allocation7 + $0x68] sm:$0xf]  ;;  %v8999_v20 = vld [vmem:[#allocation8 + $0x3dc] sm:$0xf0] }
 0x501   :  { %3471 = vmatpush.bf16.msra.mxu3 %v7341_v13  ;;  %v7237_v24 = vor.u32 %v8826_v37, %v7236_v28  ;;  %v9063_v28 = vld [vmem:[#allocation8 + $0x5dc] sm:$0xf0] }
 0x502   :  { %3497 = vmatpush.bf16.msra.mxu1 %v7345_v18  ;;  %v8830_v18 = vld [vmem:[#allocation7 + $0x94] sm:$0xf0] }
 0x503   :  { %3460 = vmatpush.bf16.msra.mxu2 %v7181_v49  ;;  %v7253_v6 = vor.u32 %v8830_v18, %v7252_v17  ;;  %v8854_v49 = vld [vmem:[#allocation7 + $0x154] sm:$0xf0] }
 0x504   :  { %3486 = vmatpush.bf16.msra.mxu0 %v7185_v56  ;;  %v7349_v52 = vor.u32 %v8854_v49, %v7348_v29  ;;  %v7225_v56 = vor.u32 %v8820_v53, %v7222_v54  ;;  %v9055_v29 = vld [vmem:[#allocation8 + $0x59c] sm:$0xf0] }
 0x505   :  { %3472 = vmatpush.bf16.msra.mxu3 %v7325_v27  ;;  %v7852_v53 = vld [vmem:[#allocation8 + $0x340] sm:$0xf] }
 0x506   :  { %3498 = vmatpush.bf16.msra.mxu1 %v7329_v39  ;;  %v8824_v39 = vld [vmem:[#allocation7 + $0x6c] sm:$0xf]  ;;  %v8983_v54 = vld [vmem:[#allocation8 + $0x35c] sm:$0xf0] }
 0x507   :  { %3505 = vmatpush.bf16.msrb.mxu2 %v7301_v58  ;;  %v7241_v32 = vor.u32 %v8824_v39, %v7238_v43  ;;  %v7204_v58 = vld [vmem:[#allocation7 + $0x28] sm:$0xf]  ;;  %v8991_v39 = vld [vmem:[#allocation8 + $0x39c] sm:$0xf0]  ;;  %v7661_v43 = vor.u32 %v8935_v22, %v7660_v21 }
 0x508   :  { %v7500_v21 = vld [vmem:[#allocation8 + $0x80] sm:$0xf] }
 0x509   :  { %3473 = vmatpush.bf16.msra.mxu3 %v7309_v51  ;;  %v7221_v51 = vor.u32 %v8822_v48, %v7220_v46  ;;  %v8140_v48 = vld [vmem:[#allocation8 + $0x580] sm:$0xf] }
 0x50a   :  { %3499 = vmatpush.bf16.msra.mxu1 %v7313_v57  ;;  %v7350_v57 = vld [vmem:[#allocation7 + $0x158] sm:$0xf0]  ;;  %v8895_v22 = vld [vmem:[#allocation8 + $0x9c] sm:$0xf0] }
 0x50b   :  { %3506 = vmatpush.bf16.msrb.mxu2 %v7285_v34  ;;  %v8814_v34 = vld [vmem:[#allocation7 + $0x14] sm:$0xf0] }
 0x50c   :  { %v7189_v9 = vor.u32 %v8814_v34, %v7188_v5  ;;  %v8332_v34 = vld [vmem:[#allocation8 + $0x700] sm:$0xf] }
 0x50d   :  { %3518 = vmatpush.bf16.msrb.mxu3 %v7429_v59  ;;  %v8818_v59 = vld [vmem:[#allocation7 + $0x34] sm:$0xf0] }
 0x50e   :  { %v7205_v0 = vor.u32 %v8818_v59, %v7204_v58  ;;  %v8364_v59 = vld [vmem:[#allocation8 + $0x740] sm:$0xf] }
 0x50f   :  { %3507 = vmatpush.bf16.msrb.mxu2 %v7269_v8  ;;  %v7318_v8 = vld [vmem:[#allocation7 + $0x118] sm:$0xf0] }
 0x511   :  { %3519 = vmatpush.bf16.msrb.mxu3 %v7413_v35  ;;  %v7316_v35 = vld [vmem:[#allocation7 + $0x108] sm:$0xf] }
 0x513   :  { %3508 = vmatpush.bf16.msrb.mxu2 %v7253_v6  ;;  %v7916_v6 = vld [vmem:[#allocation8 + $0x3c0] sm:$0xf] }
 0x515   :  { %3520 = vmatpush.bf16.msrb.mxu3 %v7397_v12  ;;  %v7321_v12 = vor.u32 %v8844_v45, %v7318_v8  ;;  %v7788_v45 = vld [vmem:[#allocation8 + $0x2c0] sm:$0xf] }
 0x516   :  { %v8967_v8 = vld [vmem:[#allocation8 + $0x2dc] sm:$0xf0] }
 0x517   :  { %3509 = vmatpush.bf16.msrb.mxu2 %v7237_v24  ;;  %v7917_v24 = vor.u32 %v8999_v20, %v7916_v6  ;;  %v8959_v6 = vld [vmem:[#allocation8 + $0x29c] sm:$0xf0] }
 0x519   :  { %3521 = vmatpush.bf16.msrb.mxu3 %v7381_v23  ;;  %v8428_v23 = vld [vmem:[#allocation8 + $0x7c0] sm:$0xf] }
 0x51b   :  { %3510 = vmatpush.bf16.msrb.mxu2 %v7221_v51 }
 0x51f   :  { %3511 = vmatpush.bf16.msrb.mxu2 %v7205_v0  ;;  %v7853_v0 = vor.u32 %v8983_v54, %v7852_v53  ;;  %v7436_v53 = vld [vmem:[#allocation8] sm:$0xf] }
 0x520   :  { %v8879_v54 = vld [vmem:[#allocation8 + $0x1c] sm:$0xf0] }
 0x523   :  { %3512 = vmatpush.bf16.msrb.mxu2 %v7189_v9 }
 0x57b   :  { %v2966_v26 = vpop.f32.mrf.mxu3 }
 0x57c   :  { %v2967_v36 = vadd.f32 %v9148_v44, %v2966_v26  ;;  %v7270_v44 = vld [vmem:[#allocation7 + $0xb8] sm:$0xf0] }
 0x57d   :  { %v7273_v13 = vor.u32 %v8832_v10, %v7270_v44  ;;  %v7382_v26 = vld [vmem:[#allocation7 + $0x198] sm:$0xf0]  ;;  %v7193_v44 = vor.u32 %v8812_v31, %v7190_v7  ;;  %v9039_v31 = vld [vmem:[#allocation8 + $0x51c] sm:$0xf0] }
 0x57e   :  { %v2970_v47 = vmax.f32 %v2967_v36, 0.0  ;;  %v7385_v27 = vor.u32 %v8860_v25, %v7382_v26  ;;  %v8858_v36 = vld [vmem:[#allocation7 + $0x174] sm:$0xf0] }
 0x57f   :  { %v7365_v40 = vor.u32 %v8858_v36, %v7364_v30  ;;  %v7884_v36 = vld [vmem:[#allocation8 + $0x380] sm:$0xf] }
 0x580   :  { %v2980_v55 = vpack.c.bf16 %v2970_v47, %v2970_v47  ;;  %v7369_v47 = vor.u32 %v8856_v50, %v7366_v38  ;;  %v8396_v38 = vld [vmem:[#allocation8 + $0x780] sm:$0xf] }
 0x581   :  { %3522 = vmatpush.bf16.msrb.mxu3 %v7365_v40  ;;  %v7628_v40 = vld [vmem:[#allocation8 + $0x180] sm:$0xf] }
 0x582   :  { %7176 = vmatmul.msk.bf16.vlgmr.msrb.gmra.mxu0 %vm2835_vm0, %v2980_v55  ;;  %7177 = vmatmul.msk.bf16.vlgmr.msrb.gmra.mxu1 %vm2835_vm0, %v2980_v55  ;;  %v8852_v55 = vld [vmem:[#allocation7 + $0x14c] sm:$0xf] }
 0x583   :  { %v2968_v2 = vpop.f32.mrf.mxu3  ;;  %3531 = vmatpush.bf16.msrb.mxu0 %v7305_v62  ;;  %3544 = vmatpush.bf16.msrb.mxu1 %v7433_v63  ;;  %v7353_v60 = vor.u32 %v8852_v55, %v7350_v57  ;;  %v8850_v62 = vld [vmem:[#allocation7 + $0x134] sm:$0xf0]  ;;  %v8816_v63 = vld [vmem:[#allocation7 + $0x2c] sm:$0xf]  ;;  %v8919_v57 = vld [vmem:[#allocation8 + $0x15c] sm:$0xf0] }
 0x584   :  { %v7334_v2 = vld [vmem:[#allocation7 + $0x138] sm:$0xf0]  ;;  %v7333_v3 = vor.u32 %v8850_v62, %v7332_v61  ;;  %v7209_v4 = vor.u32 %v8816_v63, %v7206_v33  ;;  %v9111_v61 = vld [vmem:[#allocation8 + $0x75c] sm:$0xf0] }
 0x585   :  { %3523 = vmatpush.bf16.msrb.mxu3 %v7349_v52  ;;  %v7885_v52 = vor.u32 %v8991_v39, %v7884_v36  ;;  %v8108_v62 = vld [vmem:[#allocation8 + $0x540] sm:$0xf]  ;;  %v8365_v5 = vor.u32 %v9111_v61, %v8364_v59  ;;  %v7662_v59 = vld [vmem:[#allocation8 + $0x1e0] sm:$0xf0] }
 0x586   :  { %v9047_v63 = vld [vmem:[#allocation8 + $0x55c] sm:$0xf0] }
 0x587   :  { %3532 = vmatpush.bf16.msrb.mxu0 %v7289_v41  ;;  %3545 = vmatpush.bf16.msrb.mxu1 %v7417_v42  ;;  %v7337_v41 = vor.u32 %v8848_v1, %v7334_v2  ;;  %v8846_v42 = vld [vmem:[#allocation7 + $0x114] sm:$0xf0]  ;;  %v7820_v33 = vld [vmem:[#allocation8 + $0x300] sm:$0xf] }
 0x588   :  { %v7317_v10 = vor.u32 %v8846_v42, %v7316_v35  ;;  %v8975_v1 = vld [vmem:[#allocation8 + $0x31c] sm:$0xf0]  ;;  %v8109_v35 = vor.u32 %v9047_v63, %v8108_v62  ;;  %v7437_v63 = vor.u32 %v8879_v54, %v7436_v53  ;;  %v8939_v54 = vld [vmem:[#allocation8 + $0x204] sm:$0xf] }
 0x589   :  { %3524 = vmatpush.bf16.msrb.mxu3 %v7333_v3  ;;  %v7564_v3 = vld [vmem:[#allocation8 + $0x100] sm:$0xf]  ;;  %v7821_v7 = vor.u32 %v8975_v1, %v7820_v33  ;;  %v8430_v33 = vld [vmem:[#allocation8 + $0x7e0] sm:$0xf0] }
 0x58a   :  { %v8076_v42 = vld [vmem:[#allocation8 + $0x500] sm:$0xf] }
 0x58b   :  { %3533 = vmatpush.bf16.msrb.mxu0 %v7273_v13  ;;  %3546 = vmatpush.bf16.msrb.mxu1 %v7401_v16  ;;  %v2979_v13 = vld [vmem:[%s9927_s17] sm:$0x3]  ;;  %v7724_v36 = vld [vmem:[#allocation8 + $0x240] sm:$0xf] }
 0x58c   :  { %v2982_v14 = vperm.slane %v2979_v13, 0  ;;  %v2983_v15 = vperm.slane %v2979_v13, 1  ;;  %v8300_v13 = vld [vmem:[#allocation8 + $0x6c0] sm:$0xf] }
 0x58d   :  { %3525 = vmatpush.bf16.msrb.mxu3 %v7317_v10  ;;  %v7532_v10 = vld [vmem:[#allocation8 + $0xc0] sm:$0xf] }
 0x58e   :  { %v8951_v39 = vld [vmem:[#allocation8 + $0x25c] sm:$0xf0] }
 0x58f   :  { %3534 = vmatpush.bf16.msrb.mxu0 %v7257_v11  ;;  %3547 = vmatpush.bf16.msrb.mxu1 %v7385_v27  ;;  %v9127_v11 = vld [vmem:[#allocation8 + $0x7dc] sm:$0xf0] }
 0x590   :  { %v8172_v27 = vld [vmem:[#allocation8 + $0x5c0] sm:$0xf]  ;;  %v8429_v50 = vor.u32 %v9127_v11, %v8428_v23 }
 0x591   :  { %v8173_v46 = vor.u32 %v9063_v28, %v8172_v27  ;;  %v8268_v11 = vld [vmem:[#allocation8 + $0x680] sm:$0xf] }
 0x592   :  { %v8012_v27 = vld [vmem:[#allocation8 + $0x480] sm:$0xf] }
 0x593   :  { %3535 = vmatpush.bf16.msrb.mxu0 %v7241_v32  ;;  %3548 = vmatpush.bf16.msrb.mxu1 %v7369_v47  ;;  %v8927_v32 = vld [vmem:[#allocation8 + $0x19c] sm:$0xf0] }
 0x594   :  { %v9119_v47 = vld [vmem:[#allocation8 + $0x79c] sm:$0xf0]  ;;  %v7629_v55 = vor.u32 %v8927_v32, %v7628_v40 }
 0x595   :  { %v8397_v58 = vor.u32 %v9119_v47, %v8396_v38  ;;  %v9023_v28 = vld [vmem:[#allocation8 + $0x49c] sm:$0xf0] }
 0x596   :  { %v7468_v40 = vld [vmem:[#allocation8 + $0x40] sm:$0xf] }
 0x597   :  { %3536 = vmatpush.bf16.msrb.mxu0 %v7225_v56  ;;  %3549 = vmatpush.bf16.msrb.mxu1 %v7353_v60  ;;  %v7596_v56 = vld [vmem:[#allocation8 + $0x140] sm:$0xf]  ;;  %v8141_v60 = vor.u32 %v9055_v29, %v8140_v48 }
 0x598   :  { %v7597_v2 = vor.u32 %v8919_v57, %v7596_v56  ;;  %v8887_v32 = vld [vmem:[#allocation8 + $0x5c] sm:$0xf0]  ;;  %v7918_v57 = vld [vmem:[#allocation8 + $0x3e0] sm:$0xf0] }
 0x599   :  { %v8236_v38 = vld [vmem:[#allocation8 + $0x640] sm:$0xf] }
 0x59a   :  { %v9079_v47 = vld [vmem:[#allocation8 + $0x65c] sm:$0xf0] }
 0x59b   :  { %3537 = vmatpush.bf16.msrb.mxu0 %v7209_v4  ;;  %3550 = vmatpush.bf16.msrb.mxu1 %v7337_v41  ;;  %v8911_v4 = vld [vmem:[#allocation8 + $0x11c] sm:$0xf0] }
 0x59c   :  { %v9103_v41 = vld [vmem:[#allocation8 + $0x71c] sm:$0xf0]  ;;  %v7565_v9 = vor.u32 %v8911_v4, %v7564_v3  ;;  %v7886_v4 = vld [vmem:[#allocation8 + $0x3a0] sm:$0xf0] }
 0x59d   :  { %v7980_v48 = vld [vmem:[#allocation8 + $0x440] sm:$0xf] }
 0x59e   :  { %v9015_v29 = vld [vmem:[#allocation8 + $0x45c] sm:$0xf0] }
 0x59f   :  { %3538 = vmatpush.bf16.msrb.mxu0 %v7193_v44  ;;  %3551 = vmatpush.bf16.msrb.mxu1 %v7321_v12  ;;  %v8903_v44 = vld [vmem:[#allocation8 + $0xdc] sm:$0xf0]  ;;  %v8333_v12 = vor.u32 %v9103_v41, %v8332_v34  ;;  %v7981_v56 = vor.u32 %v9015_v29, %v7980_v48  ;;  %v7630_v34 = vld [vmem:[#allocation8 + $0x1a0] sm:$0xf0] }
 0x5a0   :  { %v7533_v20 = vor.u32 %v8903_v44, %v7532_v10  ;;  %v9071_v61 = vld [vmem:[#allocation8 + $0x61c] sm:$0xf0]  ;;  %v8971_v44 = vld [vmem:[#allocation8 + $0x304] sm:$0xf] }
 0x5a1   :  { %v8366_v48 = vld [vmem:[#allocation8 + $0x760] sm:$0xf0] }
 0x5ff   :  { %v3038_v16 = vpop.f32.mrf.mxu0  ;;  %v3051_v17 = vpop.f32.mrf.mxu1 }
 0x600   :  { %v3039_v18 = vadd.f32 %v3038_v16, %v2982_v14  ;;  %v3052_v19 = vadd.f32 %v3051_v17, %v2983_v15  ;;  %v8077_v14 = vor.u32 %v9039_v31, %v8076_v42  ;;  %v9095_v15 = vld [vmem:[#allocation8 + $0x6dc] sm:$0xf0]  ;;  %v8979_v31 = vld [vmem:[#allocation8 + $0x344] sm:$0xf] }
 0x601   :  { %v8044_v16 = vld [vmem:[#allocation8 + $0x4c0] sm:$0xf]  ;;  %v8301_v23 = vor.u32 %v9095_v15, %v8300_v13  ;;  %v7822_v13 = vld [vmem:[#allocation8 + $0x320] sm:$0xf0] }
 0x602   :  { %v3055_v25 = vmax.f32 %v3039_v18, 0.0  ;;  %v3056_v26 = vmax.f32 %v3052_v19, 0.0  ;;  %v9031_v17 = vld [vmem:[#allocation8 + $0x4dc] sm:$0xf0]  ;;  %v7789_v18 = vor.u32 %v8967_v8, %v7788_v45  ;;  %v7854_v45 = vld [vmem:[#allocation8 + $0x360] sm:$0xf0] }
 0x603   :  { %v7756_v19 = vld [vmem:[#allocation8 + $0x280] sm:$0xf]  ;;  %v8915_v8 = vld [vmem:[#allocation8 + $0x144] sm:$0xf]  ;;  %v7857_v10 = vor.u32 %v8979_v31, %v7854_v45 }
 0x604   :  { %v9736_v37 = vpack.c.bf16 %v3055_v25, %v3055_v25  ;;  %v9738_v30 = vpack.c.bf16 %v3056_v26, %v3056_v26  ;;  %v8045_v25 = vor.u32 %v9031_v17, %v8044_v16  ;;  %v9087_v26 = vld [vmem:[#allocation8 + $0x69c] sm:$0xf0]  ;;  %v7566_v15 = vld [vmem:[#allocation8 + $0x120] sm:$0xf0]  ;;  %v7825_v16 = vor.u32 %v8971_v44, %v7822_v13 }
 0x605   :  { %v9083_v31 = vld [vmem:[#allocation8 + $0x684] sm:$0xf] }
 0x606   :  { %3461 = vmatmul.bf16.vlgmr.msra.gmra.mxu2 %v9736_v37  ;;  %3474 = vmatmul.bf16.vlgmr.msra.gmra.mxu3 %v9738_v30  ;;  %v9075_v44 = vld [vmem:[#allocation8 + $0x644] sm:$0xf] }
 0x607   :  { %3487 = vmatmul.bf16.vlgmr.msra.gmra.mxu0 %v9736_v37  ;;  %3500 = vmatmul.bf16.vlgmr.msra.gmra.mxu1 %v9738_v30  ;;  %v3040_v49 = vpop.f32.mrf.mxu0  ;;  %v3053_v51 = vpop.f32.mrf.mxu1 }
 0x608   :  { %5132 = vmatpush.bf16.msra.mxu3 %v7917_v24  ;;  %5119 = vmatpush.bf16.msra.mxu2 %v7661_v43  ;;  %v7757_v24 = vor.u32 %v8959_v6, %v7756_v19  ;;  %v7501_v43 = vor.u32 %v8895_v22, %v7500_v21  ;;  %v8943_v49 = vld [vmem:[#allocation8 + $0x21c] sm:$0xf0]  ;;  %v7469_v51 = vor.u32 %v8887_v32, %v7468_v40  ;;  %v7790_v19 = vld [vmem:[#allocation8 + $0x2e0] sm:$0xf0] }
 0x609   :  { %5158 = vmatpush.bf16.msra.mxu1 %v8429_v50  ;;  %5145 = vmatpush.bf16.msra.mxu0 %v8173_v46  ;;  %v8269_v50 = vor.u32 %v9087_v26, %v8268_v11  ;;  %v8013_v46 = vor.u32 %v9023_v28, %v8012_v27  ;;  %v7758_v21 = vld [vmem:[#allocation8 + $0x2a0] sm:$0xf0]  ;;  %v9007_v26 = vld [vmem:[#allocation8 + $0x41c] sm:$0xf0] }
 0x60a   :  { %v9115_v22 = vld [vmem:[#allocation8 + $0x784] sm:$0xf] }
 0x60b   :  { %v8398_v11 = vld [vmem:[#allocation8 + $0x7a0] sm:$0xf0] }
 0x60c   :  { %5133 = vmatpush.bf16.msra.mxu3 %v7885_v52  ;;  %5120 = vmatpush.bf16.msra.mxu2 %v7629_v55  ;;  %v8995_v52 = vld [vmem:[#allocation8 + $0x3c4] sm:$0xf]  ;;  %v8237_v55 = vor.u32 %v9079_v47, %v8236_v38  ;;  %v8401_v27 = vor.u32 %v9115_v22, %v8398_v11  ;;  %v9751_v22 = vld [vmem:[%s9929_s19] sm:$0xf] }
 0x60d   :  { %5159 = vmatpush.bf16.msra.mxu1 %v8397_v58  ;;  %5146 = vmatpush.bf16.msra.mxu0 %v8141_v60  ;;  %v8931_v58 = vld [vmem:[#allocation8 + $0x1c4] sm:$0xf]  ;;  %v8204_v60 = vld [vmem:[#allocation8 + $0x600] sm:$0xf]  ;;  %v7921_v1 = vor.u32 %v8995_v52, %v7918_v57 }
 0x60e   :  { %v7665_v3 = vor.u32 %v8931_v58, %v7662_v59  ;;  %v8174_v40 = vld [vmem:[#allocation8 + $0x5e0] sm:$0xf0] }
 0x60f   :  { %v7726_v38 = vld [vmem:[#allocation8 + $0x260] sm:$0xf0] }
 0x610   :  { %5134 = vmatpush.bf16.msra.mxu3 %v7853_v0  ;;  %5121 = vmatpush.bf16.msra.mxu2 %v7597_v2  ;;  %v9123_v0 = vld [vmem:[#allocation8 + $0x7c4] sm:$0xf] }
 0x611   :  { %5160 = vmatpush.bf16.msra.mxu1 %v8365_v5  ;;  %5147 = vmatpush.bf16.msra.mxu0 %v8109_v35  ;;  %v8987_v2 = vld [vmem:[#allocation8 + $0x384] sm:$0xf]  ;;  %v8205_v35 = vor.u32 %v9071_v61, %v8204_v60  ;;  %v8433_v41 = vor.u32 %v9123_v0, %v8430_v33 }
 0x612   :  { %v8923_v5 = vld [vmem:[#allocation8 + $0x184] sm:$0xf]  ;;  %v7889_v42 = vor.u32 %v8987_v2, %v7886_v4 }
 0x613   :  { %v8142_v52 = vld [vmem:[#allocation8 + $0x5a0] sm:$0xf0] }
 0x614   :  { %5135 = vmatpush.bf16.msra.mxu3 %v7821_v7  ;;  %5122 = vmatpush.bf16.msra.mxu2 %v7565_v9  ;;  %v7633_v7 = vor.u32 %v8923_v5, %v7630_v34  ;;  %v7598_v9 = vld [vmem:[#allocation8 + $0x160] sm:$0xf0] }
 0x615   :  { %5161 = vmatpush.bf16.msra.mxu1 %v8333_v12  ;;  %5148 = vmatpush.bf16.msra.mxu0 %v8077_v14  ;;  %v7601_v12 = vor.u32 %v8915_v8, %v7598_v9  ;;  %v8907_v14 = vld [vmem:[#allocation8 + $0x104] sm:$0xf] }
 0x616   :  { %3513 = vmatmul.bf16.vlgmr.msrb.gmra.mxu2 %v9736_v37  ;;  %3526 = vmatmul.bf16.vlgmr.msrb.gmra.mxu3 %v9738_v30  ;;  %v7569_v17 = vor.u32 %v8907_v14, %v7566_v15  ;;  %v9099_v57 = vld [vmem:[#allocation8 + $0x704] sm:$0xf] }
 0x617   :  { %3539 = vmatmul.bf16.vlgmr.msrb.gmra.mxu0 %v9736_v37  ;;  %3552 = vmatmul.bf16.vlgmr.msrb.gmra.mxu1 %v9738_v30  ;;  %v7725_v37 = vor.u32 %v8951_v39, %v7724_v36  ;;  %v7692_v30 = vld [vmem:[#allocation8 + $0x200] sm:$0xf]  ;;  %v7534_v36 = vld [vmem:[#allocation8 + $0xe0] sm:$0xf0] }
 0x618   :  { %5136 = vmatpush.bf16.msra.mxu3 %v7789_v18  ;;  %5123 = vmatpush.bf16.msra.mxu2 %v7533_v20  ;;  %v7693_v62 = vor.u32 %v8943_v49, %v7692_v30  ;;  %v8963_v18 = vld [vmem:[#allocation8 + $0x2c4] sm:$0xf] }
 0x619   :  { %5162 = vmatpush.bf16.msra.mxu1 %v8301_v23  ;;  %5149 = vmatpush.bf16.msra.mxu0 %v8045_v25  ;;  %v7793_v6 = vor.u32 %v8963_v18, %v7790_v19  ;;  %v8955_v20 = vld [vmem:[#allocation8 + $0x284] sm:$0xf]  ;;  %v7948_v25 = vld [vmem:[#allocation8 + $0x400] sm:$0xf] }
 0x61a   :  { %v7761_v23 = vor.u32 %v8955_v20, %v7758_v21  ;;  %v7949_v28 = vor.u32 %v9007_v26, %v7948_v25  ;;  %v9059_v39 = vld [vmem:[#allocation8 + $0x5c4] sm:$0xf]  ;;  %v3126_v25 = vperm.slane %v9751_v22, 1 }
 0x61b   :  { %v8177_v32 = vor.u32 %v9059_v39, %v8174_v40  ;;  %v7502_v30 = vld [vmem:[#allocation8 + $0xa0] sm:$0xf0]  ;;  %v9000_v40 = vld [vmem:[#allocation8 + $0x3e4] sm:$0xf0] }
 0x61c   :  { %5137 = vmatpush.bf16.msra.mxu3 %v7757_v24  ;;  %5124 = vmatpush.bf16.msra.mxu2 %v7501_v43  ;;  %v8899_v24 = vld [vmem:[#allocation8 + $0xc4] sm:$0xf] }
 0x61d   :  { %5163 = vmatpush.bf16.msra.mxu1 %v8269_v50  ;;  %5150 = vmatpush.bf16.msra.mxu0 %v8013_v46  ;;  %v7537_v43 = vor.u32 %v8899_v24, %v7534_v36  ;;  %v8947_v50 = vld [vmem:[#allocation8 + $0x244] sm:$0xf]  ;;  %v3125_v36 = vperm.slane %v9751_v22, 0 }
 0x61e   :  { %v9107_v46 = vld [vmem:[#allocation8 + $0x744] sm:$0xf]  ;;  %v7729_v47 = vor.u32 %v8947_v50, %v7726_v38 }
 0x61f   :  { %v8369_v29 = vor.u32 %v9107_v46, %v8366_v48  ;;  %v9051_v49 = vld [vmem:[#allocation8 + $0x584] sm:$0xf] }
 0x620   :  { %5138 = vmatpush.bf16.msra.mxu3 %v7725_v37  ;;  %5125 = vmatpush.bf16.msra.mxu2 %v7469_v51  ;;  %v8891_v37 = vld [vmem:[#allocation8 + $0x84] sm:$0xf]  ;;  %v8145_v53 = vor.u32 %v9051_v49, %v8142_v52  ;;  %v7668_v52 = vld [vmem:[#allocation8 + $0x1c8] sm:$0xf] }
 0x621   :  { %5164 = vmatpush.bf16.msra.mxu1 %v8237_v55  ;;  %5151 = vmatpush.bf16.msra.mxu0 %v7981_v56  ;;  %v7505_v51 = vor.u32 %v8891_v37, %v7502_v30  ;;  %v7694_v55 = vld [vmem:[#allocation8 + $0x220] sm:$0xf0]  ;;  %v8992_v37 = vld [vmem:[#allocation8 + $0x3a4] sm:$0xf0] }
 0x622   :  { %v7697_v56 = vor.u32 %v8939_v54, %v7694_v55  ;;  %v8334_v58 = vld [vmem:[#allocation8 + $0x720] sm:$0xf0] }
 0x623   :  { %v8337_v59 = vor.u32 %v9099_v57, %v8334_v58  ;;  %v8883_v60 = vld [vmem:[#allocation8 + $0x44] sm:$0xf]  ;;  %v7860_v57 = vld [vmem:[#allocation8 + $0x348] sm:$0xf] }
 0x624   :  { %5139 = vmatpush.bf16.msra.mxu3 %v7693_v62  ;;  %5126 = vmatpush.bf16.msra.mxu2 %v7437_v63  ;;  %v7470_v61 = vld [vmem:[#allocation8 + $0x60] sm:$0xf0]  ;;  %v8984_v58 = vld [vmem:[#allocation8 + $0x364] sm:$0xf0] }
 0x625   :  { %5165 = vmatpush.bf16.msra.mxu1 %v8205_v35  ;;  %5152 = vmatpush.bf16.msra.mxu0 %v7949_v28  ;;  %v9043_v62 = vld [vmem:[#allocation8 + $0x544] sm:$0xf]  ;;  %v7473_v63 = vor.u32 %v8883_v60, %v7470_v61  ;;  %v7636_v60 = vld [vmem:[#allocation8 + $0x188] sm:$0xf] }
 0x626   :  { %v8110_v0 = vld [vmem:[#allocation8 + $0x560] sm:$0xf0]  ;;  %v8928_v61 = vld [vmem:[#allocation8 + $0x1a4] sm:$0xf0] }
 0x627   :  { %v8113_v33 = vor.u32 %v9043_v62, %v8110_v0  ;;  %v8302_v2 = vld [vmem:[#allocation8 + $0x6e0] sm:$0xf0]  ;;  %v3128_v0 = vperm.slane %v9751_v22, 3 }
 0x628   :  { %5184 = vmatpush.bf16.msrb.mxu3 %v7921_v1  ;;  %5171 = vmatpush.bf16.msrb.mxu2 %v7665_v3  ;;  %v9091_v1 = vld [vmem:[#allocation8 + $0x6c4] sm:$0xf] }
 0x629   :  { %5210 = vmatpush.bf16.msrb.mxu1 %v8433_v41  ;;  %5197 = vmatpush.bf16.msrb.mxu0 %v8177_v32  ;;  %v8305_v3 = vor.u32 %v9091_v1, %v8302_v2  ;;  %v8875_v4 = vld [vmem:[#allocation8 + $0x4] sm:$0xf]  ;;  %v7637_v1 = vor.u32 %v8928_v61, %v7636_v60  ;;  %v7828_v2 = vld [vmem:[#allocation8 + $0x308] sm:$0xf] }
 0x62a   :  { %v7438_v5 = vld [vmem:[#allocation8 + $0x20] sm:$0xf0]  ;;  %v8944_v60 = vld [vmem:[#allocation8 + $0x224] sm:$0xf0] }
 0x62b   :  { %v9035_v34 = vld [vmem:[#allocation8 + $0x504] sm:$0xf]  ;;  %v7441_v35 = vor.u32 %v8875_v4, %v7438_v5  ;;  %v8340_v61 = vld [vmem:[#allocation8 + $0x708] sm:$0xf] }
 0x62c   :  { %5185 = vmatpush.bf16.msrb.mxu3 %v7889_v42  ;;  %5172 = vmatpush.bf16.msrb.mxu2 %v7633_v7  ;;  %v8078_v41 = vld [vmem:[#allocation8 + $0x520] sm:$0xf0] }
 0x62d   :  { %5211 = vmatpush.bf16.msrb.mxu1 %v8401_v27  ;;  %5198 = vmatpush.bf16.msrb.mxu0 %v8145_v53  ;;  %v8081_v42 = vor.u32 %v9035_v34, %v8078_v41  ;;  %v8270_v7 = vld [vmem:[#allocation8 + $0x6a0] sm:$0xf0]  ;;  %v8936_v53 = vld [vmem:[#allocation8 + $0x1e4] sm:$0xf0] }
 0x62e   :  { %v8273_v45 = vor.u32 %v9083_v31, %v8270_v7  ;;  %v9027_v8 = vld [vmem:[#allocation8 + $0x4c4] sm:$0xf]  ;;  %v7604_v34 = vld [vmem:[#allocation8 + $0x148] sm:$0xf]  ;;  %v3127_v31 = vperm.slane %v9751_v22, 2 }
 0x62f   :  { %v8046_v9 = vld [vmem:[#allocation8 + $0x4e0] sm:$0xf0]  ;;  %v7796_v7 = vld [vmem:[#allocation8 + $0x2c8] sm:$0xf] }
 0x630   :  { %5186 = vmatpush.bf16.msrb.mxu3 %v7857_v10  ;;  %5173 = vmatpush.bf16.msrb.mxu2 %v7601_v12  ;;  %v8049_v10 = vor.u32 %v9027_v8, %v8046_v9  ;;  %v8238_v12 = vld [vmem:[#allocation8 + $0x660] sm:$0xf0]  ;;  %v8968_v9 = vld [vmem:[#allocation8 + $0x2e4] sm:$0xf0] }
 0x631   :  { %5212 = vmatpush.bf16.msrb.mxu1 %v8369_v29  ;;  %5199 = vmatpush.bf16.msrb.mxu0 %v8113_v33  ;;  %v8241_v13 = vor.u32 %v9075_v44, %v8238_v12  ;;  %v9019_v14 = vld [vmem:[#allocation8 + $0x484] sm:$0xf]  ;;  %v7892_v29 = vld [vmem:[#allocation8 + $0x388] sm:$0xf]  ;;  %v7861_v33 = vor.u32 %v8984_v58, %v7860_v57 }
 0x632   :  { %v8014_v15 = vld [vmem:[#allocation8 + $0x4a0] sm:$0xf0]  ;;  %v7893_v55 = vor.u32 %v8992_v37, %v7892_v29  ;;  %v9128_v44 = vld [vmem:[#allocation8 + $0x7e4] sm:$0xf0] }
 0x633   :  { %v8206_v18 = vld [vmem:[#allocation8 + $0x620] sm:$0xf0]  ;;  %v7572_v12 = vld [vmem:[#allocation8 + $0x108] sm:$0xf] }
 0x634   :  { %5187 = vmatpush.bf16.msrb.mxu3 %v7825_v16  ;;  %5174 = vmatpush.bf16.msrb.mxu2 %v7569_v17  ;;  %v8017_v16 = vor.u32 %v9019_v14, %v8014_v15  ;;  %v9067_v17 = vld [vmem:[#allocation8 + $0x604] sm:$0xf]  ;;  %v8960_v22 = vld [vmem:[#allocation8 + $0x2a4] sm:$0xf0] }
 0x635   :  { %5213 = vmatpush.bf16.msrb.mxu1 %v8337_v59  ;;  %5200 = vmatpush.bf16.msrb.mxu0 %v8081_v42  ;;  %v8209_v19 = vor.u32 %v9067_v17, %v8206_v18  ;;  %v7982_v20 = vld [vmem:[#allocation8 + $0x460] sm:$0xf0]  ;;  %v7797_v18 = vor.u32 %v8968_v9, %v7796_v7  ;;  %v7700_v58 = vld [vmem:[#allocation8 + $0x208] sm:$0xf]  ;;  %v7894_v9 = vld [vmem:[#allocation8 + $0x3a8] sm:$0xf0] }
 0x636   :  { %v7950_v11 = vld [vmem:[#allocation8 + $0x420] sm:$0xf0] }
 0x638   :  { %5188 = vmatpush.bf16.msrb.mxu3 %v7793_v6  ;;  %5175 = vmatpush.bf16.msrb.mxu2 %v7537_v43  ;;  %v9011_v6 = vld [vmem:[#allocation8 + $0x444] sm:$0xf]  ;;  %v7924_v43 = vld [vmem:[#allocation8 + $0x3c8] sm:$0xf] }
 0x639   :  { %5214 = vmatpush.bf16.msrb.mxu1 %v8305_v3  ;;  %5201 = vmatpush.bf16.msrb.mxu0 %v8049_v10  ;;  %v7985_v21 = vor.u32 %v9011_v6, %v7982_v20  ;;  %v8976_v3 = vld [vmem:[#allocation8 + $0x324] sm:$0xf0] }
 0x63a   :  { %v7829_v42 = vor.u32 %v8976_v3, %v7828_v2  ;;  %v8436_v10 = vld [vmem:[#allocation8 + $0x7c8] sm:$0xf] }
 0x63b   :  { %v7764_v6 = vld [vmem:[#allocation8 + $0x288] sm:$0xf] }
 0x63c   :  { %5189 = vmatpush.bf16.msrb.mxu3 %v7761_v23  ;;  %5176 = vmatpush.bf16.msrb.mxu2 %v7505_v51  ;;  %v9003_v23 = vld [vmem:[#allocation8 + $0x404] sm:$0xf]  ;;  %v7476_v2 = vld [vmem:[#allocation8 + $0x48] sm:$0xf] }
 0x63d   :  { %5215 = vmatpush.bf16.msrb.mxu1 %v8273_v45  ;;  %5202 = vmatpush.bf16.msrb.mxu0 %v8017_v16  ;;  %v7953_v26 = vor.u32 %v9003_v23, %v7950_v11  ;;  %v8404_v23 = vld [vmem:[#allocation8 + $0x788] sm:$0xf] }
 0x63e   :  { %v9120_v11 = vld [vmem:[#allocation8 + $0x7a4] sm:$0xf0] }
 0x63f   :  { %v8888_v3 = vld [vmem:[#allocation8 + $0x64] sm:$0xf0] }
 0x640   :  { %5190 = vmatpush.bf16.msrb.mxu3 %v7729_v47  ;;  %5177 = vmatpush.bf16.msrb.mxu2 %v7473_v63  ;;  %v7925_v47 = vor.u32 %v9000_v40, %v7924_v43  ;;  %v7765_v40 = vor.u32 %v8960_v22, %v7764_v6  ;;  %v7477_v7 = vor.u32 %v8888_v3, %v7476_v2  ;;  %v8980_v22 = vld [vmem:[#allocation8 + $0x34c] sm:$0xf] }
 0x641   :  { %5216 = vmatpush.bf16.msrb.mxu1 %v8241_v13  ;;  %5203 = vmatpush.bf16.msrb.mxu0 %v7985_v21  ;;  %v8912_v13 = vld [vmem:[#allocation8 + $0x124] sm:$0xf0]  ;;  %v8956_v3 = vld [vmem:[#allocation8 + $0x28c] sm:$0xf] }
 0x642   :  { %v7573_v21 = vor.u32 %v8912_v13, %v7572_v12  ;;  %v8084_v12 = vld [vmem:[#allocation8 + $0x508] sm:$0xf] }
 0x643   :  { %v9040_v13 = vld [vmem:[#allocation8 + $0x524] sm:$0xf0] }
 0x644   :  { %5191 = vmatpush.bf16.msrb.mxu3 %v7697_v56  ;;  %5178 = vmatpush.bf16.msrb.mxu2 %v7441_v35  ;;  %v7669_v56 = vor.u32 %v8936_v53, %v7668_v52  ;;  %v8920_v35 = vld [vmem:[#allocation8 + $0x164] sm:$0xf0] }
 0x645   :  { %5217 = vmatpush.bf16.msrb.mxu1 %v8209_v19  ;;  %5204 = vmatpush.bf16.msrb.mxu0 %v7953_v26  ;;  %v7605_v8 = vor.u32 %v8920_v35, %v7604_v34  ;;  %v8437_v19 = vor.u32 %v9128_v44, %v8436_v10  ;;  %v8896_v53 = vld [vmem:[#allocation8 + $0xa4] sm:$0xf0]  ;;  %v7701_v34 = vor.u32 %v8944_v60, %v7700_v58  ;;  %v8438_v58 = vld [vmem:[#allocation8 + $0x7e8] sm:$0xf0] }
 0x646   :  { %v7444_v10 = vld [vmem:[#allocation8 + $0x8] sm:$0xf] }
 0x647   :  { %v8880_v44 = vld [vmem:[#allocation8 + $0x24] sm:$0xf0] }
 0x648   :  { %v7445_v6 = vor.u32 %v8880_v44, %v7444_v10 }
 0x684   :  { %v3488_v27 = vpop.f32.mrf.mxu0  ;;  %v3501_v28 = vpop.f32.mrf.mxu1 }
 0x685   :  { %v3489_v24 = vadd.f32 %v3488_v27, %v3126_v25 }
 0x687   :  { %v3502_v39 = vadd.f32 %v3501_v28, %v3489_v24  ;;  %v7540_v28 = vld [vmem:[#allocation8 + $0xc8] sm:$0xf] }
 0x688   :  { %v8904_v24 = vld [vmem:[#allocation8 + $0xe4] sm:$0xf0] }
 0x689   :  { %v3558_v32 = vmax.f32 %v3502_v39, 0.0  ;;  %v3462_v50 = vpop.f32.mrf.mxu2  ;;  %v3475_v38 = vpop.f32.mrf.mxu3  ;;  %v9064_v39 = vld [vmem:[#allocation8 + $0x5e4] sm:$0xf0]  ;;  %v7541_v37 = vor.u32 %v8904_v24, %v7540_v28  ;;  %v8924_v28 = vld [vmem:[#allocation8 + $0x18c] sm:$0xf] }
 0x68a   :  { %v3463_v46 = vadd.f32 %v3462_v50, %v3125_v36  ;;  %v8180_v36 = vld [vmem:[#allocation8 + $0x5c8] sm:$0xf]  ;;  %v7638_v24 = vld [vmem:[#allocation8 + $0x1a8] sm:$0xf0] }
 0x68b   :  { %v9755_v48 = vpack.c.bf16 %v3558_v32, %v3558_v32  ;;  %v8405_v32 = vor.u32 %v9120_v11, %v8404_v23  ;;  %v7732_v50 = vld [vmem:[#allocation8 + $0x248] sm:$0xf]  ;;  %v7862_v23 = vld [vmem:[#allocation8 + $0x368] sm:$0xf0] }
 0x68c   :  { %v3476_v30 = vadd.f32 %v3475_v38, %v3463_v46  ;;  %v3490_v49 = vpop.f32.mrf.mxu0  ;;  %v3503_v51 = vpop.f32.mrf.mxu1  ;;  %v8952_v38 = vld [vmem:[#allocation8 + $0x264] sm:$0xf0] }
 0x68d   :  { %5140 = vmatmul.bf16.vlgmr.msra.gmra.mxu3 %v9755_v48  ;;  %v8372_v46 = vld [vmem:[#allocation8 + $0x748] sm:$0xf] }
 0x68e   :  { %v3557_v54 = vmax.f32 %v3476_v30, 0.0  ;;  %5236 = vmatpush.bf16.msra.mxu3 %v7925_v47  ;;  %v9112_v47 = vld [vmem:[#allocation8 + $0x764] sm:$0xf0]  ;;  %v8181_v30 = vor.u32 %v9064_v39, %v8180_v36  ;;  %v7865_v36 = vor.u32 %v8980_v22, %v7862_v23  ;;  %v8150_v22 = vld [vmem:[#allocation8 + $0x5a8] sm:$0xf0] }
 0x68f   :  { %v7508_v49 = vld [vmem:[#allocation8 + $0x88] sm:$0xf]  ;;  %v8373_v57 = vor.u32 %v9112_v47, %v8372_v46 }
 0x690   :  { %v9758_v59 = vpack.c.bf16 %v3557_v54, %v3557_v54  ;;  %v8148_v54 = vld [vmem:[#allocation8 + $0x588] sm:$0xf] }
 0x691   :  { %v3464_v62 = vpop.f32.mrf.mxu2  ;;  %v3477_v63 = vpop.f32.mrf.mxu3  ;;  %v8244_v39 = vld [vmem:[#allocation8 + $0x648] sm:$0xf] }
 0x692   :  { %5237 = vmatpush.bf16.msra.mxu3 %v7893_v55  ;;  %5127 = vmatmul.bf16.vlgmr.msra.gmra.mxu2 %v9758_v59  ;;  %v9056_v55 = vld [vmem:[#allocation8 + $0x5a4] sm:$0xf0]  ;;  %v7509_v63 = vor.u32 %v8896_v53, %v7508_v49  ;;  %v7606_v49 = vld [vmem:[#allocation8 + $0x168] sm:$0xf0] }
 0x693   :  { %5223 = vmatpush.bf16.msra.mxu2 %v7669_v56  ;;  %v7733_v56 = vor.u32 %v8952_v38, %v7732_v50  ;;  %v9104_v62 = vld [vmem:[#allocation8 + $0x724] sm:$0xf0]  ;;  %v7830_v50 = vld [vmem:[#allocation8 + $0x328] sm:$0xf0]  ;;  %v7641_v38 = vor.u32 %v8924_v28, %v7638_v24 }
 0x694   :  { %v3540_v4 = vpop.f32.mrf.mxu0  ;;  %v3553_v5 = vpop.f32.mrf.mxu1  ;;  %v8341_v35 = vor.u32 %v9104_v62, %v8340_v61  ;;  %v8020_v46 = vld [vmem:[#allocation8 + $0x488] sm:$0xf]  ;;  %v8342_v28 = vld [vmem:[#allocation8 + $0x728] sm:$0xf0] }
 0x695   :  { %v3541_v41 = vadd.f32 %v3540_v4, %v3128_v0  ;;  %v8149_v0 = vor.u32 %v9056_v55, %v8148_v54  ;;  %v8116_v4 = vld [vmem:[#allocation8 + $0x548] sm:$0xf]  ;;  %v8964_v54 = vld [vmem:[#allocation8 + $0x2cc] sm:$0xf] }
 0x696   :  { %5238 = vmatpush.bf16.msra.mxu3 %v7861_v33  ;;  %v8996_v33 = vld [vmem:[#allocation8 + $0x3cc] sm:$0xf]  ;;  %v9024_v47 = vld [vmem:[#allocation8 + $0x4a4] sm:$0xf0] }
 0x697   :  { %v3554_v45 = vadd.f32 %v3553_v5, %v3541_v41  ;;  %5224 = vmatpush.bf16.msra.mxu2 %v7637_v1  ;;  %v7926_v1 = vld [vmem:[#allocation8 + $0x3e8] sm:$0xf0]  ;;  %v9048_v5 = vld [vmem:[#allocation8 + $0x564] sm:$0xf0]  ;;  %v8021_v55 = vor.u32 %v9024_v47, %v8020_v46 }
 0x698   :  { %v7929_v41 = vor.u32 %v8996_v33, %v7926_v1  ;;  %v9072_v53 = vld [vmem:[#allocation8 + $0x624] sm:$0xf0]  ;;  %v7574_v33 = vld [vmem:[#allocation8 + $0x128] sm:$0xf0] }
 0x699   :  { %v3560_v14 = vmax.f32 %v3554_v45, 0.0  ;;  %v3514_v15 = vpop.f32.mrf.mxu2  ;;  %v3527_v16 = vpop.f32.mrf.mxu3  ;;  %v8117_v45 = vor.u32 %v9048_v5, %v8116_v4  ;;  %v7988_v61 = vld [vmem:[#allocation8 + $0x448] sm:$0xf]  ;;  %v7766_v5 = vld [vmem:[#allocation8 + $0x2a8] sm:$0xf0] }
 0x69a   :  { %5239 = vmatpush.bf16.msra.mxu3 %v7829_v42  ;;  %v3515_v17 = vadd.f32 %v3514_v15, %v3127_v31  ;;  %v8308_v42 = vld [vmem:[#allocation8 + $0x6c8] sm:$0xf]  ;;  %v8932_v15 = vld [vmem:[#allocation8 + $0x1cc] sm:$0xf]  ;;  %v7769_v10 = vor.u32 %v8956_v3, %v7766_v5  ;;  %v7868_v3 = vld [vmem:[#allocation8 + $0x350] sm:$0xf] }
 0x69b   :  { %v9763_v20 = vpack.c.bf16 %v3560_v14, %v3560_v14  ;;  %5225 = vmatpush.bf16.msra.mxu2 %v7605_v8  ;;  %v9096_v31 = vld [vmem:[#allocation8 + $0x6e4] sm:$0xf0]  ;;  %v8988_v8 = vld [vmem:[#allocation8 + $0x38c] sm:$0xf] }
 0x69c   :  { %v3528_v25 = vadd.f32 %v3527_v16, %v3515_v17  ;;  %v3542_v26 = vpop.f32.mrf.mxu0  ;;  %v3555_v27 = vpop.f32.mrf.mxu1  ;;  %v8309_v14 = vor.u32 %v9096_v31, %v8308_v42  ;;  %v7670_v16 = vld [vmem:[#allocation8 + $0x1e8] sm:$0xf0]  ;;  %v7897_v17 = vor.u32 %v8988_v8, %v7894_v9  ;;  %v9016_v62 = vld [vmem:[#allocation8 + $0x464] sm:$0xf0] }
 0x69d   :  { %5166 = vmatmul.bf16.vlgmr.msra.gmra.mxu1 %v9763_v20  ;;  %5192 = vmatmul.bf16.vlgmr.msrb.gmra.mxu3 %v9755_v48  ;;  %v7673_v11 = vor.u32 %v8932_v15, %v7670_v16  ;;  %v9032_v26 = vld [vmem:[#allocation8 + $0x4e4] sm:$0xf0]  ;;  %v7989_v4 = vor.u32 %v9016_v62, %v7988_v61  ;;  %v9060_v8 = vld [vmem:[#allocation8 + $0x5cc] sm:$0xf]  ;;  %v7676_v61 = vld [vmem:[#allocation8 + $0x1d0] sm:$0xf] }
 0x69e   :  { %v3559_v43 = vmax.f32 %v3528_v25, 0.0  ;;  %5240 = vmatpush.bf16.msra.mxu3 %v7797_v18  ;;  %5262 = vmatpush.bf16.msra.mxu1 %v8437_v19  ;;  %v8276_v18 = vld [vmem:[#allocation8 + $0x688] sm:$0xf]  ;;  %v8182_v9 = vld [vmem:[#allocation8 + $0x5e8] sm:$0xf0] }
 0x69f   :  { %5226 = vmatpush.bf16.msra.mxu2 %v7573_v21  ;;  %v9088_v19 = vld [vmem:[#allocation8 + $0x6a4] sm:$0xf0]  ;;  %v8085_v21 = vor.u32 %v9040_v13, %v8084_v12  ;;  %v8948_v12 = vld [vmem:[#allocation8 + $0x24c] sm:$0xf]  ;;  %v8937_v62 = vld [vmem:[#allocation8 + $0x1ec] sm:$0xf0] }
 0x6a0   :  { %v9767_v29 = vpack.c.bf16 %v3559_v43, %v3559_v43  ;;  %v8052_v25 = vld [vmem:[#allocation8 + $0x4c8] sm:$0xf]  ;;  %v8277_v27 = vor.u32 %v9088_v19, %v8276_v18  ;;  %v9108_v15 = vld [vmem:[#allocation8 + $0x74c] sm:$0xf]  ;;  %v8185_v18 = vor.u32 %v9060_v8, %v8182_v9  ;;  %v7677_v5 = vor.u32 %v8937_v62, %v7676_v61 }
 0x6a1   :  { %v3516_v51 = vpop.f32.mrf.mxu2  ;;  %v3529_v52 = vpop.f32.mrf.mxu3  ;;  %v9080_v43 = vld [vmem:[#allocation8 + $0x664] sm:$0xf0]  ;;  %v8374_v16 = vld [vmem:[#allocation8 + $0x768] sm:$0xf0] }
 0x6a2   :  { %5241 = vmatpush.bf16.msra.mxu3 %v7765_v40  ;;  %5263 = vmatpush.bf16.msra.mxu1 %v8405_v32  ;;  %v8053_v40 = vor.u32 %v9032_v26, %v8052_v25  ;;  %v8972_v32 = vld [vmem:[#allocation8 + $0x30c] sm:$0xf]  ;;  %v8212_v52 = vld [vmem:[#allocation8 + $0x608] sm:$0xf] }
 0x6a3   :  { %5153 = vmatmul.bf16.vlgmr.msra.gmra.mxu0 %v9767_v29  ;;  %5179 = vmatmul.bf16.vlgmr.msrb.gmra.mxu2 %v9758_v59  ;;  %v7833_v51 = vor.u32 %v8972_v32, %v7830_v50  ;;  %v7956_v42 = vld [vmem:[#allocation8 + $0x408] sm:$0xf]  ;;  %v8892_v19 = vld [vmem:[#allocation8 + $0x8c] sm:$0xf] }
 0x6a4   :  { %5227 = vmatpush.bf16.msra.mxu2 %v7541_v37  ;;  %5249 = vmatpush.bf16.msra.mxu0 %v8181_v30  ;;  %v8245_v37 = vor.u32 %v9080_v43, %v8244_v39  ;;  %v8916_v30 = vld [vmem:[#allocation8 + $0x14c] sm:$0xf]  ;;  %v9008_v31 = vld [vmem:[#allocation8 + $0x424] sm:$0xf0]  ;;  %v7932_v39 = vld [vmem:[#allocation8 + $0x3d0] sm:$0xf] }
 0x6a5   :  { %v7609_v60 = vor.u32 %v8916_v30, %v7606_v49  ;;  %v7957_v13 = vor.u32 %v9008_v31, %v7956_v42  ;;  %v8940_v25 = vld [vmem:[#allocation8 + $0x20c] sm:$0xf]  ;;  %v9001_v43 = vld [vmem:[#allocation8 + $0x3ec] sm:$0xf0] }
 0x6a6   :  { %5242 = vmatpush.bf16.msra.mxu3 %v7733_v56  ;;  %5264 = vmatpush.bf16.msra.mxu1 %v8373_v57  ;;  %v7798_v56 = vld [vmem:[#allocation8 + $0x2e8] sm:$0xf0]  ;;  %v7644_v42 = vld [vmem:[#allocation8 + $0x190] sm:$0xf] }
 0x6a7   :  { %v9124_v57 = vld [vmem:[#allocation8 + $0x7cc] sm:$0xf]  ;;  %v7801_v1 = vor.u32 %v8964_v54, %v7798_v56  ;;  %v8993_v54 = vld [vmem:[#allocation8 + $0x3ac] sm:$0xf0] }
 0x6a8   :  { %5228 = vmatpush.bf16.msra.mxu2 %v7509_v63  ;;  %5250 = vmatpush.bf16.msra.mxu0 %v8149_v0  ;;  %v8213_v63 = vor.u32 %v9072_v53, %v8212_v52  ;;  %v8908_v0 = vld [vmem:[#allocation8 + $0x10c] sm:$0xf]  ;;  %v8441_v2 = vor.u32 %v9124_v57, %v8438_v58  ;;  %v7900_v53 = vld [vmem:[#allocation8 + $0x390] sm:$0xf] }
 0x6a9   :  { %v7702_v26 = vld [vmem:[#allocation8 + $0x228] sm:$0xf0]  ;;  %v8929_v31 = vld [vmem:[#allocation8 + $0x1ac] sm:$0xf0] }
 0x6aa   :  { %5243 = vmatpush.bf16.msra.mxu3 %v7701_v34  ;;  %5265 = vmatpush.bf16.msra.mxu1 %v8341_v35  ;;  %v9116_v34 = vld [vmem:[#allocation8 + $0x78c] sm:$0xf]  ;;  %v7705_v46 = vor.u32 %v8940_v25, %v7702_v26  ;;  %v9129_v25 = vld [vmem:[#allocation8 + $0x7ec] sm:$0xf0] }
 0x6ab   :  { %v8406_v35 = vld [vmem:[#allocation8 + $0x7a8] sm:$0xf0] }
 0x6ac   :  { %5229 = vmatpush.bf16.msra.mxu2 %v7477_v7  ;;  %5251 = vmatpush.bf16.msra.mxu0 %v8117_v45  ;;  %v8900_v7 = vld [vmem:[#allocation8 + $0xcc] sm:$0xf]  ;;  %v8409_v44 = vor.u32 %v9116_v34, %v8406_v35 }
 0x6ad   :  { %5218 = vmatmul.bf16.vlgmr.msrb.gmra.mxu1 %v9763_v20  ;;  %5244 = vmatmul.bf16.vlgmr.msra.gmra.mxu3 %v9755_v48  ;;  %v7542_v45 = vld [vmem:[#allocation8 + $0xe8] sm:$0xf0] }
 0x6ae   :  { %5288 = vmatpush.bf16.msrb.mxu3 %v7929_v41  ;;  %5266 = vmatpush.bf16.msra.mxu1 %v8309_v14  ;;  %v7577_v41 = vor.u32 %v8908_v0, %v7574_v33  ;;  %v7734_v14 = vld [vmem:[#allocation8 + $0x268] sm:$0xf0] }
 0x6af   :  { %v7737_v23 = vor.u32 %v8948_v12, %v7734_v14  ;;  %v7478_v32 = vld [vmem:[#allocation8 + $0x68] sm:$0xf0]  ;;  %v7645_v12 = vor.u32 %v8929_v31, %v7644_v42  ;;  %v9105_v42 = vld [vmem:[#allocation8 + $0x72c] sm:$0xf0] }
 0x6b0   :  { %5230 = vmatpush.bf16.msra.mxu2 %v7445_v6  ;;  %5252 = vmatpush.bf16.msra.mxu0 %v8085_v21  ;;  %v7510_v6 = vld [vmem:[#allocation8 + $0xa8] sm:$0xf0] }
 0x6b1   :  { %v9052_v21 = vld [vmem:[#allocation8 + $0x58c] sm:$0xf]  ;;  %v7513_v24 = vor.u32 %v8892_v19, %v7510_v6 }
 0x6b2   :  { %5289 = vmatpush.bf16.msrb.mxu3 %v7897_v17  ;;  %5267 = vmatpush.bf16.msra.mxu1 %v8277_v27  ;;  %v7545_v17 = vor.u32 %v8900_v7, %v7542_v45  ;;  %v9100_v27 = vld [vmem:[#allocation8 + $0x70c] sm:$0xf] }
 0x6b3   :  { %5205 = vmatmul.bf16.vlgmr.msrb.gmra.mxu0 %v9767_v29  ;;  %5231 = vmatmul.bf16.vlgmr.msra.gmra.mxu2 %v9758_v59  ;;  %v9044_v50 = vld [vmem:[#allocation8 + $0x54c] sm:$0xf]  ;;  %v8345_v47 = vor.u32 %v9100_v27, %v8342_v28 }
 0x6b4   :  { %5275 = vmatpush.bf16.msrb.mxu2 %v7673_v11  ;;  %5253 = vmatpush.bf16.msra.mxu0 %v8053_v40  ;;  %v8377_v11 = vor.u32 %v9108_v15, %v8374_v16  ;;  %v8884_v40 = vld [vmem:[#allocation8 + $0x4c] sm:$0xf]  ;;  %v7612_v16 = vld [vmem:[#allocation8 + $0x150] sm:$0xf] }
 0x6b5   :  { %v9092_v30 = vld [vmem:[#allocation8 + $0x6cc] sm:$0xf] }
 0x6b6   :  { %5290 = vmatpush.bf16.msrb.mxu3 %v7865_v36  ;;  %5268 = vmatpush.bf16.msra.mxu1 %v8245_v37  ;;  %v8153_v36 = vor.u32 %v9052_v21, %v8150_v22  ;;  %v7933_v37 = vor.u32 %v9001_v43, %v7932_v39  ;;  %v8310_v49 = vld [vmem:[#allocation8 + $0x6e8] sm:$0xf0]  ;;  %v7804_v21 = vld [vmem:[#allocation8 + $0x2d0] sm:$0xf] }
 0x6b7   :  { %v7446_v56 = vld [vmem:[#allocation8 + $0x28] sm:$0xf0]  ;;  %v8913_v39 = vld [vmem:[#allocation8 + $0x12c] sm:$0xf0] }
 0x6b8   :  { %5276 = vmatpush.bf16.msrb.mxu2 %v7641_v38  ;;  %5254 = vmatpush.bf16.msra.mxu0 %v8021_v55  ;;  %v8118_v38 = vld [vmem:[#allocation8 + $0x568] sm:$0xf0] }
 0x6b9   :  { %v8121_v52 = vor.u32 %v9044_v50, %v8118_v38  ;;  %v8876_v55 = vld [vmem:[#allocation8 + $0xc] sm:$0xf]  ;;  %v8961_v38 = vld [vmem:[#allocation8 + $0x2ac] sm:$0xf0] }
 0x6ba   :  { %5291 = vmatpush.bf16.msrb.mxu3 %v7833_v51  ;;  %5269 = vmatpush.bf16.msra.mxu1 %v8213_v63  ;;  %v7481_v51 = vor.u32 %v8884_v40, %v7478_v32  ;;  %v9036_v57 = vld [vmem:[#allocation8 + $0x50c] sm:$0xf]  ;;  %v7901_v63 = vor.u32 %v8993_v54, %v7900_v53  ;;  %v7772_v32 = vld [vmem:[#allocation8 + $0x290] sm:$0xf] }
 0x6bb   :  { %v8086_v58 = vld [vmem:[#allocation8 + $0x528] sm:$0xf0]  ;;  %v8188_v53 = vld [vmem:[#allocation8 + $0x5d0] sm:$0xf] }
 0x6bc   :  { %5277 = vmatpush.bf16.msrb.mxu2 %v7609_v60  ;;  %5255 = vmatpush.bf16.msra.mxu0 %v7989_v4  ;;  %v8313_v60 = vor.u32 %v9092_v30, %v8310_v49  ;;  %v9084_v0 = vld [vmem:[#allocation8 + $0x68c] sm:$0xf]  ;;  %v8985_v4 = vld [vmem:[#allocation8 + $0x36c] sm:$0xf0] }
 0x6bd   :  { %5270 = vmatmul.bf16.vlgmr.msra.gmra.mxu1 %v9763_v20  ;;  %v8278_v33 = vld [vmem:[#allocation8 + $0x6a8] sm:$0xf0]  ;;  %v7869_v7 = vor.u32 %v8985_v4, %v7868_v3  ;;  %v9065_v54 = vld [vmem:[#allocation8 + $0x5ec] sm:$0xf0] }
 0x6be   :  { %5292 = vmatpush.bf16.msrb.mxu3 %v7801_v1  ;;  %5314 = vmatpush.bf16.msrb.mxu1 %v8441_v2  ;;  %v7449_v1 = vor.u32 %v8876_v55, %v7446_v56  ;;  %v8089_v2 = vor.u32 %v9036_v57, %v8086_v58  ;;  %v9028_v34 = vld [vmem:[#allocation8 + $0x4cc] sm:$0xf]  ;;  %v7773_v55 = vor.u32 %v8961_v38, %v7772_v32  ;;  %v7740_v58 = vld [vmem:[#allocation8 + $0x250] sm:$0xf]  ;;  %v8981_v32 = vld [vmem:[#allocation8 + $0x354] sm:$0xf] }
 0x6bf   :  { %v8054_v35 = vld [vmem:[#allocation8 + $0x4e8] sm:$0xf0]  ;;  %v8189_v62 = vor.u32 %v9065_v54, %v8188_v53  ;;  %v9057_v3 = vld [vmem:[#allocation8 + $0x5ac] sm:$0xf0]  ;;  %v7870_v38 = vld [vmem:[#allocation8 + $0x370] sm:$0xf0] }
 0x6c0   :  { %5278 = vmatpush.bf16.msrb.mxu2 %v7577_v41  ;;  %5256 = vmatpush.bf16.msra.mxu0 %v7957_v13  ;;  %v8281_v41 = vor.u32 %v9084_v0, %v8278_v33  ;;  %v9076_v45 = vld [vmem:[#allocation8 + $0x64c] sm:$0xf]  ;;  %v8057_v9 = vor.u32 %v9028_v34, %v8054_v35  ;;  %v9113_v0 = vld [vmem:[#allocation8 + $0x76c] sm:$0xf0] }
 0x6c1   :  { %v8246_v8 = vld [vmem:[#allocation8 + $0x668] sm:$0xf0]  ;;  %v7516_v33 = vld [vmem:[#allocation8 + $0x90] sm:$0xf] }
 0x6c2   :  { %5293 = vmatpush.bf16.msrb.mxu3 %v7769_v10  ;;  %5315 = vmatpush.bf16.msrb.mxu1 %v8409_v44  ;;  %v7836_v10 = vld [vmem:[#allocation8 + $0x310] sm:$0xf]  ;;  %v9020_v13 = vld [vmem:[#allocation8 + $0x48c] sm:$0xf]  ;;  %v8249_v15 = vor.u32 %v9076_v45, %v8246_v8  ;;  %v8997_v45 = vld [vmem:[#allocation8 + $0x3d4] sm:$0xf] }
 0x6c3   :  { %5257 = vmatmul.bf16.vlgmr.msra.gmra.mxu0 %v9767_v29  ;;  %v8977_v44 = vld [vmem:[#allocation8 + $0x32c] sm:$0xf0]  ;;  %v8022_v14 = vld [vmem:[#allocation8 + $0x4a8] sm:$0xf0]  ;;  %v7934_v8 = vld [vmem:[#allocation8 + $0x3f0] sm:$0xf0] }
 0x6c4   :  { %5279 = vmatpush.bf16.msrb.mxu2 %v7545_v17  ;;  %5301 = vmatpush.bf16.msrb.mxu0 %v8185_v18  ;;  %v8921_v17 = vld [vmem:[#allocation8 + $0x16c] sm:$0xf0]  ;;  %v7837_v18 = vor.u32 %v8977_v44, %v7836_v10  ;;  %v9068_v19 = vld [vmem:[#allocation8 + $0x60c] sm:$0xf]  ;;  %v8025_v22 = vor.u32 %v9020_v13, %v8022_v14 }
 0x6c5   :  { %v8214_v6 = vld [vmem:[#allocation8 + $0x628] sm:$0xf0]  ;;  %v7613_v26 = vor.u32 %v8921_v17, %v7612_v16  ;;  %v8945_v35 = vld [vmem:[#allocation8 + $0x22c] sm:$0xf0] }
 0x6c6   :  { %5294 = vmatpush.bf16.msrb.mxu3 %v7737_v23  ;;  %5316 = vmatpush.bf16.msrb.mxu1 %v8377_v11  ;;  %v8969_v23 = vld [vmem:[#allocation8 + $0x2ec] sm:$0xf0]  ;;  %v9012_v27 = vld [vmem:[#allocation8 + $0x44c] sm:$0xf] }
 0x6c7   :  { %v8444_v11 = vld [vmem:[#allocation8 + $0x7d0] sm:$0xf]  ;;  %v7990_v28 = vld [vmem:[#allocation8 + $0x468] sm:$0xf0]  ;;  %v7805_v43 = vor.u32 %v8969_v23, %v7804_v21  ;;  %v7902_v21 = vld [vmem:[#allocation8 + $0x3b0] sm:$0xf0] }
 0x6c8   :  { %5280 = vmatpush.bf16.msrb.mxu2 %v7513_v24  ;;  %5302 = vmatpush.bf16.msrb.mxu0 %v8153_v36  ;;  %v8217_v24 = vor.u32 %v9068_v19, %v8214_v6  ;;  %v7580_v36 = vld [vmem:[#allocation8 + $0x110] sm:$0xf]  ;;  %v8445_v40 = vor.u32 %v9129_v25, %v8444_v11  ;;  %v7993_v50 = vor.u32 %v9012_v27, %v7990_v28  ;;  %v9004_v30 = vld [vmem:[#allocation8 + $0x40c] sm:$0xf]  ;;  %v8989_v6 = vld [vmem:[#allocation8 + $0x394] sm:$0xf] }
 0x6c9   :  { %v7958_v49 = vld [vmem:[#allocation8 + $0x428] sm:$0xf0]  ;;  %v8889_v10 = vld [vmem:[#allocation8 + $0x6c] sm:$0xf0]  ;;  %v7678_v27 = vld [vmem:[#allocation8 + $0x1f0] sm:$0xf0] }
 0x6ca   :  { %5295 = vmatpush.bf16.msrb.mxu3 %v7705_v46  ;;  %5317 = vmatpush.bf16.msrb.mxu1 %v8345_v47  ;;  %v8412_v46 = vld [vmem:[#allocation8 + $0x790] sm:$0xf]  ;;  %v7961_v57 = vor.u32 %v9004_v30, %v7958_v49  ;;  %v7646_v30 = vld [vmem:[#allocation8 + $0x1b0] sm:$0xf0] }
 0x6cb   :  { %v9121_v47 = vld [vmem:[#allocation8 + $0x7ac] sm:$0xf0] }
 0x6cc   :  { %5281 = vmatpush.bf16.msrb.mxu2 %v7481_v51  ;;  %5303 = vmatpush.bf16.msrb.mxu0 %v8121_v52  ;;  %v7548_v51 = vld [vmem:[#allocation8 + $0xd0] sm:$0xf]  ;;  %v8413_v56 = vor.u32 %v9121_v47, %v8412_v46 }
 0x6cd   :  { %5296 = vmatmul.bf16.vlgmr.msrb.gmra.mxu3 %v9755_v48  ;;  %v8905_v52 = vld [vmem:[#allocation8 + $0xec] sm:$0xf0] }
 0x6ce   :  { %5340 = vmatpush.bf16.msra.mxu3 %v7933_v37  ;;  %5318 = vmatpush.bf16.msrb.mxu1 %v8313_v60  ;;  %v7581_v37 = vor.u32 %v8913_v39, %v7580_v36  ;;  %v8953_v60 = vld [vmem:[#allocation8 + $0x26c] sm:$0xf0]  ;;  %v7549_v61 = vor.u32 %v8905_v52, %v7548_v51  ;;  %v7873_v51 = vor.u32 %v8981_v32, %v7870_v38  ;;  %v8158_v32 = vld [vmem:[#allocation8 + $0x5b0] sm:$0xf0] }
 0x6cf   :  { %v7741_v4 = vor.u32 %v8953_v60, %v7740_v58  ;;  %v8124_v44 = vld [vmem:[#allocation8 + $0x550] sm:$0xf]  ;;  %v8941_v38 = vld [vmem:[#allocation8 + $0x214] sm:$0xf] }
 0x6d0   :  { %5282 = vmatpush.bf16.msrb.mxu2 %v7449_v1  ;;  %5304 = vmatpush.bf16.msrb.mxu0 %v8089_v2  ;;  %v8897_v1 = vld [vmem:[#allocation8 + $0xac] sm:$0xf0] }
 0x6d1   :  { %v8156_v2 = vld [vmem:[#allocation8 + $0x590] sm:$0xf]  ;;  %v7517_v31 = vor.u32 %v8897_v1, %v7516_v33 }
 0x6d2   :  { %5341 = vmatpush.bf16.msra.mxu3 %v7901_v63  ;;  %5319 = vmatpush.bf16.msrb.mxu1 %v8281_v41  ;;  %v8380_v63 = vld [vmem:[#allocation8 + $0x750] sm:$0xf] }
 0x6d3   :  { %5283 = vmatmul.bf16.vlgmr.msrb.gmra.mxu2 %v9758_v59  ;;  %v8381_v34 = vor.u32 %v9113_v0, %v8380_v63  ;;  %v8348_v41 = vld [vmem:[#allocation8 + $0x710] sm:$0xf] }
 0x6d4   :  { %5327 = vmatpush.bf16.msra.mxu2 %v7677_v5  ;;  %5305 = vmatpush.bf16.msrb.mxu0 %v8057_v9  ;;  %v7708_v5 = vld [vmem:[#allocation8 + $0x210] sm:$0xf]  ;;  %v8349_v14 = vor.u32 %v9105_v42, %v8348_v41 }
 0x6d5   :  { %v7484_v9 = vld [vmem:[#allocation8 + $0x50] sm:$0xf]  ;;  %v7709_v13 = vor.u32 %v8945_v35, %v7708_v5  ;;  %v8446_v35 = vld [vmem:[#allocation8 + $0x7f0] sm:$0xf0] }
 0x6d6   :  { %5342 = vmatpush.bf16.msra.mxu3 %v7869_v7  ;;  %5320 = vmatpush.bf16.msrb.mxu1 %v8249_v15  ;;  %v8157_v7 = vor.u32 %v9057_v3, %v8156_v2  ;;  %v7937_v15 = vor.u32 %v8997_v45, %v7934_v8  ;;  %v8316_v16 = vld [vmem:[#allocation8 + $0x6d0] sm:$0xf]  ;;  %v8965_v3 = vld [vmem:[#allocation8 + $0x2d4] sm:$0xf] }
 0x6d7   :  { %v9097_v17 = vld [vmem:[#allocation8 + $0x6ec] sm:$0xf0] }
 0x6d8   :  { %5328 = vmatpush.bf16.msra.mxu2 %v7645_v12  ;;  %5306 = vmatpush.bf16.msrb.mxu0 %v8025_v22  ;;  %v9049_v12 = vld [vmem:[#allocation8 + $0x56c] sm:$0xf0]  ;;  %v8317_v28 = vor.u32 %v9097_v17, %v8316_v16 }
 0x6d9   :  { %v8125_v19 = vor.u32 %v9049_v12, %v8124_v44  ;;  %v7452_v22 = vld [vmem:[#allocation8 + $0x10] sm:$0xf]  ;;  %v7774_v44 = vld [vmem:[#allocation8 + $0x2b0] sm:$0xf0] }
 0x6da   :  { %5343 = vmatpush.bf16.msra.mxu3 %v7837_v18  ;;  %5321 = vmatpush.bf16.msrb.mxu1 %v8217_v24  ;;  %v7485_v18 = vor.u32 %v8889_v10, %v7484_v9  ;;  %v8881_v23 = vld [vmem:[#allocation8 + $0x2c] sm:$0xf0]  ;;  %v7905_v24 = vor.u32 %v8989_v6, %v7902_v21  ;;  %v8957_v10 = vld [vmem:[#allocation8 + $0x294] sm:$0xf] }
 0x6db   :  { %v8092_v11 = vld [vmem:[#allocation8 + $0x510] sm:$0xf]  ;;  %v7453_v36 = vor.u32 %v8881_v23, %v7452_v22  ;;  %v9061_v6 = vld [vmem:[#allocation8 + $0x5d4] sm:$0xf]  ;;  %v7777_v22 = vor.u32 %v8957_v10, %v7774_v44  ;;  %v7876_v10 = vld [vmem:[#allocation8 + $0x358] sm:$0xf] }
 0x6dc   :  { %5329 = vmatpush.bf16.msra.mxu2 %v7613_v26  ;;  %5307 = vmatpush.bf16.msrb.mxu0 %v7993_v50  ;;  %v9041_v25 = vld [vmem:[#allocation8 + $0x52c] sm:$0xf0]  ;;  %v8933_v26 = vld [vmem:[#allocation8 + $0x1d4] sm:$0xf] }
 0x6dd   :  { %5322 = vmatmul.bf16.vlgmr.msrb.gmra.mxu1 %v9763_v20  ;;  %v8093_v39 = vor.u32 %v9041_v25, %v8092_v11  ;;  %v7681_v50 = vor.u32 %v8933_v26, %v7678_v27  ;;  %v8060_v46 = vld [vmem:[#allocation8 + $0x4d0] sm:$0xf]  ;;  %v8190_v21 = vld [vmem:[#allocation8 + $0x5f0] sm:$0xf0] }
 0x6de   :  { %5344 = vmatpush.bf16.msra.mxu3 %v7805_v43  ;;  %5366 = vmatpush.bf16.msra.mxu1 %v8445_v40  ;;  %v8284_v43 = vld [vmem:[#allocation8 + $0x690] sm:$0xf]  ;;  %v8949_v26 = vld [vmem:[#allocation8 + $0x254] sm:$0xf] }
 0x6df   :  { %v9089_v40 = vld [vmem:[#allocation8 + $0x6ac] sm:$0xf0]  ;;  %v7742_v27 = vld [vmem:[#allocation8 + $0x270] sm:$0xf0] }
 0x6e0   :  { %5330 = vmatpush.bf16.msra.mxu2 %v7581_v37  ;;  %5308 = vmatpush.bf16.msrb.mxu0 %v7961_v57  ;;  %v9033_v47 = vld [vmem:[#allocation8 + $0x4ec] sm:$0xf0]  ;;  %v8925_v37 = vld [vmem:[#allocation8 + $0x194] sm:$0xf]  ;;  %v8285_v49 = vor.u32 %v9089_v40, %v8284_v43 }
 0x6e1   :  { %v8061_v52 = vor.u32 %v9033_v47, %v8060_v46  ;;  %v8252_v53 = vld [vmem:[#allocation8 + $0x650] sm:$0xf]  ;;  %v7838_v57 = vld [vmem:[#allocation8 + $0x330] sm:$0xf0] }
 0x6e2   :  { %5345 = vmatpush.bf16.msra.mxu3 %v7773_v55  ;;  %5367 = vmatpush.bf16.msra.mxu1 %v8413_v56  ;;  %v9081_v54 = vld [vmem:[#allocation8 + $0x66c] sm:$0xf0]  ;;  %v8973_v55 = vld [vmem:[#allocation8 + $0x314] sm:$0xf]  ;;  %v7649_v56 = vor.u32 %v8925_v37, %v7646_v30 }
 0x6e3   :  { %5309 = vmatmul.bf16.vlgmr.msrb.gmra.mxu0 %v9767_v29  ;;  %v8028_v58 = vld [vmem:[#allocation8 + $0x490] sm:$0xf]  ;;  %v8253_v63 = vor.u32 %v9081_v54, %v8252_v53  ;;  %v7841_v33 = vor.u32 %v8973_v55, %v7838_v57  ;;  %v7518_v43 = vld [vmem:[#allocation8 + $0xb0] sm:$0xf0]  ;;  %v9002_v53 = vld [vmem:[#allocation8 + $0x3f4] sm:$0xf0] }
 0x6e4   :  { %5331 = vmatpush.bf16.msra.mxu2 %v7549_v61  ;;  %5353 = vmatpush.bf16.msra.mxu0 %v8189_v62  ;;  %v9025_v60 = vld [vmem:[#allocation8 + $0x4ac] sm:$0xf0]  ;;  %v8917_v61 = vld [vmem:[#allocation8 + $0x154] sm:$0xf] }
 0x6e5   :  { %v7614_v62 = vld [vmem:[#allocation8 + $0x170] sm:$0xf0]  ;;  %v8220_v0 = vld [vmem:[#allocation8 + $0x610] sm:$0xf]  ;;  %v8029_v1 = vor.u32 %v9025_v60, %v8028_v58 }
 0x6e6   :  { %5346 = vmatpush.bf16.msra.mxu3 %v7741_v4  ;;  %5368 = vmatpush.bf16.msra.mxu1 %v8381_v34  ;;  %v9073_v2 = vld [vmem:[#allocation8 + $0x62c] sm:$0xf0]  ;;  %v7806_v4 = vld [vmem:[#allocation8 + $0x2f0] sm:$0xf0]  ;;  %v7617_v5 = vor.u32 %v8917_v61, %v7614_v62 }
 0x6e7   :  { %v9125_v34 = vld [vmem:[#allocation8 + $0x7d4] sm:$0xf]  ;;  %v7996_v41 = vld [vmem:[#allocation8 + $0x450] sm:$0xf]  ;;  %v8221_v45 = vor.u32 %v9073_v2, %v8220_v0  ;;  %v7809_v8 = vor.u32 %v8965_v3, %v7806_v4  ;;  %v8994_v2 = vld [vmem:[#allocation8 + $0x3b4] sm:$0xf0] }
 0x6e8   :  { %5332 = vmatpush.bf16.msra.mxu2 %v7517_v31  ;;  %5354 = vmatpush.bf16.msra.mxu0 %v8157_v7  ;;  %v9017_v42 = vld [vmem:[#allocation8 + $0x46c] sm:$0xf0]  ;;  %v8909_v31 = vld [vmem:[#allocation8 + $0x114] sm:$0xf]  ;;  %v8449_v9 = vor.u32 %v9125_v34, %v8446_v35  ;;  %v7684_v35 = vld [vmem:[#allocation8 + $0x1d8] sm:$0xf] }
 0x6e9   :  { %v7582_v7 = vld [vmem:[#allocation8 + $0x130] sm:$0xf0]  ;;  %v7997_v12 = vor.u32 %v9017_v42, %v7996_v41  ;;  %v7964_v16 = vld [vmem:[#allocation8 + $0x410] sm:$0xf]  ;;  %v8938_v41 = vld [vmem:[#allocation8 + $0x1f4] sm:$0xf0] }
 0x6ea   :  { %5347 = vmatpush.bf16.msra.mxu3 %v7709_v13  ;;  %5369 = vmatpush.bf16.msra.mxu1 %v8349_v14  ;;  %v7585_v13 = vor.u32 %v8909_v31, %v7582_v7  ;;  %v9117_v14 = vld [vmem:[#allocation8 + $0x794] sm:$0xf]  ;;  %v9009_v17 = vld [vmem:[#allocation8 + $0x42c] sm:$0xf0]  ;;  %v7685_v44 = vor.u32 %v8938_v41, %v7684_v35 }
 0x6eb   :  { %v7965_v11 = vor.u32 %v9009_v17, %v7964_v16  ;;  %v9053_v40 = vld [vmem:[#allocation8 + $0x594] sm:$0xf]  ;;  %v8930_v16 = vld [vmem:[#allocation8 + $0x1b4] sm:$0xf0] }
 0x6ec   :  { %5333 = vmatpush.bf16.msra.mxu2 %v7485_v18  ;;  %5355 = vmatpush.bf16.msra.mxu0 %v8125_v19  ;;  %v8901_v18 = vld [vmem:[#allocation8 + $0xd4] sm:$0xf] }
 0x6ed   :  { %5348 = vmatmul.bf16.vlgmr.msra.gmra.mxu3 %v9755_v48  ;;  %v7550_v19 = vld [vmem:[#allocation8 + $0xf0] sm:$0xf0] }
 0x6ee   :  { %5392 = vmatpush.bf16.msrb.mxu3 %v7937_v15  ;;  %5370 = vmatpush.bf16.msra.mxu1 %v8317_v28  ;;  %v8414_v15 = vld [vmem:[#allocation8 + $0x7b0] sm:$0xf0]  ;;  %v7553_v25 = vor.u32 %v8901_v18, %v7550_v19 }
 0x6ef   :  { %v8417_v23 = vor.u32 %v9117_v14, %v8414_v15  ;;  %v9109_v28 = vld [vmem:[#allocation8 + $0x754] sm:$0xf]  ;;  %v7652_v15 = vld [vmem:[#allocation8 + $0x198] sm:$0xf] }
 0x6f0   :  { %5334 = vmatpush.bf16.msra.mxu2 %v7453_v36  ;;  %5356 = vmatpush.bf16.msra.mxu0 %v8093_v39  ;;  %v8382_v36 = vld [vmem:[#allocation8 + $0x770] sm:$0xf0] }
 0x6f1   :  { %v8893_v39 = vld [vmem:[#allocation8 + $0x94] sm:$0xf]  ;;  %v8385_v46 = vor.u32 %v9109_v28, %v8382_v36  ;;  %v8922_v28 = vld [vmem:[#allocation8 + $0x174] sm:$0xf0] }
 0x6f2   :  { %5393 = vmatpush.bf16.msrb.mxu3 %v7905_v24  ;;  %5371 = vmatpush.bf16.msra.mxu1 %v8285_v49  ;;  %v8193_v24 = vor.u32 %v9061_v6, %v8190_v21  ;;  %v7521_v47 = vor.u32 %v8893_v39, %v7518_v43  ;;  %v7710_v37 = vld [vmem:[#allocation8 + $0x230] sm:$0xf0] }
 0x6f3   :  { %5335 = vmatmul.bf16.vlgmr.msra.gmra.mxu2 %v9758_v59  ;;  %v9101_v30 = vld [vmem:[#allocation8 + $0x714] sm:$0xf]  ;;  %v7713_v58 = vor.u32 %v8941_v38, %v7710_v37 }
 0x6f4   :  { %5379 = vmatpush.bf16.msrb.mxu2 %v7681_v50  ;;  %5357 = vmatpush.bf16.msra.mxu0 %v8061_v52  ;;  %v7745_v50 = vor.u32 %v8949_v26, %v7742_v27  ;;  %v8350_v49 = vld [vmem:[#allocation8 + $0x730] sm:$0xf0]  ;;  %v7940_v52 = vld [vmem:[#allocation8 + $0x3d8] sm:$0xf] }
 0x6f5   :  { %v8885_v54 = vld [vmem:[#allocation8 + $0x54] sm:$0xf]  ;;  %v8353_v60 = vor.u32 %v9101_v30, %v8350_v49  ;;  %v7941_v61 = vor.u32 %v9002_v53, %v7940_v52  ;;  %v7620_v27 = vld [vmem:[#allocation8 + $0x158] sm:$0xf] }
 0x6f6   :  { %5394 = vmatpush.bf16.msrb.mxu3 %v7873_v51  ;;  %5372 = vmatpush.bf16.msra.mxu1 %v8253_v63  ;;  %v8161_v51 = vor.u32 %v9053_v40, %v8158_v32  ;;  %v7486_v55 = vld [vmem:[#allocation8 + $0x70] sm:$0xf0]  ;;  %v7812_v32 = vld [vmem:[#allocation8 + $0x2d8] sm:$0xf]  ;;  %v7621_v38 = vor.u32 %v8922_v28, %v7620_v27  ;;  %v8998_v27 = vld [vmem:[#allocation8 + $0x3dc] sm:$0xf] }
 0x6f7   :  { %v8126_v57 = vld [vmem:[#allocation8 + $0x570] sm:$0xf0]  ;;  %v7489_v0 = vor.u32 %v8885_v54, %v7486_v55  ;;  %v7588_v49 = vld [vmem:[#allocation8 + $0x118] sm:$0xf]  ;;  %v7942_v28 = vld [vmem:[#allocation8 + $0x3f8] sm:$0xf0] }
 0x6f8   :  { %5380 = vmatpush.bf16.msrb.mxu2 %v7649_v56  ;;  %5358 = vmatpush.bf16.msra.mxu0 %v8029_v1  ;;  %v9045_v56 = vld [vmem:[#allocation8 + $0x554] sm:$0xf]  ;;  %v7908_v1 = vld [vmem:[#allocation8 + $0x398] sm:$0xf] }
 0x6f9   :  { %v9093_v62 = vld [vmem:[#allocation8 + $0x6d4] sm:$0xf]  ;;  %v7909_v31 = vor.u32 %v8994_v2, %v7908_v1  ;;  %v9790_v53 = vld [vmem:[%s9931_s21] sm:$0xff]  ;;  %s9349_s21 = smov [#allocation10]  }
 0x6fa   :  { %5395 = vmatpush.bf16.msrb.mxu3 %v7841_v33  ;;  %5373 = vmatpush.bf16.msra.mxu1 %v8221_v45  ;;  %v8318_v63 = vld [vmem:[#allocation8 + $0x6f0] sm:$0xf0]  ;;  %v8129_v33 = vor.u32 %v9045_v56, %v8126_v57  ;;  %v7780_v57 = vld [vmem:[#allocation8 + $0x298] sm:$0xf]  ;;  %v3823_v1 = vperm.slane %v9790_v53, 0  ;;  %s5728_s26 = sshll.u32 %s9349_s21, 4  ;;  %s5729_s26 = int_to_ptr.vmem [resolvable:$true] %s5728_s26 }
 0x6fb   :  { %v8877_v3 = vld [vmem:[#allocation8 + $0x14] sm:$0xf]  ;;  %v8321_v42 = vor.u32 %v9093_v62, %v8318_v63  ;;  %v9122_v63 = vld [vmem:[#allocation8 + $0x7b4] sm:$0xf0]  ;;  %5733 = dma.vmem_to_hbm [thread:$0]  %s5729_s26, 32, %s5731_s27, [#allocation4]  }
 0x6fc   :  { %5381 = vmatpush.bf16.msrb.mxu2 %v7617_v5  ;;  %5359 = vmatpush.bf16.msra.mxu0 %v7997_v12  ;;  %v7454_v4 = vld [vmem:[#allocation8 + $0x30] sm:$0xf0]  ;;  %v8986_v12 = vld [vmem:[#allocation8 + $0x374] sm:$0xf0] }
 0x6fd   :  { %5374 = vmatmul.bf16.vlgmr.msra.gmra.mxu1 %v9763_v20  ;;  %v9037_v5 = vld [vmem:[#allocation8 + $0x514] sm:$0xf]  ;;  %v7457_v7 = vor.u32 %v8877_v3, %v7454_v4  ;;  %v7877_v18 = vor.u32 %v8986_v12, %v7876_v10  ;;  %v7556_v2 = vld [vmem:[#allocation8 + $0xd8] sm:$0xf] }
 0x6fe   :  { %5396 = vmatpush.bf16.msrb.mxu3 %v7809_v8  ;;  %5418 = vmatpush.bf16.msrb.mxu1 %v8449_v9  ;;  %v8094_v34 = vld [vmem:[#allocation8 + $0x530] sm:$0xf0]  ;;  %v8906_v3 = vld [vmem:[#allocation8 + $0xf4] sm:$0xf0] }
 0x6ff   :  { %v8097_v45 = vor.u32 %v9037_v5, %v8094_v34  ;;  %v9085_v8 = vld [vmem:[#allocation8 + $0x694] sm:$0xf]  ;;  %v8196_v4 = vld [vmem:[#allocation8 + $0x5d8] sm:$0xf] }
 0x700   :  { %5382 = vmatpush.bf16.msrb.mxu2 %v7585_v13  ;;  %5360 = vmatpush.bf16.msra.mxu0 %v7965_v11  ;;  %v8286_v9 = vld [vmem:[#allocation8 + $0x6b0] sm:$0xf0]  ;;  %v8978_v11 = vld [vmem:[#allocation8 + $0x334] sm:$0xf0] }
 0x701   :  { %v9029_v13 = vld [vmem:[#allocation8 + $0x4d4] sm:$0xf]  ;;  %v8289_v17 = vor.u32 %v9085_v8, %v8286_v9  ;;  %v9066_v5 = vld [vmem:[#allocation8 + $0x5f4] sm:$0xf0] }
 0x702   :  { %5397 = vmatpush.bf16.msrb.mxu3 %v7777_v22  ;;  %5419 = vmatpush.bf16.msrb.mxu1 %v8417_v23  ;;  %v8062_v14 = vld [vmem:[#allocation8 + $0x4f0] sm:$0xf0]  ;;  %v7844_v22 = vld [vmem:[#allocation8 + $0x318] sm:$0xf]  ;;  %v7653_v23 = vor.u32 %v8930_v16, %v7652_v15  ;;  %v8197_v10 = vor.u32 %v9066_v5, %v8196_v4  ;;  %v8982_v5 = vld [vmem:[#allocation8 + $0x35c] sm:$0xf] }
 0x703   :  { %5361 = vmatmul.bf16.vlgmr.msra.gmra.mxu0 %v9767_v29  ;;  %v8065_v19 = vor.u32 %v9029_v13, %v8062_v14  ;;  %v9077_v6 = vld [vmem:[#allocation8 + $0x654] sm:$0xf]  ;;  %v7845_v39 = vor.u32 %v8978_v11, %v7844_v22  ;;  %v8388_v8 = vld [vmem:[#allocation8 + $0x758] sm:$0xf] }
 0x704   :  { %5383 = vmatpush.bf16.msrb.mxu2 %v7553_v25  ;;  %5405 = vmatpush.bf16.msrb.mxu0 %v8193_v24  ;;  %v8254_v21 = vld [vmem:[#allocation8 + $0x670] sm:$0xf0]  ;;  %v7524_v12 = vld [vmem:[#allocation8 + $0x98] sm:$0xf] }
 0x705   :  { %v9021_v25 = vld [vmem:[#allocation8 + $0x494] sm:$0xf]  ;;  %v8257_v24 = vor.u32 %v9077_v6, %v8254_v21  ;;  %v8898_v13 = vld [vmem:[#allocation8 + $0xb4] sm:$0xf0] }
 0x706   :  { %5398 = vmatpush.bf16.msrb.mxu3 %v7745_v50  ;;  %5420 = vmatpush.bf16.msrb.mxu1 %v8385_v46  ;;  %v8030_v26 = vld [vmem:[#allocation8 + $0x4b0] sm:$0xf0]  ;;  %v8970_v50 = vld [vmem:[#allocation8 + $0x2f4] sm:$0xf0]  ;;  %v7525_v21 = vor.u32 %v8898_v13, %v7524_v12 }
 0x707   :  { %v9069_v36 = vld [vmem:[#allocation8 + $0x614] sm:$0xf]  ;;  %v8033_v43 = vor.u32 %v9021_v25, %v8030_v26  ;;  %v8452_v46 = vld [vmem:[#allocation8 + $0x7d8] sm:$0xf]  ;;  %v7813_v55 = vor.u32 %v8970_v50, %v7812_v32 }
 0x708   :  { %5384 = vmatpush.bf16.msrb.mxu2 %v7521_v47  ;;  %5406 = vmatpush.bf16.msrb.mxu0 %v8161_v51  ;;  %v8222_v40 = vld [vmem:[#allocation8 + $0x630] sm:$0xf0]  ;;  %v9130_v47 = vld [vmem:[#allocation8 + $0x7f4] sm:$0xf0] }
 0x709   :  { %v9013_v37 = vld [vmem:[#allocation8 + $0x454] sm:$0xf]  ;;  %v8914_v51 = vld [vmem:[#allocation8 + $0x134] sm:$0xf0]  ;;  %v8225_v52 = vor.u32 %v9069_v36, %v8222_v40  ;;  %v8453_v56 = vor.u32 %v9130_v47, %v8452_v46 }
 0x70a   :  { %5399 = vmatpush.bf16.msrb.mxu3 %v7713_v58  ;;  %5421 = vmatpush.bf16.msrb.mxu1 %v8353_v60  ;;  %v7998_v30 = vld [vmem:[#allocation8 + $0x470] sm:$0xf0]  ;;  %v8962_v58 = vld [vmem:[#allocation8 + $0x2b4] sm:$0xf0]  ;;  %v7589_v62 = vor.u32 %v8914_v51, %v7588_v49  ;;  %v8990_v49 = vld [vmem:[#allocation8 + $0x39c] sm:$0xf] }
 0x70b   :  { %v8420_v60 = vld [vmem:[#allocation8 + $0x798] sm:$0xf]  ;;  %v7781_v34 = vor.u32 %v8962_v58, %v7780_v57  ;;  %v7910_v51 = vld [vmem:[#allocation8 + $0x3b8] sm:$0xf0] }
 0x70c   :  { %5385 = vmatpush.bf16.msrb.mxu2 %v7489_v0  ;;  %5407 = vmatpush.bf16.msrb.mxu0 %v8129_v33  ;;  %v9005_v0 = vld [vmem:[#allocation8 + $0x414] sm:$0xf]  ;;  %v8421_v35 = vor.u32 %v9122_v63, %v8420_v60  ;;  %v8164_v14 = vld [vmem:[#allocation8 + $0x598] sm:$0xf]  ;;  %v8934_v60 = vld [vmem:[#allocation8 + $0x1dc] sm:$0xf] }
 0x70d   :  { %5400 = vmatmul.bf16.vlgmr.msrb.gmra.mxu3 %v9755_v48  ;;  %v7966_v33 = vld [vmem:[#allocation8 + $0x430] sm:$0xf0]  ;;  %v9058_v15 = vld [vmem:[#allocation8 + $0x5b4] sm:$0xf0] }
 0x70e   :  { %5444 = vmatpush.bf16.msra.mxu3 %v7941_v61  ;;  %5422 = vmatpush.bf16.msrb.mxu1 %v8321_v42  ;;  %v8001_v61 = vor.u32 %v9013_v37, %v7998_v30  ;;  %v7969_v42 = vor.u32 %v9005_v0, %v7966_v33  ;;  %v8946_v22 = vld [vmem:[#allocation8 + $0x234] sm:$0xf0]  ;;  %v8165_v26 = vor.u32 %v9058_v15, %v8164_v14  ;;  %v8974_v14 = vld [vmem:[#allocation8 + $0x31c] sm:$0xf] }
 0x70f   :  { %v9106_v11 = vld [vmem:[#allocation8 + $0x734] sm:$0xf0]  ;;  %v7913_v0 = vor.u32 %v8990_v49, %v7910_v51  ;;  %v8958_v51 = vld [vmem:[#allocation8 + $0x29c] sm:$0xf] }
 0x710   :  { %5386 = vmatpush.bf16.msrb.mxu2 %v7457_v7  ;;  %5408 = vmatpush.bf16.msrb.mxu0 %v8097_v45  ;;  %v5141_v54 = vpop.f32.mrf.mxu3  ;;  %v7748_v7 = vld [vmem:[#allocation8 + $0x258] sm:$0xf] }
 0x711   :  { %v8954_v45 = vld [vmem:[#allocation8 + $0x274] sm:$0xf0] }
 0x712   :  { %5445 = vmatpush.bf16.msra.mxu3 %v7909_v31  ;;  %5423 = vmatpush.bf16.msrb.mxu1 %v8289_v17  ;;  %v7557_v31 = vor.u32 %v8906_v3, %v7556_v2  ;;  %v7749_v17 = vor.u32 %v8954_v45, %v7748_v7  ;;  %v8890_v36 = vld [vmem:[#allocation8 + $0x74] sm:$0xf0]  ;;  %v8926_v7 = vld [vmem:[#allocation8 + $0x19c] sm:$0xf] }
 0x713   :  { %5387 = vmatmul.bf16.vlgmr.msrb.gmra.mxu2 %v9758_v59  ;;  %v8324_v46 = vld [vmem:[#allocation8 + $0x6d8] sm:$0xf]  ;;  %v7654_v45 = vld [vmem:[#allocation8 + $0x1b8] sm:$0xf0] }
 0x714   :  { %5431 = vmatpush.bf16.msra.mxu2 %v7685_v44  ;;  %5409 = vmatpush.bf16.msrb.mxu0 %v8065_v19  ;;  %v9114_v44 = vld [vmem:[#allocation8 + $0x774] sm:$0xf0]  ;;  %v7657_v15 = vor.u32 %v8926_v7, %v7654_v45  ;;  %v9110_v7 = vld [vmem:[#allocation8 + $0x75c] sm:$0xf] }
 0x715   :  { %v5128_v41 = vpop.f32.mrf.mxu2  ;;  %v8389_v6 = vor.u32 %v9114_v44, %v8388_v8  ;;  %v9098_v47 = vld [vmem:[#allocation8 + $0x6f4] sm:$0xf0] }
 0x716   :  { %5446 = vmatpush.bf16.msra.mxu3 %v7877_v18  ;;  %5424 = vmatpush.bf16.msrb.mxu1 %v8257_v24  ;;  %v5129_v9 = vadd.f32 %v5128_v41, %v3823_v1  ;;  %v7716_v18 = vld [vmem:[#allocation8 + $0x218] sm:$0xf]  ;;  %v8325_v63 = vor.u32 %v9098_v47, %v8324_v46  ;;  %v7878_v41 = vld [vmem:[#allocation8 + $0x378] sm:$0xf0] }
 0x717   :  { %v7492_v24 = vld [vmem:[#allocation8 + $0x58] sm:$0xf]  ;;  %v7717_v40 = vor.u32 %v8946_v22, %v7716_v18  ;;  %v7622_v22 = vld [vmem:[#allocation8 + $0x178] sm:$0xf0] }
 0x718   :  { %5432 = vmatpush.bf16.msra.mxu2 %v7653_v23  ;;  %5410 = vmatpush.bf16.msrb.mxu0 %v8033_v43  ;;  %v5143_v16 = vpop.f32.mrf.mxu3  ;;  %v5142_v19 = vadd.f32 %v5141_v54, %v5129_v9  ;;  %v8356_v23 = vld [vmem:[#allocation8 + $0x718] sm:$0xf]  ;;  %v7493_v37 = vor.u32 %v8890_v36, %v7492_v24  ;;  %v8966_v24 = vld [vmem:[#allocation8 + $0x2dc] sm:$0xf] }
 0x719   :  { %v9050_v43 = vld [vmem:[#allocation8 + $0x574] sm:$0xf0]  ;;  %v8357_v32 = vor.u32 %v9106_v11, %v8356_v23  ;;  %v7846_v16 = vld [vmem:[#allocation8 + $0x338] sm:$0xf0] }
 0x71a   :  { %5447 = vmatpush.bf16.msra.mxu3 %v7845_v39  ;;  %5425 = vmatpush.bf16.msrb.mxu1 %v8225_v52  ;;  %v5167_v25 = vpop.f32.mrf.mxu1  ;;  %v8132_v39 = vld [vmem:[#allocation8 + $0x558] sm:$0xf]  ;;  %v7814_v36 = vld [vmem:[#allocation8 + $0x2f8] sm:$0xf0] }
 0x71b   :  { %v8133_v30 = vor.u32 %v9050_v43, %v8132_v39  ;;  %v7460_v52 = vld [vmem:[#allocation8 + $0x18] sm:$0xf]  ;;  %v9126_v43 = vld [vmem:[#allocation8 + $0x7dc] sm:$0xf] }
 0x71c   :  { %5433 = vmatpush.bf16.msra.mxu2 %v7621_v38  ;;  %5411 = vmatpush.bf16.msrb.mxu0 %v8001_v61  ;;  %v7945_v38 = vor.u32 %v8998_v27, %v7942_v28  ;;  %v8882_v54 = vld [vmem:[#allocation8 + $0x34] sm:$0xf0]  ;;  %v7686_v61 = vld [vmem:[#allocation8 + $0x1f8] sm:$0xf0] }
 0x71d   :  { %5426 = vmatmul.bf16.vlgmr.msrb.gmra.mxu1 %v9763_v20  ;;  %v5130_v50 = vpop.f32.mrf.mxu2  ;;  %v7461_v1 = vor.u32 %v8882_v54, %v7460_v52  ;;  %v8292_v3 = vld [vmem:[#allocation8 + $0x698] sm:$0xf]  ;;  %v7590_v46 = vld [vmem:[#allocation8 + $0x138] sm:$0xf0] }
 0x71e   :  { %5448 = vmatpush.bf16.msra.mxu3 %v7813_v55  ;;  %5470 = vmatpush.bf16.msra.mxu1 %v8453_v56  ;;  %v8100_v55 = vld [vmem:[#allocation8 + $0x518] sm:$0xf]  ;;  %v7782_v52 = vld [vmem:[#allocation8 + $0x2b8] sm:$0xf0] }
 0x71f   :  { %v9042_v56 = vld [vmem:[#allocation8 + $0x534] sm:$0xf0] }
 0x720   :  { %5434 = vmatpush.bf16.msra.mxu2 %v7589_v62  ;;  %5412 = vmatpush.bf16.msrb.mxu0 %v7969_v42  ;;  %v5154_v57 = vpop.f32.mrf.mxu0  ;;  %v9795_v58 = vpop.f32.mrf.mxu3  ;;  %v8101_v2 = vor.u32 %v9042_v56, %v8100_v55  ;;  %v9090_v4 = vld [vmem:[#allocation8 + $0x6b4] sm:$0xf0]  ;;  %v9118_v56 = vld [vmem:[#allocation8 + $0x79c] sm:$0xf] }
 0x721   :  { %v5155_v62 = vadd.f32 %v5154_v57, %v5142_v19  ;;  %v8068_v42 = vld [vmem:[#allocation8 + $0x4d8] sm:$0xf]  ;;  %v8293_v8 = vor.u32 %v9090_v4, %v8292_v3  ;;  %v8422_v57 = vld [vmem:[#allocation8 + $0x7b8] sm:$0xf0]  ;;  %v7785_v4 = vor.u32 %v8958_v51, %v7782_v52 }
 0x722   :  { %5449 = vmatpush.bf16.msra.mxu3 %v7781_v34  ;;  %5471 = vmatpush.bf16.msra.mxu1 %v8421_v35  ;;  %v5169_v33 = vpop.f32.mrf.mxu1  ;;  %v7689_v35 = vor.u32 %v8934_v60, %v7686_v61  ;;  %v8260_v12 = vld [vmem:[#allocation8 + $0x658] sm:$0xf]  ;;  %v9038_v51 = vld [vmem:[#allocation8 + $0x51c] sm:$0xf] }
 0x723   :  { %5413 = vmatmul.bf16.vlgmr.msrb.gmra.mxu0 %v9767_v29  ;;  %v9797_v34 = vadd.f32 %v5167_v25, %v5155_v62  ;;  %v9082_v13 = vld [vmem:[#allocation8 + $0x674] sm:$0xf0]  ;;  %v7558_v33 = vld [vmem:[#allocation8 + $0xf8] sm:$0xf0] }
 0x724   :  { %5435 = vmatpush.bf16.msra.mxu2 %v7557_v31  ;;  %5457 = vmatpush.bf16.msra.mxu0 %v8197_v10  ;;  %v9034_v31 = vld [vmem:[#allocation8 + $0x4f4] sm:$0xf0]  ;;  %v7881_v10 = vor.u32 %v8982_v5, %v7878_v41  ;;  %v8261_v23 = vor.u32 %v9082_v13, %v8260_v12  ;;  %v8425_v5 = vor.u32 %v9118_v56, %v8422_v57  ;;  %v9054_v12 = vld [vmem:[#allocation8 + $0x59c] sm:$0xf] }
 0x725   :  { %v8069_v44 = vor.u32 %v9034_v31, %v8068_v42  ;;  %v9026_v18 = vld [vmem:[#allocation8 + $0x4b4] sm:$0xf0]  ;;  %v8950_v42 = vld [vmem:[#allocation8 + $0x25c] sm:$0xf] }
 0x726   :  { %5450 = vmatpush.bf16.msra.mxu3 %v7749_v17  ;;  %5472 = vmatpush.bf16.msra.mxu1 %v8389_v6  ;;  %v9800_v9 = vpop.f32.mrf.mxu2  ;;  %v8036_v17 = vld [vmem:[#allocation8 + $0x498] sm:$0xf]  ;;  %v7750_v31 = vld [vmem:[#allocation8 + $0x278] sm:$0xf0] }
 0x727   :  { %v8228_v11 = vld [vmem:[#allocation8 + $0x618] sm:$0xf]  ;;  %v8037_v27 = vor.u32 %v9026_v18, %v8036_v17  ;;  %v8166_v13 = vld [vmem:[#allocation8 + $0x5b8] sm:$0xf0] }
 0x728   :  { %5436 = vmatpush.bf16.msra.mxu2 %v7525_v21  ;;  %5458 = vmatpush.bf16.msra.mxu0 %v8165_v26  ;;  %v5156_v19 = vpop.f32.mrf.mxu0  ;;  %v5195_v6 = vpop.f32.mrf.mxu3  ;;  %v8918_v21 = vld [vmem:[#allocation8 + $0x15c] sm:$0xf]  ;;  %v7849_v26 = vor.u32 %v8974_v14, %v7846_v16  ;;  %v9074_v28 = vld [vmem:[#allocation8 + $0x634] sm:$0xf0]  ;;  %v3824_v14 = vperm.slane %v9790_v53, 1 }
 0x729   :  { %v7625_v39 = vor.u32 %v8918_v21, %v7622_v22  ;;  %v9018_v50 = vld [vmem:[#allocation8 + $0x474] sm:$0xf0]  ;;  %v8229_v47 = vor.u32 %v9074_v28, %v8228_v11  ;;  %v8942_v19 = vld [vmem:[#allocation8 + $0x21c] sm:$0xf]  ;;  %v8169_v11 = vor.u32 %v9054_v12, %v8166_v13 }
 0x72a   :  { %5451 = vmatpush.bf16.msra.mxu3 %v7717_v40  ;;  %5473 = vmatpush.bf16.msra.mxu1 %v8357_v32  ;;  %v9803_v25 = vpop.f32.mrf.mxu1  ;;  %v8454_v40 = vld [vmem:[#allocation8 + $0x7f8] sm:$0xf0]  ;;  %v8004_v32 = vld [vmem:[#allocation8 + $0x458] sm:$0xf] }
 0x72b   :  { %v8457_v49 = vor.u32 %v9126_v43, %v8454_v40  ;;  %v8005_v54 = vor.u32 %v9018_v50, %v8004_v32  ;;  %v7972_v60 = vld [vmem:[#allocation8 + $0x418] sm:$0xf]  ;;  %v7718_v6 = vld [vmem:[#allocation8 + $0x238] sm:$0xf0] }
 0x72c   :  { %5437 = vmatpush.bf16.msra.mxu2 %v7493_v37  ;;  %5459 = vmatpush.bf16.msra.mxu0 %v8133_v30  ;;  %v7817_v30 = vor.u32 %v8966_v24, %v7814_v36  ;;  %v9102_v21 = vld [vmem:[#allocation8 + $0x71c] sm:$0xf]  ;;  %v7721_v40 = vor.u32 %v8942_v19, %v7718_v6 }
 0x72d   :  { %5452 = vmatmul.bf16.vlgmr.msra.gmra.mxu3 %v9755_v48  ;;  %v7494_v28 = vld [vmem:[#allocation8 + $0x78] sm:$0xf0] }
 0x72e   :  { %5496 = vmatpush.bf16.msrb.mxu3 %v7945_v38  ;;  %5474 = vmatpush.bf16.msra.mxu1 %v8325_v63  ;;  %v8910_v38 = vld [vmem:[#allocation8 + $0x11c] sm:$0xf]  ;;  %v5182_v37 = vpop.f32.mrf.mxu2  ;;  %v9010_v63 = vld [vmem:[#allocation8 + $0x434] sm:$0xf0] }
 0x72f   :  { %v7593_v55 = vor.u32 %v8910_v38, %v7590_v46  ;;  %v9046_v24 = vld [vmem:[#allocation8 + $0x55c] sm:$0xf]  ;;  %v5181_v46 = vadd.f32 %v9800_v9, %v3824_v14 }
 0x730   :  { %5438 = vmatpush.bf16.msra.mxu2 %v7461_v1  ;;  %5460 = vmatpush.bf16.msra.mxu0 %v8101_v2  ;;  %v9805_v61 = vpop.f32.mrf.mxu0  ;;  %v9807_v62 = vpop.f32.mrf.mxu3  ;;  %v9062_v1 = vld [vmem:[#allocation8 + $0x5dc] sm:$0xf] }
 0x731   :  { %v8198_v2 = vld [vmem:[#allocation8 + $0x5f8] sm:$0xf0] }
 0x732   :  { %5497 = vmatpush.bf16.msrb.mxu3 %v7913_v0  ;;  %5475 = vmatpush.bf16.msra.mxu1 %v8293_v8  ;;  %v8902_v0 = vld [vmem:[#allocation8 + $0xdc] sm:$0xf]  ;;  %v5221_v3 = vpop.f32.mrf.mxu1  ;;  %v8201_v45 = vor.u32 %v9062_v1, %v8198_v2 }
 0x733   :  { %5439 = vmatmul.bf16.vlgmr.msra.gmra.mxu2 %v9758_v59  ;;  %v7561_v41 = vor.u32 %v8902_v0, %v7558_v33  ;;  %v8390_v8 = vld [vmem:[#allocation8 + $0x778] sm:$0xf0] }
 0x734   :  { %5483 = vmatpush.bf16.msrb.mxu2 %v7689_v35  ;;  %5461 = vmatpush.bf16.msra.mxu0 %v8069_v44  ;;  %v7973_v35 = vor.u32 %v9010_v63, %v7972_v60  ;;  %v7526_v44 = vld [vmem:[#allocation8 + $0xb8] sm:$0xf0]  ;;  %v8393_v17 = vor.u32 %v9110_v7, %v8390_v8  ;;  %v5194_v60 = vadd.f32 %v9795_v58, %v5181_v46 }
 0x735   :  { %v8134_v36 = vld [vmem:[#allocation8 + $0x578] sm:$0xf0] }
 0x736   :  { %5498 = vmatpush.bf16.msrb.mxu3 %v7881_v10  ;;  %5476 = vmatpush.bf16.msra.mxu1 %v8261_v23  ;;  %v8894_v10 = vld [vmem:[#allocation8 + $0x9c] sm:$0xf]  ;;  %v5232_v16 = vpop.f32.mrf.mxu2  ;;  %v5207_v3 = vadd.f32 %v9805_v61, %v5194_v60 }
 0x737   :  { %v7529_v18 = vor.u32 %v8894_v10, %v7526_v44  ;;  %v9094_v38 = vld [vmem:[#allocation8 + $0x6dc] sm:$0xf] }
 0x738   :  { %5484 = vmatpush.bf16.msrb.mxu2 %v7657_v15  ;;  %5462 = vmatpush.bf16.msra.mxu0 %v8037_v27  ;;  %v7753_v15 = vor.u32 %v8950_v42, %v7750_v31  ;;  %v5208_v22 = vpop.f32.mrf.mxu0  ;;  %v5247_v23 = vpop.f32.mrf.mxu3  ;;  %v8886_v27 = vld [vmem:[#allocation8 + $0x5c] sm:$0xf] }
 0x739   :  { %v7497_v50 = vor.u32 %v8886_v27, %v7494_v28  ;;  %v8326_v37 = vld [vmem:[#allocation8 + $0x6f8] sm:$0xf0]  ;;  %v3826_v27 = vperm.slane %v9790_v53, 3 }
 0x73a   :  { %5499 = vmatpush.bf16.msrb.mxu3 %v7849_v26  ;;  %5477 = vmatpush.bf16.msra.mxu1 %v8229_v47  ;;  %v8358_v26 = vld [vmem:[#allocation8 + $0x738] sm:$0xf0]  ;;  %v5271_v43 = vpop.f32.mrf.mxu1  ;;  %v8137_v47 = vor.u32 %v9046_v24, %v8134_v36  ;;  %v8329_v56 = vor.u32 %v9094_v38, %v8326_v37 }
 0x73b   :  { %v8361_v32 = vor.u32 %v9102_v21, %v8358_v26  ;;  %v8102_v52 = vld [vmem:[#allocation8 + $0x538] sm:$0xf0]  ;;  %v5535_v21 = vsub.f32 0.0, %v9797_v34 }
 0x73c   :  { %5485 = vmatpush.bf16.msrb.mxu2 %v7625_v39  ;;  %5463 = vmatpush.bf16.msra.mxu0 %v8005_v54  ;;  %v3825_v39 = vperm.slane %v9790_v53, 2  ;;  %v8105_v63 = vor.u32 %v9038_v51, %v8102_v52  ;;  %v9086_v0 = vld [vmem:[#allocation8 + $0x69c] sm:$0xf] }
 0x73d   :  { %5478 = vmatmul.bf16.vlgmr.msra.gmra.mxu1 %v9763_v20  ;;  %v8294_v9 = vld [vmem:[#allocation8 + $0x6b8] sm:$0xf0] }
 0x73e   :  { %5500 = vmatpush.bf16.msrb.mxu3 %v7817_v30  ;;  %5522 = vmatpush.bf16.msrb.mxu1 %v8457_v49  ;;  %v8878_v30 = vld [vmem:[#allocation8 + $0x1c] sm:$0xf]  ;;  %v5233_v54 = vadd.f32 %v5232_v16, %v3825_v39 }
 0x73f   :  { %v7462_v49 = vld [vmem:[#allocation8 + $0x38] sm:$0xf0] }
 0x740   :  { %5486 = vmatpush.bf16.msrb.mxu2 %v7593_v55  ;;  %5464 = vmatpush.bf16.msra.mxu0 %v7973_v35  ;;  %v5234_v55 = vpop.f32.mrf.mxu2  ;;  %v7465_v57 = vor.u32 %v8878_v30, %v7462_v49  ;;  %v5258_v33 = vpop.f32.mrf.mxu0  ;;  %v9030_v1 = vld [vmem:[#allocation8 + $0x4dc] sm:$0xf]  ;;  %v8297_v35 = vor.u32 %v9086_v0, %v8294_v9 }
 0x741   :  { %v8070_v2 = vld [vmem:[#allocation8 + $0x4f8] sm:$0xf0] }
 0x742   :  { %5501 = vmatpush.bf16.msrb.mxu3 %v7785_v4  ;;  %5523 = vmatpush.bf16.msrb.mxu1 %v8425_v5  ;;  %v5246_v4 = vadd.f32 %v9807_v62, %v5233_v54  ;;  %v5273_v5 = vpop.f32.mrf.mxu1  ;;  %v8073_v58 = vor.u32 %v9030_v1, %v8070_v2  ;;  %v9078_v42 = vld [vmem:[#allocation8 + $0x65c] sm:$0xf]  ;;  %v3827_v1 = vperm.slane %v9790_v53, 4 }
 0x743   :  { %5465 = vmatmul.bf16.vlgmr.msra.gmra.mxu0 %v9767_v29  ;;  %v8262_v31 = vld [vmem:[#allocation8 + $0x678] sm:$0xf0] }
 0x744   :  { %5487 = vmatpush.bf16.msrb.mxu2 %v7561_v41  ;;  %5509 = vmatpush.bf16.msrb.mxu0 %v8201_v45  ;;  %v5259_v41 = vadd.f32 %v5258_v33, %v5246_v4  ;;  %v9022_v7 = vld [vmem:[#allocation8 + $0x49c] sm:$0xf]  ;;  %v8265_v8 = vor.u32 %v9078_v42, %v8262_v31 }
 0x745   :  { %v8038_v45 = vld [vmem:[#allocation8 + $0x4b8] sm:$0xf0] }
 0x746   :  { %5502 = vmatpush.bf16.msrb.mxu3 %v7753_v15  ;;  %5524 = vmatpush.bf16.msrb.mxu1 %v8393_v17  ;;  %v5272_v61 = vadd.f32 %v5271_v43, %v5259_v41  ;;  %v8041_v62 = vor.u32 %v9022_v7, %v8038_v45  ;;  %v9070_v10 = vld [vmem:[#allocation8 + $0x61c] sm:$0xf] }
 0x747   :  { %v8230_v44 = vld [vmem:[#allocation8 + $0x638] sm:$0xf0] }
 0x748   :  { %5488 = vmatpush.bf16.msrb.mxu2 %v7529_v18  ;;  %5510 = vmatpush.bf16.msrb.mxu0 %v8169_v11  ;;  %v5260_v12 = vpop.f32.mrf.mxu0  ;;  %v9014_v13 = vld [vmem:[#allocation8 + $0x45c] sm:$0xf]  ;;  %v8233_v16 = vor.u32 %v9070_v10, %v8230_v44  ;;  %v5537_v17 = vsub.f32 0.0, %v5272_v61  ;;  %v5543_v11 = vmul.f32 1.442695, %v5535_v21 }
 0x749   :  { %v8006_v14 = vld [vmem:[#allocation8 + $0x478] sm:$0xf0] }
 0x74a   :  { %5503 = vmatpush.bf16.msrb.mxu3 %v7721_v40  ;;  %5525 = vmatpush.bf16.msrb.mxu1 %v8361_v32  ;;  %v8009_v18 = vor.u32 %v9014_v13, %v8006_v14  ;;  %v7974_v6 = vld [vmem:[#allocation8 + $0x438] sm:$0xf0]  ;;  %v5547_v22 = vmul.f32 1.442695, %v5537_v17 }
 0x74c   :  { %5489 = vmatpush.bf16.msrb.mxu2 %v7497_v50  ;;  %5511 = vmatpush.bf16.msrb.mxu0 %v8137_v47 }
 0x74d   :  { %5504 = vmatmul.bf16.vlgmr.msrb.gmra.mxu3 %v9755_v48  ;;  %v5220_v48 = vadd.f32 %v9803_v25, %v5207_v3  ;;  %v9006_v25 = vld [vmem:[#allocation8 + $0x41c] sm:$0xf] }
 0x74e   :  { %5526 = vmatpush.bf16.msrb.mxu1 %v8329_v56  ;;  %v7977_v23 = vor.u32 %v9006_v25, %v7974_v6 }
 0x74f   :  { %v5536_v15 = vsub.f32 0.0, %v5220_v48 }
 0x750   :  { %5490 = vmatpush.bf16.msrb.mxu2 %v7465_v57  ;;  %5512 = vmatpush.bf16.msrb.mxu0 %v8105_v63  ;;  %v5297_v19 = vpop.f32.mrf.mxu3 }
 0x752   :  { %5527 = vmatpush.bf16.msrb.mxu1 %v8297_v35 }
 0x753   :  { %5491 = vmatmul.bf16.vlgmr.msrb.gmra.mxu2 %v9758_v59  ;;  %v5545_v59 = vmul.f32 1.442695, %v5536_v15 }
 0x754   :  { %5513 = vmatpush.bf16.msrb.mxu0 %v8073_v58 }
 0x755   :  { %9151 = vpow2.f32 %v5545_v59 }
 0x756   :  { %5528 = vmatpush.bf16.msrb.mxu1 %v8265_v8  ;;  %v5284_v26 = vpop.f32.mrf.mxu2  ;;  %9153 = vpow2.f32 %v5547_v22 }
 0x757   :  { %9155 = vpow2.f32 %v5543_v11  ;;  %v5285_v34 = vadd.f32 %v5284_v26, %v3826_v27 }
 0x758   :  { %5514 = vmatpush.bf16.msrb.mxu0 %v8041_v62  ;;  %v5299_v28 = vpop.f32.mrf.mxu3 }
 0x759   :  { %v5298_v32 = vadd.f32 %v5297_v19, %v5285_v34 }
 0x75a   :  { %5529 = vmatpush.bf16.msrb.mxu1 %v8233_v16  ;;  %v5323_v24 = vpop.f32.mrf.mxu1 }
 0x75b   :  { %v9152_v36 = vpop.eup %9151 }
 0x75c   :  { %5515 = vmatpush.bf16.msrb.mxu0 %v8009_v18  ;;  %v9154_v39 = vpop.eup %9153  ;;  %v5560_v43 = vadd.f32 1.0, %v9152_v36 }
 0x75d   :  { %5530 = vmatmul.bf16.vlgmr.msrb.gmra.mxu1 %v9763_v20  ;;  %v9156_v50 = vpop.eup %9155  ;;  %v9824_v38 = vadd.f32 1.0, %v9154_v39 }
 0x75e   :  { %v5286_v40 = vpop.f32.mrf.mxu2  ;;  %9157 = vrcp.f32 %v5560_v43  ;;  %v9826_v37 = vadd.f32 1.0, %v9156_v50  ;;  %v5591_v48 = vand.u32 2147483647, %v5560_v43  ;;  %v5593_v8 = vand.u32 2147483648, %v5560_v43 }
 0x75f   :  { %9159 = vrcp.f32 %v9824_v38  ;;  %vm5587_vm5 = vweird.f32 %v5560_v43  ;;  %v5608_v12 = vand.u32 2147483648, %v9824_v38  ;;  %vm5602_vm10 = vweird.f32 %v9824_v38 }
 0x760   :  { %5516 = vmatpush.bf16.msrb.mxu0 %v7977_v23  ;;  %v5310_v20 = vpop.f32.mrf.mxu0  ;;  %9161 = vrcp.f32 %v9826_v37  ;;  %vm5572_vm7 = vweird.f32 %v9826_v37  ;;  %v5606_v14 = vand.u32 2147483647, %v9824_v38  ;;  %vm5592_vm11 = vcmp.eq.f32.partialorder %v5591_v48, 8.507059e+37 }
 0x761   :  { %v5311_v46 = vadd.f32 %v5310_v20, %v5298_v32  ;;  %v5594_v18 = vor.u32 1.1754944e-38, %v5593_v8  ;;  %v5576_v22 = vand.u32 2147483647, %v9826_v37  ;;  %v5578_v23 = vand.u32 2147483648, %v9826_v37 }
 0x762   :  { %v5325_v47 = vpop.f32.mrf.mxu1  ;;  %v5609_v26 = vor.u32 1.1754944e-38, %v5608_v12  ;;  %vm5607_vm15 = vcmp.eq.f32.partialorder %v5606_v14, 8.507059e+37 }
 0x763   :  { %5517 = vmatmul.bf16.vlgmr.msrb.gmra.mxu0 %v9767_v29  ;;  %v5324_v30 = vadd.f32 %v5323_v24, %v5311_v46  ;;  %v5579_v20 = vor.u32 1.1754944e-38, %v5578_v23 }
 0x764   :  { %v9158_v51 = vpop.eup %9157 }
 0x765   :  { %v5538_v29 = vsub.f32 0.0, %v5324_v30  ;;  %v9830_v54 = vpop.eup %9159  ;;  %v5583_v55 = vmul.f32 %v9158_v51, %v5560_v43  ;;  %vm5588_vm4 = vweird.f32 %v9158_v51 }
 0x766   :  { %v9832_v56 = vpop.eup %9161  ;;  %v5598_v57 = vmul.f32 %v9830_v54, %v9824_v38  ;;  %vm5603_vm6 = vweird.f32 %v9830_v54  ;;  %vm9849_vm9 = vmor %vm5587_vm5, %vm5588_vm4  ;;  %vm5703_vm4 = vcmask 1045508   ;;  %vm5577_vm5 = vcmp.eq.f32.partialorder %v5576_v22, 8.507059e+37 }
 0x767   :  { %v5549_v49 = vmul.f32 1.442695, %v5538_v29  ;;  %v5584_v0 = vsub.f32 1.0, %v5583_v55  ;;  %v5568_v9 = vmul.f32 %v9832_v56, %v9826_v37  ;;  %vm5573_vm8 = vweird.f32 %v9832_v56  ;;  %vm9859_vm12 = vmor %vm5602_vm10, %vm5603_vm6 }
 0x768   :  { %v5312_v52 = vpop.f32.mrf.mxu0  ;;  %v5599_v2 = vsub.f32 1.0, %v5598_v57  ;;  %vm9877_vm14 = vmor %vm5572_vm7, %vm5573_vm8  ;;  %vm5705_vm6 = vcmask 1043456   ;;  %v3828_v55 = vperm.slane %v9790_v53, 5 }
 0x769   :  { %9163 = vpow2.f32 %v5549_v49  ;;  %v5585_v3 = vmul.f32 %v9158_v51, %v5584_v0  ;;  %v5569_v5 = vsub.f32 1.0, %v5568_v9 }
 0x76a   :  { %v5600_v41 = vmul.f32 %v9830_v54, %v5599_v2 }
 0x76b   :  { %v5586_v31 = vadd.f32 %v9158_v51, %v5585_v3  ;;  %v5570_v45 = vmul.f32 %v9832_v56, %v5569_v5 }
 0x76c   :  { %v5601_v62 = vadd.f32 %v9830_v54, %v5600_v41 }
 0x76d   :  { %v5590_v13 = vsel %vm9849_vm9, %v9158_v51, %v5586_v31  ;;  %v5571_v17 = vadd.f32 %v9832_v56, %v5570_v45 }
 0x76e   :  { %v5605_v6 = vsel %vm9859_vm12, %v9830_v54, %v5601_v62  ;;  %v5595_v11 = vsel %vm5592_vm11, %v5594_v18, %v5590_v13  ;;  %v3829_v13 = vperm.slane %v9790_v53, 6 }
 0x76f   :  { %v9164_v63 = vpop.eup %9163  ;;  %v5575_v34 = vsel %vm9877_vm14, %v9832_v56, %v5571_v17  ;;  %v5610_v39 = vsel %vm5607_vm15, %v5609_v26, %v5605_v6  ;;  %v5695_v32 = vrot.slane %v5595_v11, 6 }
 0x770   :  { %v5349_v60 = vpop.f32.mrf.mxu3  ;;  %v9838_v33 = vadd.f32 1.0, %v9164_v63  ;;  %v5696_v47 = vrot.slane %v5610_v39, 4  ;;  %v5580_v30 = vsel %vm5577_vm5, %v5579_v20, %v5575_v34 }
 0x771   :  { %v5702_v29 = vsel %vm5701_vm3, %v5580_v30, %v5695_v32 }
 0x772   :  { %9165 = vrcp.f32 %v9838_v33  ;;  %v5623_v25 = vand.u32 2147483648, %v9838_v33  ;;  %v5621_v21 = vand.u32 2147483647, %v9838_v33  ;;  %vm5617_vm0 = vweird.f32 %v9838_v33 }
 0x774   :  { %v5624_v43 = vor.u32 1.1754944e-38, %v5623_v25  ;;  %vm5622_vm2 = vcmp.eq.f32.partialorder %v5621_v21, 8.507059e+37 }
 0x776   :  { %v5336_v4 = vpop.f32.mrf.mxu2 }
 0x777   :  { %v5337_v35 = vadd.f32 %v5336_v4, %v3827_v1 }
 0x778   :  { %v5351_v58 = vpop.f32.mrf.mxu3  ;;  %v9166_v7 = vpop.eup %9165 }
 0x779   :  { %v5350_v42 = vadd.f32 %v5349_v60, %v5337_v35  ;;  %v5613_v10 = vmul.f32 %v9166_v7, %v9838_v33  ;;  %vm5618_vm13 = vweird.f32 %v9166_v7 }
 0x77a   :  { %v5375_v61 = vpop.f32.mrf.mxu1  ;;  %vm5619_vm1 = vmor %vm5617_vm0, %vm5618_vm13 }
 0x77b   :  { %v5614_v15 = vsub.f32 1.0, %v5613_v10 }
 0x77d   :  { %v5615_v59 = vmul.f32 %v9166_v7, %v5614_v15 }
 0x77e   :  { %v5338_v16 = vpop.f32.mrf.mxu2 }
 0x77f   :  { %v5616_v24 = vadd.f32 %v9166_v7, %v5615_v59 }
 0x780   :  { %v5362_v27 = vpop.f32.mrf.mxu0 }
 0x781   :  { %v5363_v36 = vadd.f32 %v5362_v27, %v5350_v42  ;;  %v5620_v50 = vsel %vm5619_vm1, %v9166_v7, %v5616_v24 }
 0x782   :  { %v5377_v40 = vpop.f32.mrf.mxu1  ;;  %v5625_v46 = vsel %vm5622_vm2, %v5624_v43, %v5620_v50 }
 0x783   :  { %v5376_v38 = vadd.f32 %v5375_v61, %v5363_v36  ;;  %v5697_v37 = vrot.slane %v5625_v46, 2 }
 0x785   :  { %v5704_v49 = vsel %vm5703_vm4, %v5696_v47, %v5697_v37  ;;  %v5539_v56 = vsub.f32 0.0, %v5376_v38 }
 0x786   :  { %v5706_v51 = vsel %vm5705_vm6, %v5702_v29, %v5704_v49 }
 0x787   :  { %5712 = vst [vmem:[%s9967_s13] sm:$0xff] %v5706_v51  ;;  %v5551_v63 = vmul.f32 1.442695, %v5539_v56  ;;  %v3830_v51 = vperm.slane %v9790_v53, 7 }
 0x788   :  { %v5364_v52 = vpop.f32.mrf.mxu0 }
 0x789   :  { %9167 = vpow2.f32 %v5551_v63 }
 0x78f   :  { %v9168_v3 = vpop.eup %9167 }
 0x790   :  { %v5401_v54 = vpop.f32.mrf.mxu3  ;;  %v5563_v41 = vadd.f32 1.0, %v9168_v3 }
 0x792   :  { %9169 = vrcp.f32 %v5563_v41  ;;  %vm5632_vm9 = vweird.f32 %v5563_v41  ;;  %v5638_v22 = vand.u32 2147483648, %v5563_v41  ;;  %v5636_v26 = vand.u32 2147483647, %v5563_v41 }
 0x794   :  { %v5639_v43 = vor.u32 1.1754944e-38, %v5638_v22  ;;  %vm5637_vm14 = vcmp.eq.f32.partialorder %v5636_v26, 8.507059e+37 }
 0x796   :  { %v5388_v57 = vpop.f32.mrf.mxu2 }
 0x797   :  { %v5389_v60 = vadd.f32 %v5388_v57, %v3828_v55 }
 0x798   :  { %v5403_v0 = vpop.f32.mrf.mxu3  ;;  %v9170_v45 = vpop.eup %9169 }
 0x799   :  { %v5402_v9 = vadd.f32 %v5401_v54, %v5389_v60  ;;  %v5628_v61 = vmul.f32 %v9170_v45, %v5563_v41  ;;  %vm5633_vm7 = vweird.f32 %v9170_v45 }
 0x79a   :  { %v5427_v33 = vpop.f32.mrf.mxu1  ;;  %vm9897_vm10 = vmor %vm5632_vm9, %vm5633_vm7 }
 0x79b   :  { %v5629_v10 = vsub.f32 1.0, %v5628_v61 }
 0x79d   :  { %v5630_v15 = vmul.f32 %v9170_v45, %v5629_v10 }
 0x79e   :  { %v5390_v1 = vpop.f32.mrf.mxu2 }
 0x79f   :  { %v5631_v6 = vadd.f32 %v9170_v45, %v5630_v15 }
 0x7a0   :  { %v5414_v2 = vpop.f32.mrf.mxu0 }
 0x7a1   :  { %v5415_v4 = vadd.f32 %v5414_v2, %v5402_v9  ;;  %v5635_v34 = vsel %vm9897_vm10, %v9170_v45, %v5631_v6 }
 0x7a2   :  { %v5429_v5 = vpop.f32.mrf.mxu1  ;;  %v5640_v38 = vsel %vm5637_vm14, %v5639_v43, %v5635_v34 }
 0x7a3   :  { %v5428_v35 = vadd.f32 %v5427_v33, %v5415_v4 }
 0x7a5   :  { %v5540_v58 = vsub.f32 0.0, %v5428_v35 }
 0x7a7   :  { %v5553_v42 = vmul.f32 1.442695, %v5540_v58 }
 0x7a8   :  { %v5416_v31 = vpop.f32.mrf.mxu0 }
 0x7a9   :  { %9171 = vpow2.f32 %v5553_v42 }
 0x7af   :  { %v9172_v48 = vpop.eup %9171 }
 0x7b0   :  { %v5453_v7 = vpop.f32.mrf.mxu3  ;;  %v5564_v8 = vadd.f32 1.0, %v9172_v48 }
 0x7b2   :  { %9173 = vrcp.f32 %v5564_v8  ;;  %v5653_v19 = vand.u32 2147483648, %v5564_v8  ;;  %v5651_v21 = vand.u32 2147483647, %v5564_v8  ;;  %vm5647_vm11 = vweird.f32 %v5564_v8 }
 0x7b4   :  { %v5654_v28 = vor.u32 1.1754944e-38, %v5653_v19  ;;  %vm5652_vm13 = vcmp.eq.f32.partialorder %v5651_v21, 8.507059e+37 }
 0x7b6   :  { %v5440_v62 = vpop.f32.mrf.mxu2 }
 0x7b7   :  { %v5441_v25 = vadd.f32 %v5440_v62, %v3829_v13 }
 0x7b8   :  { %v5455_v44 = vpop.f32.mrf.mxu3  ;;  %v9174_v12 = vpop.eup %9173 }
 0x7b9   :  { %v5643_v16 = vmul.f32 %v9174_v12, %v5564_v8  ;;  %vm5648_vm8 = vweird.f32 %v9174_v12  ;;  %v5454_v24 = vadd.f32 %v5453_v7, %v5441_v25 }
 0x7ba   :  { %v5479_v14 = vpop.f32.mrf.mxu1  ;;  %vm5649_vm12 = vmor %vm5647_vm11, %vm5648_vm8 }
 0x7bb   :  { %v5644_v17 = vsub.f32 1.0, %v5643_v16 }
 0x7bd   :  { %v5645_v59 = vmul.f32 %v9174_v12, %v5644_v17 }
 0x7be   :  { %v5442_v18 = vpop.f32.mrf.mxu2 }
 0x7bf   :  { %v5646_v27 = vadd.f32 %v9174_v12, %v5645_v59 }
 0x7c0   :  { %v5466_v23 = vpop.f32.mrf.mxu0 }
 0x7c1   :  { %v5650_v39 = vsel %vm5649_vm12, %v9174_v12, %v5646_v27  ;;  %v5467_v32 = vadd.f32 %v5466_v23, %v5454_v24 }
 0x7c2   :  { %v5481_v36 = vpop.f32.mrf.mxu1  ;;  %v5655_v40 = vsel %vm5652_vm13, %v5654_v28, %v5650_v39 }
 0x7c3   :  { %v5698_v50 = vrot.slane %v5655_v40, 6  ;;  %v5480_v46 = vadd.f32 %v5479_v14, %v5467_v32 }
 0x7c5   :  { %v5707_v20 = vsel %vm5701_vm3, %v5640_v38, %v5698_v50  ;;  %v5541_v37 = vsub.f32 0.0, %v5480_v46 }
 0x7c7   :  { %v5555_v29 = vmul.f32 1.442695, %v5541_v37 }
 0x7c8   :  { %v5468_v47 = vpop.f32.mrf.mxu0 }
 0x7c9   :  { %9175 = vpow2.f32 %v5555_v29 }
 0x7cf   :  { %v9176_v56 = vpop.eup %9175 }
 0x7d0   :  { %v5505_v30 = vpop.f32.mrf.mxu3  ;;  %v5565_v63 = vadd.f32 1.0, %v9176_v56 }
 0x7d2   :  { %9177 = vrcp.f32 %v5565_v63  ;;  %v5668_v48 = vand.u32 2147483648, %v5565_v63  ;;  %vm5662_vm0 = vweird.f32 %v5565_v63  ;;  %v5666_v8 = vand.u32 2147483647, %v5565_v63 }
 0x7d4   :  { %v5669_v13 = vor.u32 1.1754944e-38, %v5668_v48  ;;  %vm5667_vm3 = vcmp.eq.f32.partialorder %v5666_v8, 8.507059e+37 }
 0x7d6   :  { %v5492_v49 = vpop.f32.mrf.mxu2 }
 0x7d7   :  { %v5493_v54 = vadd.f32 %v5492_v49, %v3830_v51 }
 0x7d8   :  { %v5507_v52 = vpop.f32.mrf.mxu3  ;;  %v9178_v5 = vpop.eup %9177 }
 0x7d9   :  { %v5506_v60 = vadd.f32 %v5505_v30, %v5493_v54  ;;  %v5658_v35 = vmul.f32 %v9178_v5, %v5565_v63  ;;  %vm5663_vm15 = vweird.f32 %v9178_v5 }
 0x7da   :  { %v5531_v55 = vpop.f32.mrf.mxu1  ;;  %vm5664_vm1 = vmor %vm5662_vm0, %vm5663_vm15 }
 0x7db   :  { %v5659_v58 = vsub.f32 1.0, %v5658_v35 }
 0x7dd   :  { %v5660_v42 = vmul.f32 %v9178_v5, %v5659_v58 }
 0x7de   :  { %v5494_v57 = vpop.f32.mrf.mxu2 }
 0x7df   :  { %v5661_v7 = vadd.f32 %v9178_v5, %v5660_v42 }
 0x7e0   :  { %v5518_v0 = vpop.f32.mrf.mxu0 }
 0x7e1   :  { %v5519_v9 = vadd.f32 %v5518_v0, %v5506_v60  ;;  %v5665_v10 = vsel %vm5664_vm1, %v9178_v5, %v5661_v7 }
 0x7e2   :  { %v5533_v1 = vpop.f32.mrf.mxu1  ;;  %v5670_v15 = vsel %vm5667_vm3, %v5669_v13, %v5665_v10 }
 0x7e3   :  { %v5532_v33 = vadd.f32 %v5531_v55, %v5519_v9  ;;  %v5699_v19 = vrot.slane %v5670_v15, 4 }
 0x7e5   :  { %v5542_v2 = vsub.f32 0.0, %v5532_v33 }
 0x7e7   :  { %v5557_v3 = vmul.f32 1.442695, %v5542_v2 }
 0x7e8   :  { %v5520_v4 = vpop.f32.mrf.mxu0 }
 0x7e9   :  { %9179 = vpow2.f32 %v5557_v3 }
 0x7ef   :  { %v9180_v41 = vpop.eup %9179 }
 0x7f0   :  { %v5566_v53 = vadd.f32 1.0, %v9180_v41 }
 0x7f2   :  { %9181 = vrcp.f32 %v5566_v53  ;;  %v5683_v62 = vand.u32 2147483648, %v5566_v53  ;;  %v5681_v12 = vand.u32 2147483647, %v5566_v53  ;;  %vm5677_vm5 = vweird.f32 %v5566_v53 }
 0x7f4   :  { %v5684_v16 = vor.u32 1.1754944e-38, %v5683_v62  ;;  %vm5682_vm8 = vcmp.eq.f32.partialorder %v5681_v12, 8.507059e+37 }
 0x7f8   :  { %v9182_v31 = vpop.eup %9181 }
 0x7f9   :  { %v5673_v45 = vmul.f32 %v9182_v31, %v5566_v53  ;;  %vm5678_vm2 = vweird.f32 %v9182_v31 }
 0x7fa   :  { %vm5679_vm7 = vmor %vm5677_vm5, %vm5678_vm2 }
 0x7fb   :  { %v5674_v61 = vsub.f32 1.0, %v5673_v45 }
 0x7fd   :  { %v5675_v44 = vmul.f32 %v9182_v31, %v5674_v61 }
 0x7ff   :  { %v5676_v14 = vadd.f32 %v9182_v31, %v5675_v44 }
 0x801   :  { %v5680_v17 = vsel %vm5679_vm7, %v9182_v31, %v5676_v14 }
 0x802   :  { %v5685_v18 = vsel %vm5682_vm8, %v5684_v16, %v5680_v17 }
 0x803   :  { %v5700_v25 = vrot.slane %v5685_v18, 2 }
 0x805   :  { %v5708_v6 = vsel %vm5703_vm4, %v5699_v19, %v5700_v25 }
 0x806   :  { %v5709_v59 = vsel %vm5705_vm6, %v5707_v20, %v5708_v6 }
 0x807   :  { %5713 = vst [vmem:[%s9967_s13 + $0x8] sm:$0xff] %v5709_v59 }
 0x808   :  { %9334 = dma.done.wait [#allocation4], 32  }
 0x809   :  { %9335 = vsyncadd [#allocation4], 4294967264 }
 0x80a   :  { %9336 = dma.done.wait [#allocation12], 32  }
 0x80b   :  { %9337 = vsyncadd [#allocation12], 4294967264 }
 0x80c   :  { %5755 = vsyncpa [#allocation3], 1 }
 0x80d   :  { %5756 = vsyncpa [#allocation6], 1 }
 0x80e   :  { %5757 = vsyncpa [#allocation9], 1 }
 0x80f   :  { %5758 = vsyncpa [#allocation4], 1 }
 0x810   :  { %5759 = vsyncpa [#allocation12], 1 }

</bundles_post_ra>
